<compile_context>
chip_gen: v5e
topology: v5e:2x2
jax: 0.10.0
libtpu: 0.0.40
codegen_flags: <defaults>
</compile_context>

<pallas_src>
import jax
import jax.numpy as jnp
from jax import lax
from jax.experimental import pallas as pl
from jax.experimental.pallas import tpu as pltpu


# ----------------------------------------------------------------------------
# Fused kernel
# ----------------------------------------------------------------------------

def lenet_kernel(x1_ref, b1_ref, b2_ref,
                 ce1_ref, co1_ref, re1_ref, ro1_ref,
                 ce2_ref, co2_ref, re2_ref, ro2_ref,
                 g1_ref, g1t_ref, g2_ref, g2t_ref,
                 pad2_ref, wfc_ref,
                 out_ref,
                 y1acc, x2s, y2acc):
    """Entire LeNet forward in VMEM, lane-dense layouts.

    x1_ref   : (32, N*32)          padded conv1 input frame, lane = n*32 + w
    b1_ref   : (5, N*32, N*224)    conv1 band matrices (one per kernel row kh)
    b2_ref   : (5, N*144, N*56)    conv2 band matrices
    ce1/co1  : (N*224, N*112)      pool1 even/odd column (W) selection
    re1/ro1  : (14, 28)            pool1 even/odd row (H) selection
    ce2/co2  : (N*56, N*28)        pool2 even/odd column selection
    re2/ro2  : (7, 14)             pool2 even/odd row selection
    g1/g1t   : (N*224, 8)/(8, N*224)  BN1 channel group-sum / broadcast
    g2/g2t   : (N*56, 4)/(4, N*56)    BN2 channel group-sum / broadcast
    pad2_ref : (N*112, N*144)      lane zero-padding (W pad=2) for conv2 input
    wfc_ref  : (7, N*28, N*32)     per-row fc1 weights (block-diag in n)
    out_ref  : (1, N*32)           flattened output (reshaped to (N,32) outside)
    scratch  : y1acc (28, N*224), x2s (18, N*144), y2acc (14, N*56)
    """
    f32 = jnp.float32
    n32 = out_ref.shape[1]
    N = n32 // 32

    def dot(a, b):
        return jnp.dot(a, b, preferred_element_type=f32)

    def bn_lrelu(y, gref, gtref, count):
        # BatchNorm2d(affine=False, eps=1e-4), training-mode batch statistics
        # over (N, H, W) per channel.  Two-pass variance (robust), all channels
        # of a stage computed in one fused pass on the lane-dense slab.
        inv_count = 1.0 / count
        s_lane = jnp.sum(y, axis=0, keepdims=True)                  # (1, L)
        mean_c = dot(s_lane, gref[...]) * inv_count                 # (1, C)
        mean_l = dot(mean_c, gtref[...])                            # (1, L)
        d = y - mean_l
        ssq_lane = jnp.sum(d * d, axis=0, keepdims=True)            # (1, L)
        var_c = dot(ssq_lane, gref[...]) * inv_count                # (1, C)
        inv_c = lax.rsqrt(var_c + 1e-4)                             # EUP
        inv_l = dot(inv_c, gtref[...])                              # (1, L)
        z = d * inv_l
        return jnp.where(z >= 0, z, 0.01 * z)                       # LeakyReLU

    # ---------------- conv1 (1 -> 8, 5x5, pad=2) as 5 banded matmuls ----------
    # accumulate into VMEM scratch (bounded vreg live range, N-scalable)
    y1acc[...] = jnp.zeros(y1acc.shape, f32)
    for kh in range(5):
        y1acc[...] += dot(x1_ref[kh:kh + 28, :], b1_ref[kh])        # (28, N*224)

    a1 = bn_lrelu(y1acc[...], g1_ref, g1t_ref, float(N * 28 * 28))  # (28, N*224)

    # ---------------- maxpool 2x2 (28 -> 14): 4 dense selection matmuls -------
    ph1 = jnp.maximum(dot(a1, ce1_ref[...]), dot(a1, co1_ref[...]))   # (28, N*112)
    p1 = jnp.maximum(dot(re1_ref[...], ph1), dot(ro1_ref[...], ph1))  # (14, N*112)

    # ---------------- conv2 input frame: zero only the 2-row rings ------------
    # (the W padding / channel gaps are produced directly by the pad2 matmul)
    x2s[0:2, :] = jnp.zeros((2, x2s.shape[1]), f32)
    x2s[16:18, :] = jnp.zeros((2, x2s.shape[1]), f32)
    x2s[2:16, :] = dot(p1, pad2_ref[...])                             # (14, N*144)

    # ---------------- conv2 (8 -> 4, 5x5, pad=2) as 5 banded matmuls ----------
    y2acc[...] = jnp.zeros(y2acc.shape, f32)
    for kh in range(5):
        y2acc[...] += dot(x2s[kh:kh + 14, :], b2_ref[kh])             # (14, N*56)

    a2 = bn_lrelu(y2acc[...], g2_ref, g2t_ref, float(N * 14 * 14))    # (14, N*56)

    # ---------------- maxpool 2x2 (14 -> 7) -----------------------------------
    ph2 = jnp.maximum(dot(a2, ce2_ref[...]), dot(a2, co2_ref[...]))   # (14, N*28)
    p2 = jnp.maximum(dot(re2_ref[...], ph2), dot(ro2_ref[...], ph2))  # (7,  N*28)

    # ---------------- fc1: 7 accumulated MXU matmuls, one output store --------
    acc = jnp.zeros((1, n32), f32)
    for h in range(7):
        acc = acc + dot(p2[h:h + 1, :], wfc_ref[h])                   # (1, N*32)
    out_ref[...] = acc


# ----------------------------------------------------------------------------
# Wrapper: trace-time operand construction (layout plumbing) + one pallas_call
# ----------------------------------------------------------------------------

def _blockdiag(m, n):
    """kron(eye(n), m) for m of shape (..., R, C) -> (..., n*R, n*C)."""
    eye = jnp.eye(n, dtype=m.dtype)
    out = jnp.einsum('ij,...kl->...ikjl', eye, m)
    return out.reshape(m.shape[:-2] + (n * m.shape[-2], n * m.shape[-1]))


def _sel(win, wout, off):
    """(win, wout) 0/1 matrix: sel[w_in, w_out] = 1 iff w_in == 2*w_out + off."""
    r = jnp.arange(win)[:, None]
    c = jnp.arange(wout)[None, :]
    return (r == 2 * c + off).astype(jnp.float32)


def _build_operands(x, w1, w2, wfc):
    f32 = jnp.float32
    N = x.shape[0]
    x = x.astype(f32)
    w1 = w1.astype(f32)
    w2 = w2.astype(f32)
    wfc = wfc.astype(f32)

    # padded, lane-dense conv1 input frame: (32, N*32), image at rows/cols 2..29
    xp = jnp.pad(x[:, 0], ((0, 0), (2, 2), (2, 2)))                  # (N, 32, 32)
    x1 = jnp.transpose(xp, (1, 0, 2)).reshape(32, N * 32)

    # conv1 band matrices: b1[kh][n*32+wp, n*224+co*28+wo] = w1[co,0,kh,wp-wo]
    dif1 = jnp.arange(32)[:, None] - jnp.arange(28)[None, :]         # (32, 28)
    val1 = (dif1 >= 0) & (dif1 <= 4)
    w1g = w1[:, 0][:, :, jnp.clip(dif1, 0, 4)]                        # (8,5,32,28)
    w1g = jnp.where(val1[None, None], w1g, 0.0)
    base1 = jnp.transpose(w1g, (1, 2, 0, 3)).reshape(5, 32, 8 * 28)   # (5,32,224)
    b1 = _blockdiag(base1, N)                                         # (5,N*32,N*224)

    # conv2 band matrices: b2[kh][n*144+ci*18+wp, n*56+co*14+wo] = w2[co,ci,kh,wp-wo]
    dif2 = jnp.arange(18)[:, None] - jnp.arange(14)[None, :]          # (18, 14)
    val2 = (dif2 >= 0) & (dif2 <= 4)
    w2g = w2[:, :, :, jnp.clip(dif2, 0, 4)]                           # (4,8,5,18,14)
    w2g = jnp.where(val2[None, None, None], w2g, 0.0)
    base2 = jnp.transpose(w2g, (2, 1, 3, 0, 4)).reshape(5, 8 * 18, 4 * 14)  # (5,144,56)
    b2 = _blockdiag(base2, N)                                         # (5,N*144,N*56)

    # pooling selection matrices (even / odd, columns on lanes, rows on sublanes)
    ce1 = _blockdiag(_sel(28, 14, 0), N * 8)                          # (N*224, N*112)
    co1 = _blockdiag(_sel(28, 14, 1), N * 8)
    re1 = _sel(28, 14, 0).T                                           # (14, 28)
    ro1 = _sel(28, 14, 1).T
    ce2 = _blockdiag(_sel(14, 7, 0), N * 4)                           # (N*56, N*28)
    co2 = _blockdiag(_sel(14, 7, 1), N * 4)
    re2 = _sel(14, 7, 0).T                                            # (7, 14)
    ro2 = _sel(14, 7, 1).T

    # BatchNorm channel group-sum matrices (sum lanes of each channel across n, w)
    g1 = jnp.tile(jnp.repeat(jnp.eye(8, dtype=f32), 28, axis=0), (N, 1))   # (N*224, 8)
    g2 = jnp.tile(jnp.repeat(jnp.eye(4, dtype=f32), 14, axis=0), (N, 1))   # (N*56, 4)

    # conv2 input lane padding (W pad = 2 inside each (n, ci) block)
    padw = (jnp.arange(14)[:, None] + 2 == jnp.arange(18)[None, :]).astype(f32)
    pad2 = _blockdiag(padw, N * 8)                                    # (N*112, N*144)

    # fc1 weights per pooled row h: wfcb[h, n*28+c*7+w, n*32+o] = wfc[o, c*49+h*7+w]
    wr = jnp.transpose(wfc.reshape(32, 4, 7, 7), (2, 1, 3, 0)).reshape(7, 28, 32)
    wfcb = _blockdiag(wr, N)                                          # (7, N*28, N*32)

    return (x1, b1, b2, ce1, co1, re1, ro1, ce2, co2, re2, ro2,
            g1, g1.T, g2, g2.T, pad2, wfcb)


def mnist_lenet_forward(x, w1, w2, wfc):
    """x: (N, 1, 28, 28) float32 NCHW.  Returns (N, 32) float32."""
    N = x.shape[0]
    f32 = jnp.float32
    operands = _build_operands(x, w1, w2, wfc)

    vmem = pl.BlockSpec(memory_space=pltpu.MemorySpace.VMEM)
    out = pl.pallas_call(
        lenet_kernel,
        out_shape=jax.ShapeDtypeStruct((1, N * 32), f32),
        in_specs=[vmem] * len(operands),
        out_specs=vmem,
        scratch_shapes=[
            pltpu.VMEM((28, N * 224), f32),   # y1acc : conv1 accumulator
            pltpu.VMEM((18, N * 144), f32),   # x2s   : padded conv2 input frame
            pltpu.VMEM((14, N * 56), f32),    # y2acc : conv2 accumulator
        ],
        compiler_params=pltpu.CompilerParams(
            vmem_limit_bytes=32 * 1024 * 1024),   # explicit budget; ~3 MiB used
    )(*operands)
    return out.reshape(N, 32)


# ----------------------------------------------------------------------------
# Pure-JAX reference (numerical self-check)
# ----------------------------------------------------------------------------

def reference_forward(x, w1, w2, wfc):
    dn = ('NCHW', 'OIHW', 'NCHW')

    def bn(y):
        mean = jnp.mean(y, axis=(0, 2, 3), keepdims=True)
        var = jnp.mean((y - mean) ** 2, axis=(0, 2, 3), keepdims=True)
        return (y - mean) * jax.lax.rsqrt(var + 1e-4)

    def lrelu(y):
        return jnp.where(y >= 0, y, 0.01 * y)

    def pool(y):
        init = jnp.array(-jnp.inf, dtype=y.dtype)
        return jax.lax.reduce_window(y, init, jax.lax.max,
                                     (1, 1, 2, 2), (1, 1, 2, 2), 'VALID')

    y = jax.lax.conv_general_dilated(x, w1, (1, 1), ((2, 2), (2, 2)),
                                     dimension_numbers=dn)
    y = pool(lrelu(bn(y)))
    y = jax.lax.conv_general_dilated(y, w2, (1, 1), ((2, 2), (2, 2)),
                                     dimension_numbers=dn)
    y = pool(lrelu(bn(y)))
    return y.reshape(y.shape[0], -1) @ wfc.T


# ----------------------------------------------------------------------------
# Main
# ----------------------------------------------------------------------------

if __name__ == "__main__":
    key = jax.random.PRNGKey(0)
    k1, k2, k3, kx = jax.random.split(key, 4)

    # Deterministic synthetic parameters (shapes from the module's __init__).
    w1 = jax.random.normal(k1, (8, 1, 5, 5), jnp.float32) * 0.1       # conv1.weight
    w2 = jax.random.normal(k2, (4, 8, 5, 5), jnp.float32) * 0.1       # conv2.weight
    wfc = jax.random.normal(k3, (32, 4 * 7 * 7), jnp.float32) * 0.1   # fc1.weight

    # MNIST-shaped input: (N, 1, 28, 28) NCHW, small batch.
    x = jax.random.normal(kx, (2, 1, 28, 28), jnp.float32)

    fwd = jax.jit(mnist_lenet_forward)
    out = jax.block_until_ready(fwd(x, w1, w2, wfc))
    assert out.shape == (2, 32) and out.dtype == jnp.float32

    ref = jax.block_until_ready(reference_forward(x, w1, w2, wfc))
    max_err = float(jnp.max(jnp.abs(out - ref)))
    assert max_err < 1e-3, f"kernel/reference mismatch: max abs err = {max_err}"

    print("KERNEL_OK")
</pallas_src>

<mosaic_0001>
module attributes {stable_mosaic.version = 11 : i64} {
  func.func @lenet_kernel(%arg0: memref<32x64xf32, #tpu.memory_space<vmem>>, %arg1: memref<5x64x448xf32, #tpu.memory_space<vmem>>, %arg2: memref<5x288x112xf32, #tpu.memory_space<vmem>>, %arg3: memref<448x224xf32, #tpu.memory_space<vmem>>, %arg4: memref<448x224xf32, #tpu.memory_space<vmem>>, %arg5: memref<14x28xf32, #tpu.memory_space<vmem>>, %arg6: memref<14x28xf32, #tpu.memory_space<vmem>>, %arg7: memref<112x56xf32, #tpu.memory_space<vmem>>, %arg8: memref<112x56xf32, #tpu.memory_space<vmem>>, %arg9: memref<7x14xf32, #tpu.memory_space<vmem>>, %arg10: memref<7x14xf32, #tpu.memory_space<vmem>>, %arg11: memref<448x8xf32, #tpu.memory_space<vmem>>, %arg12: memref<8x448xf32, #tpu.memory_space<vmem>>, %arg13: memref<112x4xf32, #tpu.memory_space<vmem>>, %arg14: memref<4x112xf32, #tpu.memory_space<vmem>>, %arg15: memref<224x288xf32, #tpu.memory_space<vmem>>, %arg16: memref<7x56x64xf32, #tpu.memory_space<vmem>>, %arg17: memref<1x64xf32, #tpu.memory_space<vmem>>, %arg18: memref<28x448xf32, #tpu.memory_space<vmem>>, %arg19: memref<18x288xf32, #tpu.memory_space<vmem>>, %arg20: memref<14x112xf32, #tpu.memory_space<vmem>>) attributes {dimension_semantics = [], scalar_prefetch = 0 : i64, scratch_operands = 3 : i64, tpu.core_type = #tpu.core_type<tc>} {
    %cst = arith.constant 0.000000e+00 : f32
    %0 = vector.broadcast %cst : f32 to vector<28x448xf32>
    %c0 = arith.constant 0 : index
    %c0_0 = arith.constant 0 : index
    %1 = vector.load %arg18[%c0, %c0_0] : memref<28x448xf32, #tpu.memory_space<vmem>>, vector<28x448xf32>
    tpu.vector_store %arg18[%c0, %c0_0], %0 {strides = array<i32>} : memref<28x448xf32, #tpu.memory_space<vmem>>, vector<28x448xf32>,
    %c0_1 = arith.constant 0 : index
    %c0_2 = arith.constant 0 : index
    %2 = vector.load %arg18[%c0_1, %c0_2] : memref<28x448xf32, #tpu.memory_space<vmem>>, vector<28x448xf32>
    %c0_3 = arith.constant 0 : index
    %c0_4 = arith.constant 0 : index
    %3 = vector.load %arg0[%c0_3, %c0_4] : memref<32x64xf32, #tpu.memory_space<vmem>>, vector<28x64xf32>
    %c0_5 = arith.constant 0 : index
    %c0_6 = arith.constant 0 : index
    %c0_7 = arith.constant 0 : index
    %4 = vector.load %arg1[%c0_5, %c0_6, %c0_7] : memref<5x64x448xf32, #tpu.memory_space<vmem>>, vector<1x64x448xf32>
    %5 = vector.shape_cast %4 : vector<1x64x448xf32> to vector<64x448xf32>
    %cst_8 = arith.constant dense<0.000000e+00> : vector<28x448xf32>
    %6 = tpu.matmul %3, %5, %cst_8 {dimension_numbers = #tpu.dot_dimension_numbers<[1], [0], [0], [1], [0, 0, 1, 1], [], []>} : vector<28x64xf32>, vector<64x448xf32>, vector<28x448xf32> -> vector<28x448xf32>
    %7 = arith.addf %2, %6 : vector<28x448xf32>
    %c0_9 = arith.constant 0 : index
    %c0_10 = arith.constant 0 : index
    %8 = vector.load %arg18[%c0_9, %c0_10] : memref<28x448xf32, #tpu.memory_space<vmem>>, vector<28x448xf32>
    tpu.vector_store %arg18[%c0_9, %c0_10], %7 {strides = array<i32>} : memref<28x448xf32, #tpu.memory_space<vmem>>, vector<28x448xf32>,
    %c0_11 = arith.constant 0 : index
    %c0_12 = arith.constant 0 : index
    %9 = vector.load %arg18[%c0_11, %c0_12] : memref<28x448xf32, #tpu.memory_space<vmem>>, vector<28x448xf32>
    %c1 = arith.constant 1 : index
    %c0_13 = arith.constant 0 : index
    %10 = vector.load %arg0[%c1, %c0_13] : memref<32x64xf32, #tpu.memory_space<vmem>>, vector<28x64xf32>
    %c1_14 = arith.constant 1 : index
    %c0_15 = arith.constant 0 : index
    %c0_16 = arith.constant 0 : index
    %11 = vector.load %arg1[%c1_14, %c0_15, %c0_16] : memref<5x64x448xf32, #tpu.memory_space<vmem>>, vector<1x64x448xf32>
    %12 = vector.shape_cast %11 : vector<1x64x448xf32> to vector<64x448xf32>
    %cst_17 = arith.constant dense<0.000000e+00> : vector<28x448xf32>
    %13 = tpu.matmul %10, %12, %cst_17 {dimension_numbers = #tpu.dot_dimension_numbers<[1], [0], [0], [1], [0, 0, 1, 1], [], []>} : vector<28x64xf32>, vector<64x448xf32>, vector<28x448xf32> -> vector<28x448xf32>
    %14 = arith.addf %9, %13 : vector<28x448xf32>
    %c0_18 = arith.constant 0 : index
    %c0_19 = arith.constant 0 : index
    %15 = vector.load %arg18[%c0_18, %c0_19] : memref<28x448xf32, #tpu.memory_space<vmem>>, vector<28x448xf32>
    tpu.vector_store %arg18[%c0_18, %c0_19], %14 {strides = array<i32>} : memref<28x448xf32, #tpu.memory_space<vmem>>, vector<28x448xf32>,
    %c0_20 = arith.constant 0 : index
    %c0_21 = arith.constant 0 : index
    %16 = vector.load %arg18[%c0_20, %c0_21] : memref<28x448xf32, #tpu.memory_space<vmem>>, vector<28x448xf32>
    %c2 = arith.constant 2 : index
    %c0_22 = arith.constant 0 : index
    %17 = vector.load %arg0[%c2, %c0_22] : memref<32x64xf32, #tpu.memory_space<vmem>>, vector<28x64xf32>
    %c2_23 = arith.constant 2 : index
    %c0_24 = arith.constant 0 : index
    %c0_25 = arith.constant 0 : index
    %18 = vector.load %arg1[%c2_23, %c0_24, %c0_25] : memref<5x64x448xf32, #tpu.memory_space<vmem>>, vector<1x64x448xf32>
    %19 = vector.shape_cast %18 : vector<1x64x448xf32> to vector<64x448xf32>
    %cst_26 = arith.constant dense<0.000000e+00> : vector<28x448xf32>
    %20 = tpu.matmul %17, %19, %cst_26 {dimension_numbers = #tpu.dot_dimension_numbers<[1], [0], [0], [1], [0, 0, 1, 1], [], []>} : vector<28x64xf32>, vector<64x448xf32>, vector<28x448xf32> -> vector<28x448xf32>
    %21 = arith.addf %16, %20 : vector<28x448xf32>
    %c0_27 = arith.constant 0 : index
    %c0_28 = arith.constant 0 : index
    %22 = vector.load %arg18[%c0_27, %c0_28] : memref<28x448xf32, #tpu.memory_space<vmem>>, vector<28x448xf32>
    tpu.vector_store %arg18[%c0_27, %c0_28], %21 {strides = array<i32>} : memref<28x448xf32, #tpu.memory_space<vmem>>, vector<28x448xf32>,
    %c0_29 = arith.constant 0 : index
    %c0_30 = arith.constant 0 : index
    %23 = vector.load %arg18[%c0_29, %c0_30] : memref<28x448xf32, #tpu.memory_space<vmem>>, vector<28x448xf32>
    %c3 = arith.constant 3 : index
    %c0_31 = arith.constant 0 : index
    %24 = vector.load %arg0[%c3, %c0_31] : memref<32x64xf32, #tpu.memory_space<vmem>>, vector<28x64xf32>
    %c3_32 = arith.constant 3 : index
    %c0_33 = arith.constant 0 : index
    %c0_34 = arith.constant 0 : index
    %25 = vector.load %arg1[%c3_32, %c0_33, %c0_34] : memref<5x64x448xf32, #tpu.memory_space<vmem>>, vector<1x64x448xf32>
    %26 = vector.shape_cast %25 : vector<1x64x448xf32> to vector<64x448xf32>
    %cst_35 = arith.constant dense<0.000000e+00> : vector<28x448xf32>
    %27 = tpu.matmul %24, %26, %cst_35 {dimension_numbers = #tpu.dot_dimension_numbers<[1], [0], [0], [1], [0, 0, 1, 1], [], []>} : vector<28x64xf32>, vector<64x448xf32>, vector<28x448xf32> -> vector<28x448xf32>
    %28 = arith.addf %23, %27 : vector<28x448xf32>
    %c0_36 = arith.constant 0 : index
    %c0_37 = arith.constant 0 : index
    %29 = vector.load %arg18[%c0_36, %c0_37] : memref<28x448xf32, #tpu.memory_space<vmem>>, vector<28x448xf32>
    tpu.vector_store %arg18[%c0_36, %c0_37], %28 {strides = array<i32>} : memref<28x448xf32, #tpu.memory_space<vmem>>, vector<28x448xf32>,
    %c0_38 = arith.constant 0 : index
    %c0_39 = arith.constant 0 : index
    %30 = vector.load %arg18[%c0_38, %c0_39] : memref<28x448xf32, #tpu.memory_space<vmem>>, vector<28x448xf32>
    %c4 = arith.constant 4 : index
    %c0_40 = arith.constant 0 : index
    %31 = vector.load %arg0[%c4, %c0_40] : memref<32x64xf32, #tpu.memory_space<vmem>>, vector<28x64xf32>
    %c4_41 = arith.constant 4 : index
    %c0_42 = arith.constant 0 : index
    %c0_43 = arith.constant 0 : index
    %32 = vector.load %arg1[%c4_41, %c0_42, %c0_43] : memref<5x64x448xf32, #tpu.memory_space<vmem>>, vector<1x64x448xf32>
    %33 = vector.shape_cast %32 : vector<1x64x448xf32> to vector<64x448xf32>
    %cst_44 = arith.constant dense<0.000000e+00> : vector<28x448xf32>
    %34 = tpu.matmul %31, %33, %cst_44 {dimension_numbers = #tpu.dot_dimension_numbers<[1], [0], [0], [1], [0, 0, 1, 1], [], []>} : vector<28x64xf32>, vector<64x448xf32>, vector<28x448xf32> -> vector<28x448xf32>
    %35 = arith.addf %30, %34 : vector<28x448xf32>
    %c0_45 = arith.constant 0 : index
    %c0_46 = arith.constant 0 : index
    %36 = vector.load %arg18[%c0_45, %c0_46] : memref<28x448xf32, #tpu.memory_space<vmem>>, vector<28x448xf32>
    tpu.vector_store %arg18[%c0_45, %c0_46], %35 {strides = array<i32>} : memref<28x448xf32, #tpu.memory_space<vmem>>, vector<28x448xf32>,
    %c0_47 = arith.constant 0 : index
    %c0_48 = arith.constant 0 : index
    %37 = vector.load %arg18[%c0_47, %c0_48] : memref<28x448xf32, #tpu.memory_space<vmem>>, vector<28x448xf32>
    %cst_49 = arith.constant dense<0.000000e+00> : vector<448xf32>
    %38 = vector.multi_reduction <add>, %37, %cst_49 [0] : vector<28x448xf32> to vector<448xf32>
    %39 = vector.shape_cast %38 : vector<448xf32> to vector<1x448xf32>
    %c0_50 = arith.constant 0 : index
    %c0_51 = arith.constant 0 : index
    %40 = vector.load %arg11[%c0_50, %c0_51] : memref<448x8xf32, #tpu.memory_space<vmem>>, vector<448x8xf32>
    %cst_52 = arith.constant dense<0.000000e+00> : vector<1x8xf32>
    %41 = tpu.matmul %39, %40, %cst_52 {dimension_numbers = #tpu.dot_dimension_numbers<[1], [0], [0], [1], [0, 0, 1, 1], [], []>} : vector<1x448xf32>, vector<448x8xf32>, vector<1x8xf32> -> vector<1x8xf32>
    %cst_53 = arith.constant 6.37755089E-4 : f32
    %42 = vector.broadcast %cst_53 : f32 to vector<1x8xf32>
    %43 = arith.mulf %41, %42 : vector<1x8xf32>
    %c0_54 = arith.constant 0 : index
    %c0_55 = arith.constant 0 : index
    %44 = vector.load %arg12[%c0_54, %c0_55] : memref<8x448xf32, #tpu.memory_space<vmem>>, vector<8x448xf32>
    %cst_56 = arith.constant dense<0.000000e+00> : vector<1x448xf32>
    %45 = tpu.matmul %43, %44, %cst_56 {dimension_numbers = #tpu.dot_dimension_numbers<[1], [0], [0], [1], [0, 0, 1, 1], [], []>} : vector<1x8xf32>, vector<8x448xf32>, vector<1x448xf32> -> vector<1x448xf32>
    %46 = vector.broadcast %45 : vector<1x448xf32> to vector<28x448xf32>
    %47 = arith.subf %37, %46 : vector<28x448xf32>
    %48 = arith.mulf %47, %47 : vector<28x448xf32>
    %cst_57 = arith.constant dense<0.000000e+00> : vector<448xf32>
    %49 = vector.multi_reduction <add>, %48, %cst_57 [0] : vector<28x448xf32> to vector<448xf32>
    %50 = vector.shape_cast %49 : vector<448xf32> to vector<1x448xf32>
    %c0_58 = arith.constant 0 : index
    %c0_59 = arith.constant 0 : index
    %51 = vector.load %arg11[%c0_58, %c0_59] : memref<448x8xf32, #tpu.memory_space<vmem>>, vector<448x8xf32>
    %cst_60 = arith.constant dense<0.000000e+00> : vector<1x8xf32>
    %52 = tpu.matmul %50, %51, %cst_60 {dimension_numbers = #tpu.dot_dimension_numbers<[1], [0], [0], [1], [0, 0, 1, 1], [], []>} : vector<1x448xf32>, vector<448x8xf32>, vector<1x8xf32> -> vector<1x8xf32>
    %cst_61 = arith.constant 6.37755089E-4 : f32
    %53 = vector.broadcast %cst_61 : f32 to vector<1x8xf32>
    %54 = arith.mulf %52, %53 : vector<1x8xf32>
    %cst_62 = arith.constant 9.99999974E-5 : f32
    %55 = vector.broadcast %cst_62 : f32 to vector<1x8xf32>
    %56 = arith.addf %54, %55 : vector<1x8xf32>
    %57 = math.rsqrt %56 : vector<1x8xf32>
    %c0_63 = arith.constant 0 : index
    %c0_64 = arith.constant 0 : index
    %58 = vector.load %arg12[%c0_63, %c0_64] : memref<8x448xf32, #tpu.memory_space<vmem>>, vector<8x448xf32>
    %cst_65 = arith.constant dense<0.000000e+00> : vector<1x448xf32>
    %59 = tpu.matmul %57, %58, %cst_65 {dimension_numbers = #tpu.dot_dimension_numbers<[1], [0], [0], [1], [0, 0, 1, 1], [], []>} : vector<1x8xf32>, vector<8x448xf32>, vector<1x448xf32> -> vector<1x448xf32>
    %60 = vector.broadcast %59 : vector<1x448xf32> to vector<28x448xf32>
    %61 = arith.mulf %47, %60 : vector<28x448xf32>
    %cst_66 = arith.constant 0.000000e+00 : f32
    %62 = vector.broadcast %cst_66 : f32 to vector<28x448xf32>
    %63 = arith.cmpf oge, %61, %62 : vector<28x448xf32>
    %cst_67 = arith.constant 0.00999999977 : f32
    %64 = vector.broadcast %cst_67 : f32 to vector<28x448xf32>
    %65 = arith.mulf %64, %61 : vector<28x448xf32>
    %66 = arith.select %63, %61, %65 : vector<28x448xi1>, vector<28x448xf32>
    %c0_68 = arith.constant 0 : index
    %c0_69 = arith.constant 0 : index
    %67 = vector.load %arg3[%c0_68, %c0_69] : memref<448x224xf32, #tpu.memory_space<vmem>>, vector<448x224xf32>
    %cst_70 = arith.constant dense<0.000000e+00> : vector<28x224xf32>
    %68 = tpu.matmul %66, %67, %cst_70 {dimension_numbers = #tpu.dot_dimension_numbers<[1], [0], [0], [1], [0, 0, 1, 1], [], []>} : vector<28x448xf32>, vector<448x224xf32>, vector<28x224xf32> -> vector<28x224xf32>
    %c0_71 = arith.constant 0 : index
    %c0_72 = arith.constant 0 : index
    %69 = vector.load %arg4[%c0_71, %c0_72] : memref<448x224xf32, #tpu.memory_space<vmem>>, vector<448x224xf32>
    %cst_73 = arith.constant dense<0.000000e+00> : vector<28x224xf32>
    %70 = tpu.matmul %66, %69, %cst_73 {dimension_numbers = #tpu.dot_dimension_numbers<[1], [0], [0], [1], [0, 0, 1, 1], [], []>} : vector<28x448xf32>, vector<448x224xf32>, vector<28x224xf32> -> vector<28x224xf32>
    %71 = arith.maximumf %68, %70 : vector<28x224xf32>
    %c0_74 = arith.constant 0 : index
    %c0_75 = arith.constant 0 : index
    %72 = vector.load %arg5[%c0_74, %c0_75] : memref<14x28xf32, #tpu.memory_space<vmem>>, vector<14x28xf32>
    %cst_76 = arith.constant dense<0.000000e+00> : vector<14x224xf32>
    %73 = tpu.matmul %72, %71, %cst_76 {dimension_numbers = #tpu.dot_dimension_numbers<[1], [0], [0], [1], [0, 0, 1, 1], [], []>} : vector<14x28xf32>, vector<28x224xf32>, vector<14x224xf32> -> vector<14x224xf32>
    %c0_77 = arith.constant 0 : index
    %c0_78 = arith.constant 0 : index
    %74 = vector.load %arg6[%c0_77, %c0_78] : memref<14x28xf32, #tpu.memory_space<vmem>>, vector<14x28xf32>
    %cst_79 = arith.constant dense<0.000000e+00> : vector<14x224xf32>
    %75 = tpu.matmul %74, %71, %cst_79 {dimension_numbers = #tpu.dot_dimension_numbers<[1], [0], [0], [1], [0, 0, 1, 1], [], []>} : vector<14x28xf32>, vector<28x224xf32>, vector<14x224xf32> -> vector<14x224xf32>
    %76 = arith.maximumf %73, %75 : vector<14x224xf32>
    %cst_80 = arith.constant 0.000000e+00 : f32
    %77 = vector.broadcast %cst_80 : f32 to vector<2x288xf32>
    %c0_81 = arith.constant 0 : index
    %c0_82 = arith.constant 0 : index
    %78 = vector.load %arg19[%c0_81, %c0_82] : memref<18x288xf32, #tpu.memory_space<vmem>>, vector<2x288xf32>
    tpu.vector_store %arg19[%c0_81, %c0_82], %77 {strides = array<i32>} : memref<18x288xf32, #tpu.memory_space<vmem>>, vector<2x288xf32>,
    %cst_83 = arith.constant 0.000000e+00 : f32
    %79 = vector.broadcast %cst_83 : f32 to vector<2x288xf32>
    %c16 = arith.constant 16 : index
    %c0_84 = arith.constant 0 : index
    %80 = vector.load %arg19[%c16, %c0_84] : memref<18x288xf32, #tpu.memory_space<vmem>>, vector<2x288xf32>
    tpu.vector_store %arg19[%c16, %c0_84], %79 {strides = array<i32>} : memref<18x288xf32, #tpu.memory_space<vmem>>, vector<2x288xf32>,
    %c0_85 = arith.constant 0 : index
    %c0_86 = arith.constant 0 : index
    %81 = vector.load %arg15[%c0_85, %c0_86] : memref<224x288xf32, #tpu.memory_space<vmem>>, vector<224x288xf32>
    %cst_87 = arith.constant dense<0.000000e+00> : vector<14x288xf32>
    %82 = tpu.matmul %76, %81, %cst_87 {dimension_numbers = #tpu.dot_dimension_numbers<[1], [0], [0], [1], [0, 0, 1, 1], [], []>} : vector<14x224xf32>, vector<224x288xf32>, vector<14x288xf32> -> vector<14x288xf32>
    %c2_88 = arith.constant 2 : index
    %c0_89 = arith.constant 0 : index
    %83 = vector.load %arg19[%c2_88, %c0_89] : memref<18x288xf32, #tpu.memory_space<vmem>>, vector<14x288xf32>
    tpu.vector_store %arg19[%c2_88, %c0_89], %82 {strides = array<i32>} : memref<18x288xf32, #tpu.memory_space<vmem>>, vector<14x288xf32>,
    %cst_90 = arith.constant 0.000000e+00 : f32
    %84 = vector.broadcast %cst_90 : f32 to vector<14x112xf32>
    %c0_91 = arith.constant 0 : index
    %c0_92 = arith.constant 0 : index
    %85 = vector.load %arg20[%c0_91, %c0_92] : memref<14x112xf32, #tpu.memory_space<vmem>>, vector<14x112xf32>
    tpu.vector_store %arg20[%c0_91, %c0_92], %84 {strides = array<i32>} : memref<14x112xf32, #tpu.memory_space<vmem>>, vector<14x112xf32>,
    %c0_93 = arith.constant 0 : index
    %c0_94 = arith.constant 0 : index
    %86 = vector.load %arg20[%c0_93, %c0_94] : memref<14x112xf32, #tpu.memory_space<vmem>>, vector<14x112xf32>
    %c0_95 = arith.constant 0 : index
    %c0_96 = arith.constant 0 : index
    %87 = vector.load %arg19[%c0_95, %c0_96] : memref<18x288xf32, #tpu.memory_space<vmem>>, vector<14x288xf32>
    %c0_97 = arith.constant 0 : index
    %c0_98 = arith.constant 0 : index
    %c0_99 = arith.constant 0 : index
    %88 = vector.load %arg2[%c0_97, %c0_98, %c0_99] : memref<5x288x112xf32, #tpu.memory_space<vmem>>, vector<1x288x112xf32>
    %89 = vector.shape_cast %88 : vector<1x288x112xf32> to vector<288x112xf32>
    %cst_100 = arith.constant dense<0.000000e+00> : vector<14x112xf32>
    %90 = tpu.matmul %87, %89, %cst_100 {dimension_numbers = #tpu.dot_dimension_numbers<[1], [0], [0], [1], [0, 0, 1, 1], [], []>} : vector<14x288xf32>, vector<288x112xf32>, vector<14x112xf32> -> vector<14x112xf32>
    %91 = arith.addf %86, %90 : vector<14x112xf32>
    %c0_101 = arith.constant 0 : index
    %c0_102 = arith.constant 0 : index
    %92 = vector.load %arg20[%c0_101, %c0_102] : memref<14x112xf32, #tpu.memory_space<vmem>>, vector<14x112xf32>
    tpu.vector_store %arg20[%c0_101, %c0_102], %91 {strides = array<i32>} : memref<14x112xf32, #tpu.memory_space<vmem>>, vector<14x112xf32>,
    %c0_103 = arith.constant 0 : index
    %c0_104 = arith.constant 0 : index
    %93 = vector.load %arg20[%c0_103, %c0_104] : memref<14x112xf32, #tpu.memory_space<vmem>>, vector<14x112xf32>
    %c1_105 = arith.constant 1 : index
    %c0_106 = arith.constant 0 : index
    %94 = vector.load %arg19[%c1_105, %c0_106] : memref<18x288xf32, #tpu.memory_space<vmem>>, vector<14x288xf32>
    %c1_107 = arith.constant 1 : index
    %c0_108 = arith.constant 0 : index
    %c0_109 = arith.constant 0 : index
    %95 = vector.load %arg2[%c1_107, %c0_108, %c0_109] : memref<5x288x112xf32, #tpu.memory_space<vmem>>, vector<1x288x112xf32>
    %96 = vector.shape_cast %95 : vector<1x288x112xf32> to vector<288x112xf32>
    %cst_110 = arith.constant dense<0.000000e+00> : vector<14x112xf32>
    %97 = tpu.matmul %94, %96, %cst_110 {dimension_numbers = #tpu.dot_dimension_numbers<[1], [0], [0], [1], [0, 0, 1, 1], [], []>} : vector<14x288xf32>, vector<288x112xf32>, vector<14x112xf32> -> vector<14x112xf32>
    %98 = arith.addf %93, %97 : vector<14x112xf32>
    %c0_111 = arith.constant 0 : index
    %c0_112 = arith.constant 0 : index
    %99 = vector.load %arg20[%c0_111, %c0_112] : memref<14x112xf32, #tpu.memory_space<vmem>>, vector<14x112xf32>
    tpu.vector_store %arg20[%c0_111, %c0_112], %98 {strides = array<i32>} : memref<14x112xf32, #tpu.memory_space<vmem>>, vector<14x112xf32>,
    %c0_113 = arith.constant 0 : index
    %c0_114 = arith.constant 0 : index
    %100 = vector.load %arg20[%c0_113, %c0_114] : memref<14x112xf32, #tpu.memory_space<vmem>>, vector<14x112xf32>
    %c2_115 = arith.constant 2 : index
    %c0_116 = arith.constant 0 : index
    %101 = vector.load %arg19[%c2_115, %c0_116] : memref<18x288xf32, #tpu.memory_space<vmem>>, vector<14x288xf32>
    %c2_117 = arith.constant 2 : index
    %c0_118 = arith.constant 0 : index
    %c0_119 = arith.constant 0 : index
    %102 = vector.load %arg2[%c2_117, %c0_118, %c0_119] : memref<5x288x112xf32, #tpu.memory_space<vmem>>, vector<1x288x112xf32>
    %103 = vector.shape_cast %102 : vector<1x288x112xf32> to vector<288x112xf32>
    %cst_120 = arith.constant dense<0.000000e+00> : vector<14x112xf32>
    %104 = tpu.matmul %101, %103, %cst_120 {dimension_numbers = #tpu.dot_dimension_numbers<[1], [0], [0], [1], [0, 0, 1, 1], [], []>} : vector<14x288xf32>, vector<288x112xf32>, vector<14x112xf32> -> vector<14x112xf32>
    %105 = arith.addf %100, %104 : vector<14x112xf32>
    %c0_121 = arith.constant 0 : index
    %c0_122 = arith.constant 0 : index
    %106 = vector.load %arg20[%c0_121, %c0_122] : memref<14x112xf32, #tpu.memory_space<vmem>>, vector<14x112xf32>
    tpu.vector_store %arg20[%c0_121, %c0_122], %105 {strides = array<i32>} : memref<14x112xf32, #tpu.memory_space<vmem>>, vector<14x112xf32>,
    %c0_123 = arith.constant 0 : index
    %c0_124 = arith.constant 0 : index
    %107 = vector.load %arg20[%c0_123, %c0_124] : memref<14x112xf32, #tpu.memory_space<vmem>>, vector<14x112xf32>
    %c3_125 = arith.constant 3 : index
    %c0_126 = arith.constant 0 : index
    %108 = vector.load %arg19[%c3_125, %c0_126] : memref<18x288xf32, #tpu.memory_space<vmem>>, vector<14x288xf32>
    %c3_127 = arith.constant 3 : index
    %c0_128 = arith.constant 0 : index
    %c0_129 = arith.constant 0 : index
    %109 = vector.load %arg2[%c3_127, %c0_128, %c0_129] : memref<5x288x112xf32, #tpu.memory_space<vmem>>, vector<1x288x112xf32>
    %110 = vector.shape_cast %109 : vector<1x288x112xf32> to vector<288x112xf32>
    %cst_130 = arith.constant dense<0.000000e+00> : vector<14x112xf32>
    %111 = tpu.matmul %108, %110, %cst_130 {dimension_numbers = #tpu.dot_dimension_numbers<[1], [0], [0], [1], [0, 0, 1, 1], [], []>} : vector<14x288xf32>, vector<288x112xf32>, vector<14x112xf32> -> vector<14x112xf32>
    %112 = arith.addf %107, %111 : vector<14x112xf32>
    %c0_131 = arith.constant 0 : index
    %c0_132 = arith.constant 0 : index
    %113 = vector.load %arg20[%c0_131, %c0_132] : memref<14x112xf32, #tpu.memory_space<vmem>>, vector<14x112xf32>
    tpu.vector_store %arg20[%c0_131, %c0_132], %112 {strides = array<i32>} : memref<14x112xf32, #tpu.memory_space<vmem>>, vector<14x112xf32>,
    %c0_133 = arith.constant 0 : index
    %c0_134 = arith.constant 0 : index
    %114 = vector.load %arg20[%c0_133, %c0_134] : memref<14x112xf32, #tpu.memory_space<vmem>>, vector<14x112xf32>
    %c4_135 = arith.constant 4 : index
    %c0_136 = arith.constant 0 : index
    %115 = vector.load %arg19[%c4_135, %c0_136] : memref<18x288xf32, #tpu.memory_space<vmem>>, vector<14x288xf32>
    %c4_137 = arith.constant 4 : index
    %c0_138 = arith.constant 0 : index
    %c0_139 = arith.constant 0 : index
    %116 = vector.load %arg2[%c4_137, %c0_138, %c0_139] : memref<5x288x112xf32, #tpu.memory_space<vmem>>, vector<1x288x112xf32>
    %117 = vector.shape_cast %116 : vector<1x288x112xf32> to vector<288x112xf32>
    %cst_140 = arith.constant dense<0.000000e+00> : vector<14x112xf32>
    %118 = tpu.matmul %115, %117, %cst_140 {dimension_numbers = #tpu.dot_dimension_numbers<[1], [0], [0], [1], [0, 0, 1, 1], [], []>} : vector<14x288xf32>, vector<288x112xf32>, vector<14x112xf32> -> vector<14x112xf32>
    %119 = arith.addf %114, %118 : vector<14x112xf32>
    %c0_141 = arith.constant 0 : index
    %c0_142 = arith.constant 0 : index
    %120 = vector.load %arg20[%c0_141, %c0_142] : memref<14x112xf32, #tpu.memory_space<vmem>>, vector<14x112xf32>
    tpu.vector_store %arg20[%c0_141, %c0_142], %119 {strides = array<i32>} : memref<14x112xf32, #tpu.memory_space<vmem>>, vector<14x112xf32>,
    %c0_143 = arith.constant 0 : index
    %c0_144 = arith.constant 0 : index
    %121 = vector.load %arg20[%c0_143, %c0_144] : memref<14x112xf32, #tpu.memory_space<vmem>>, vector<14x112xf32>
    %cst_145 = arith.constant dense<0.000000e+00> : vector<112xf32>
    %122 = vector.multi_reduction <add>, %121, %cst_145 [0] : vector<14x112xf32> to vector<112xf32>
    %123 = vector.shape_cast %122 : vector<112xf32> to vector<1x112xf32>
    %c0_146 = arith.constant 0 : index
    %c0_147 = arith.constant 0 : index
    %124 = vector.load %arg13[%c0_146, %c0_147] : memref<112x4xf32, #tpu.memory_space<vmem>>, vector<112x4xf32>
    %cst_148 = arith.constant dense<0.000000e+00> : vector<1x4xf32>
    %125 = tpu.matmul %123, %124, %cst_148 {dimension_numbers = #tpu.dot_dimension_numbers<[1], [0], [0], [1], [0, 0, 1, 1], [], []>} : vector<1x112xf32>, vector<112x4xf32>, vector<1x4xf32> -> vector<1x4xf32>
    %cst_149 = arith.constant 0.00255102036 : f32
    %126 = vector.broadcast %cst_149 : f32 to vector<1x4xf32>
    %127 = arith.mulf %125, %126 : vector<1x4xf32>
    %c0_150 = arith.constant 0 : index
    %c0_151 = arith.constant 0 : index
    %128 = vector.load %arg14[%c0_150, %c0_151] : memref<4x112xf32, #tpu.memory_space<vmem>>, vector<4x112xf32>
    %cst_152 = arith.constant dense<0.000000e+00> : vector<1x112xf32>
    %129 = tpu.matmul %127, %128, %cst_152 {dimension_numbers = #tpu.dot_dimension_numbers<[1], [0], [0], [1], [0, 0, 1, 1], [], []>} : vector<1x4xf32>, vector<4x112xf32>, vector<1x112xf32> -> vector<1x112xf32>
    %130 = vector.broadcast %129 : vector<1x112xf32> to vector<14x112xf32>
    %131 = arith.subf %121, %130 : vector<14x112xf32>
    %132 = arith.mulf %131, %131 : vector<14x112xf32>
    %cst_153 = arith.constant dense<0.000000e+00> : vector<112xf32>
    %133 = vector.multi_reduction <add>, %132, %cst_153 [0] : vector<14x112xf32> to vector<112xf32>
    %134 = vector.shape_cast %133 : vector<112xf32> to vector<1x112xf32>
    %c0_154 = arith.constant 0 : index
    %c0_155 = arith.constant 0 : index
    %135 = vector.load %arg13[%c0_154, %c0_155] : memref<112x4xf32, #tpu.memory_space<vmem>>, vector<112x4xf32>
    %cst_156 = arith.constant dense<0.000000e+00> : vector<1x4xf32>
    %136 = tpu.matmul %134, %135, %cst_156 {dimension_numbers = #tpu.dot_dimension_numbers<[1], [0], [0], [1], [0, 0, 1, 1], [], []>} : vector<1x112xf32>, vector<112x4xf32>, vector<1x4xf32> -> vector<1x4xf32>
    %cst_157 = arith.constant 0.00255102036 : f32
    %137 = vector.broadcast %cst_157 : f32 to vector<1x4xf32>
    %138 = arith.mulf %136, %137 : vector<1x4xf32>
    %cst_158 = arith.constant 9.99999974E-5 : f32
    %139 = vector.broadcast %cst_158 : f32 to vector<1x4xf32>
    %140 = arith.addf %138, %139 : vector<1x4xf32>
    %141 = math.rsqrt %140 : vector<1x4xf32>
    %c0_159 = arith.constant 0 : index
    %c0_160 = arith.constant 0 : index
    %142 = vector.load %arg14[%c0_159, %c0_160] : memref<4x112xf32, #tpu.memory_space<vmem>>, vector<4x112xf32>
    %cst_161 = arith.constant dense<0.000000e+00> : vector<1x112xf32>
    %143 = tpu.matmul %141, %142, %cst_161 {dimension_numbers = #tpu.dot_dimension_numbers<[1], [0], [0], [1], [0, 0, 1, 1], [], []>} : vector<1x4xf32>, vector<4x112xf32>, vector<1x112xf32> -> vector<1x112xf32>
    %144 = vector.broadcast %143 : vector<1x112xf32> to vector<14x112xf32>
    %145 = arith.mulf %131, %144 : vector<14x112xf32>
    %cst_162 = arith.constant 0.000000e+00 : f32
    %146 = vector.broadcast %cst_162 : f32 to vector<14x112xf32>
    %147 = arith.cmpf oge, %145, %146 : vector<14x112xf32>
    %cst_163 = arith.constant 0.00999999977 : f32
    %148 = vector.broadcast %cst_163 : f32 to vector<14x112xf32>
    %149 = arith.mulf %148, %145 : vector<14x112xf32>
    %150 = arith.select %147, %145, %149 : vector<14x112xi1>, vector<14x112xf32>
    %c0_164 = arith.constant 0 : index
    %c0_165 = arith.constant 0 : index
    %151 = vector.load %arg7[%c0_164, %c0_165] : memref<112x56xf32, #tpu.memory_space<vmem>>, vector<112x56xf32>
    %cst_166 = arith.constant dense<0.000000e+00> : vector<14x56xf32>
    %152 = tpu.matmul %150, %151, %cst_166 {dimension_numbers = #tpu.dot_dimension_numbers<[1], [0], [0], [1], [0, 0, 1, 1], [], []>} : vector<14x112xf32>, vector<112x56xf32>, vector<14x56xf32> -> vector<14x56xf32>
    %c0_167 = arith.constant 0 : index
    %c0_168 = arith.constant 0 : index
    %153 = vector.load %arg8[%c0_167, %c0_168] : memref<112x56xf32, #tpu.memory_space<vmem>>, vector<112x56xf32>
    %cst_169 = arith.constant dense<0.000000e+00> : vector<14x56xf32>
    %154 = tpu.matmul %150, %153, %cst_169 {dimension_numbers = #tpu.dot_dimension_numbers<[1], [0], [0], [1], [0, 0, 1, 1], [], []>} : vector<14x112xf32>, vector<112x56xf32>, vector<14x56xf32> -> vector<14x56xf32>
    %155 = arith.maximumf %152, %154 : vector<14x56xf32>
    %c0_170 = arith.constant 0 : index
    %c0_171 = arith.constant 0 : index
    %156 = vector.load %arg9[%c0_170, %c0_171] : memref<7x14xf32, #tpu.memory_space<vmem>>, vector<7x14xf32>
    %cst_172 = arith.constant dense<0.000000e+00> : vector<7x56xf32>
    %157 = tpu.matmul %156, %155, %cst_172 {dimension_numbers = #tpu.dot_dimension_numbers<[1], [0], [0], [1], [0, 0, 1, 1], [], []>} : vector<7x14xf32>, vector<14x56xf32>, vector<7x56xf32> -> vector<7x56xf32>
    %c0_173 = arith.constant 0 : index
    %c0_174 = arith.constant 0 : index
    %158 = vector.load %arg10[%c0_173, %c0_174] : memref<7x14xf32, #tpu.memory_space<vmem>>, vector<7x14xf32>
    %cst_175 = arith.constant dense<0.000000e+00> : vector<7x56xf32>
    %159 = tpu.matmul %158, %155, %cst_175 {dimension_numbers = #tpu.dot_dimension_numbers<[1], [0], [0], [1], [0, 0, 1, 1], [], []>} : vector<7x14xf32>, vector<14x56xf32>, vector<7x56xf32> -> vector<7x56xf32>
    %160 = arith.maximumf %157, %159 : vector<7x56xf32>
    %cst_176 = arith.constant 0.000000e+00 : f32
    %161 = vector.broadcast %cst_176 : f32 to vector<1x64xf32>
    %162 = vector.extract_strided_slice %160 {offsets = [0, 0], sizes = [1, 56], strides = [1, 1]} : vector<7x56xf32> to vector<1x56xf32>
    %c0_177 = arith.constant 0 : index
    %c0_178 = arith.constant 0 : index
    %c0_179 = arith.constant 0 : index
    %163 = vector.load %arg16[%c0_177, %c0_178, %c0_179] : memref<7x56x64xf32, #tpu.memory_space<vmem>>, vector<1x56x64xf32>
    %164 = vector.shape_cast %163 : vector<1x56x64xf32> to vector<56x64xf32>
    %cst_180 = arith.constant dense<0.000000e+00> : vector<1x64xf32>
    %165 = tpu.matmul %162, %164, %cst_180 {dimension_numbers = #tpu.dot_dimension_numbers<[1], [0], [0], [1], [0, 0, 1, 1], [], []>} : vector<1x56xf32>, vector<56x64xf32>, vector<1x64xf32> -> vector<1x64xf32>
    %166 = arith.addf %161, %165 : vector<1x64xf32>
    %167 = vector.extract_strided_slice %160 {offsets = [1, 0], sizes = [1, 56], strides = [1, 1]} : vector<7x56xf32> to vector<1x56xf32>
    %c1_181 = arith.constant 1 : index
    %c0_182 = arith.constant 0 : index
    %c0_183 = arith.constant 0 : index
    %168 = vector.load %arg16[%c1_181, %c0_182, %c0_183] : memref<7x56x64xf32, #tpu.memory_space<vmem>>, vector<1x56x64xf32>
    %169 = vector.shape_cast %168 : vector<1x56x64xf32> to vector<56x64xf32>
    %cst_184 = arith.constant dense<0.000000e+00> : vector<1x64xf32>
    %170 = tpu.matmul %167, %169, %cst_184 {dimension_numbers = #tpu.dot_dimension_numbers<[1], [0], [0], [1], [0, 0, 1, 1], [], []>} : vector<1x56xf32>, vector<56x64xf32>, vector<1x64xf32> -> vector<1x64xf32>
    %171 = arith.addf %166, %170 : vector<1x64xf32>
    %172 = vector.extract_strided_slice %160 {offsets = [2, 0], sizes = [1, 56], strides = [1, 1]} : vector<7x56xf32> to vector<1x56xf32>
    %c2_185 = arith.constant 2 : index
    %c0_186 = arith.constant 0 : index
    %c0_187 = arith.constant 0 : index
    %173 = vector.load %arg16[%c2_185, %c0_186, %c0_187] : memref<7x56x64xf32, #tpu.memory_space<vmem>>, vector<1x56x64xf32>
    %174 = vector.shape_cast %173 : vector<1x56x64xf32> to vector<56x64xf32>
    %cst_188 = arith.constant dense<0.000000e+00> : vector<1x64xf32>
    %175 = tpu.matmul %172, %174, %cst_188 {dimension_numbers = #tpu.dot_dimension_numbers<[1], [0], [0], [1], [0, 0, 1, 1], [], []>} : vector<1x56xf32>, vector<56x64xf32>, vector<1x64xf32> -> vector<1x64xf32>
    %176 = arith.addf %171, %175 : vector<1x64xf32>
    %177 = vector.extract_strided_slice %160 {offsets = [3, 0], sizes = [1, 56], strides = [1, 1]} : vector<7x56xf32> to vector<1x56xf32>
    %c3_189 = arith.constant 3 : index
    %c0_190 = arith.constant 0 : index
    %c0_191 = arith.constant 0 : index
    %178 = vector.load %arg16[%c3_189, %c0_190, %c0_191] : memref<7x56x64xf32, #tpu.memory_space<vmem>>, vector<1x56x64xf32>
    %179 = vector.shape_cast %178 : vector<1x56x64xf32> to vector<56x64xf32>
    %cst_192 = arith.constant dense<0.000000e+00> : vector<1x64xf32>
    %180 = tpu.matmul %177, %179, %cst_192 {dimension_numbers = #tpu.dot_dimension_numbers<[1], [0], [0], [1], [0, 0, 1, 1], [], []>} : vector<1x56xf32>, vector<56x64xf32>, vector<1x64xf32> -> vector<1x64xf32>
    %181 = arith.addf %176, %180 : vector<1x64xf32>
    %182 = vector.extract_strided_slice %160 {offsets = [4, 0], sizes = [1, 56], strides = [1, 1]} : vector<7x56xf32> to vector<1x56xf32>
    %c4_193 = arith.constant 4 : index
    %c0_194 = arith.constant 0 : index
    %c0_195 = arith.constant 0 : index
    %183 = vector.load %arg16[%c4_193, %c0_194, %c0_195] : memref<7x56x64xf32, #tpu.memory_space<vmem>>, vector<1x56x64xf32>
    %184 = vector.shape_cast %183 : vector<1x56x64xf32> to vector<56x64xf32>
    %cst_196 = arith.constant dense<0.000000e+00> : vector<1x64xf32>
    %185 = tpu.matmul %182, %184, %cst_196 {dimension_numbers = #tpu.dot_dimension_numbers<[1], [0], [0], [1], [0, 0, 1, 1], [], []>} : vector<1x56xf32>, vector<56x64xf32>, vector<1x64xf32> -> vector<1x64xf32>
    %186 = arith.addf %181, %185 : vector<1x64xf32>
    %187 = vector.extract_strided_slice %160 {offsets = [5, 0], sizes = [1, 56], strides = [1, 1]} : vector<7x56xf32> to vector<1x56xf32>
    %c5 = arith.constant 5 : index
    %c0_197 = arith.constant 0 : index
    %c0_198 = arith.constant 0 : index
    %188 = vector.load %arg16[%c5, %c0_197, %c0_198] : memref<7x56x64xf32, #tpu.memory_space<vmem>>, vector<1x56x64xf32>
    %189 = vector.shape_cast %188 : vector<1x56x64xf32> to vector<56x64xf32>
    %cst_199 = arith.constant dense<0.000000e+00> : vector<1x64xf32>
    %190 = tpu.matmul %187, %189, %cst_199 {dimension_numbers = #tpu.dot_dimension_numbers<[1], [0], [0], [1], [0, 0, 1, 1], [], []>} : vector<1x56xf32>, vector<56x64xf32>, vector<1x64xf32> -> vector<1x64xf32>
    %191 = arith.addf %186, %190 : vector<1x64xf32>
    %192 = vector.extract_strided_slice %160 {offsets = [6, 0], sizes = [1, 56], strides = [1, 1]} : vector<7x56xf32> to vector<1x56xf32>
    %c6 = arith.constant 6 : index
    %c0_200 = arith.constant 0 : index
    %c0_201 = arith.constant 0 : index
    %193 = vector.load %arg16[%c6, %c0_200, %c0_201] : memref<7x56x64xf32, #tpu.memory_space<vmem>>, vector<1x56x64xf32>
    %194 = vector.shape_cast %193 : vector<1x56x64xf32> to vector<56x64xf32>
    %cst_202 = arith.constant dense<0.000000e+00> : vector<1x64xf32>
    %195 = tpu.matmul %192, %194, %cst_202 {dimension_numbers = #tpu.dot_dimension_numbers<[1], [0], [0], [1], [0, 0, 1, 1], [], []>} : vector<1x56xf32>, vector<56x64xf32>, vector<1x64xf32> -> vector<1x64xf32>
    %196 = arith.addf %191, %195 : vector<1x64xf32>
    %c0_203 = arith.constant 0 : index
    %c0_204 = arith.constant 0 : index
    %197 = vector.load %arg17[%c0_203, %c0_204] : memref<1x64xf32, #tpu.memory_space<vmem>>, vector<1x64xf32>
    tpu.vector_store %arg17[%c0_203, %c0_204], %196 {strides = array<i32>} : memref<1x64xf32, #tpu.memory_space<vmem>>, vector<1x64xf32>,
    return
  }
}

</mosaic_0001>

<bundles_post_ra>
// kernel: tile.11
= control target key start
LH: loop header
LB: loop body
LE: loop exit
PB: predicated region body
PF: predicated region fallthrough
CT: control target
= control target key end

     0   :  { %s268_s5 = smov 3  ;;  %s273_s8 = smov 12  ;;  %vm72_vm0 = vcmask 1043458   ;;  %vm77_vm1 = vcmask 1045508   ;;  %vm82_vm2 = vcmask 1047558   ;;  %vm138_vm3 = vcmask 261120   ;;  %s360_s0 = inlined_call_operand.vmem [shape: f32[2,224,8], index: 0, kind: input, shape index: {}]   ;;  %s361_s1 = inlined_call_operand.vmem [shape: f32[448,8], index: 1, kind: output, shape index: {}]  }
   0x1   :  { %v194_v0 = vld [vmem:[%s360_s0 + $0x1e] sm:$0x3]  ;;  %v195_v1 = vld [vmem:[%s360_s0 + $0x1c] sm:$0x3]  ;;  %v196_v2 = vld [vmem:[%s360_s0 + $0x1a] sm:$0x3] }
   0x2   :  { %7 = vst [vmem:[#allocation0 + $0x78] sm:$0x3] %v194_v0  ;;  %v197_v3 = vld [vmem:[%s360_s0 + $0x18] sm:$0x3]  ;;  %v198_v4 = vld [vmem:[%s360_s0 + $0x16] sm:$0x3] }
   0x3   :  { %11 = vst [vmem:[#allocation0 + $0x70] sm:$0x3] %v195_v1  ;;  %v199_v5 = vld [vmem:[%s360_s0 + $0x14] sm:$0x3]  ;;  %v200_v6 = vld [vmem:[%s360_s0 + $0x12] sm:$0x3] }
   0x4   :  { %15 = vst [vmem:[#allocation0 + $0x68] sm:$0x3] %v196_v2  ;;  %v201_v7 = vld [vmem:[%s360_s0 + $0x10] sm:$0x3]  ;;  %v202_v8 = vld [vmem:[%s360_s0 + $0xe] sm:$0x3] }
   0x5   :  { %19 = vst [vmem:[#allocation0 + $0x60] sm:$0x3] %v197_v3  ;;  %v203_v9 = vld [vmem:[%s360_s0 + $0xc] sm:$0x3]  ;;  %v204_v10 = vld [vmem:[%s360_s0 + $0xa] sm:$0x3] }
   0x6   :  { %23 = vst [vmem:[#allocation0 + $0x58] sm:$0x3] %v198_v4  ;;  %v205_v11 = vld [vmem:[%s360_s0 + $0x8] sm:$0x3]  ;;  %v206_v12 = vld [vmem:[%s360_s0 + $0x6] sm:$0x3] }
   0x7   :  { %27 = vst [vmem:[#allocation0 + $0x50] sm:$0x3] %v199_v5  ;;  %v207_v13 = vld [vmem:[%s360_s0 + $0x4] sm:$0x3]  ;;  %v208_v14 = vld [vmem:[%s360_s0 + $0x2] sm:$0x3] }
   0x8   :  { %31 = vst [vmem:[#allocation0 + $0x48] sm:$0x3] %v200_v6  ;;  %s275_s9 = smov 48  ;;  %v64_v15 = vld [vmem:[%s360_s0] sm:$0x3]  ;;  %s280_s0 = smov 192 }
   0x9   :  { %35 = vst [vmem:[#allocation0 + $0x40] sm:$0x3] %v201_v7  ;;  %s282_s12 = smov 3  ;;  %s284_s13 = smov 12  ;;  %vm84_vm4 = vcmask 785408   ;;  %vm145_vm5 = vcmask 1048320  }
   0xa   :  { %39 = vst [vmem:[#allocation0 + $0x38] sm:$0x3] %v202_v8  ;;  %s286_s14 = smov 48  ;;  %s288_s15 = smov 192  ;;  %vm142_vm6 = vcmask 523264  }
   0xb   :  { %43 = vst [vmem:[#allocation0 + $0x30] sm:$0x3] %v203_v9  ;;  %s167_s16 = smov 3  ;;  %s170_s17 = smov 12 }
   0xc   :  { %47 = vst [vmem:[#allocation0 + $0x28] sm:$0x3] %v204_v10  ;;  %s175_s18 = smov 48  ;;  %s180_s19 = smov 192 }
   0xd   :  { %51 = vst [vmem:[#allocation0 + $0x20] sm:$0x3] %v205_v11  ;;  %s290_s20 = smov 3  ;;  %s292_s21 = smov 12 }
   0xe   :  { %55 = vst [vmem:[#allocation0 + $0x18] sm:$0x3] %v206_v12  ;;  %s294_s22 = smov 48  ;;  %s296_s23 = smov 192 }
   0xf   :  { %59 = vst [vmem:[#allocation0 + $0x10] sm:$0x3] %v207_v13  ;;  %s298_s24 = smov 3  ;;  %s300_s25 = smov 12 }
  0x10   :  { %63 = vst [vmem:[#allocation0 + $0x8] sm:$0x3] %v208_v14  ;;  %s302_s26 = smov 48  ;;  %s304_s27 = smov 192 }
  0x11   :  { %65 = vst [vmem:[#allocation0] sm:$0x3] %v64_v15  ;;  %s215_s30 = smov 96   ;;  %s67_s2 = smov 3 }
  0x12   :  { %s70_s3 = smov 12  ;;  %s75_s4 = smov 48 }
  0x17   :  { %v168_v16 = vld [vmem:[#allocation0 + $0x9] ss:$16 sm:%s167_s16]   ;;  %v68_v53 = vld [vmem:[#allocation0 + $0x8] ss:$16 sm:%s67_s2]  }
  0x18   :  { %v171_v17 = vld [vmem:[#allocation0 + $0x9] ss:$16 sm:%s170_s17]   ;;  %v88_v19 = vld [vmem:[#allocation0] ss:$16 sm:%s268_s5]   ;;  %v150_v25 = vld [vmem:[#allocation0 + $0x1] ss:$16 sm:%s282_s12]  }
  0x19   :  { %v176_v18 = vld [vmem:[#allocation0 + $0x9] ss:$16 sm:%s175_s18]   ;;  %v90_v20 = vld [vmem:[#allocation0] ss:$16 sm:%s273_s8]   ;;  %v173_v22 = vsel %vm72_vm0, %v171_v17, %v168_v16  ;;  %v153_v26 = vld [vmem:[#allocation0 + $0x1] ss:$16 sm:%s284_s13]  }
  0x1a   :  { %v94_v21 = vld [vmem:[#allocation0] ss:$16 sm:%s275_s9]   ;;  %v92_v23 = vsel %vm72_vm0, %v90_v20, %v88_v19  ;;  %v178_v27 = vsel %vm77_vm1, %v176_v18, %v173_v22  ;;  %v155_v29 = vsel %vm72_vm0, %v153_v26, %v150_v25  ;;  %v158_v30 = vld [vmem:[#allocation0 + $0x1] ss:$16 sm:%s286_s14]   ;;  %v181_v32 = vld [vmem:[#allocation0 + $0x9] ss:$16 sm:%s180_s19]  }
  0x1b   :  { %v98_v24 = vld [vmem:[#allocation0] ss:$16 sm:%s280_s0]   ;;  %v96_v28 = vsel %vm77_vm1, %v94_v21, %v92_v23  ;;  %v163_v31 = vld [vmem:[#allocation0 + $0x1] ss:$16 sm:%s288_s15]   ;;  %v160_v34 = vsel %vm77_vm1, %v158_v30, %v155_v29  ;;  %v183_v35 = vsel %vm82_vm2, %v181_v32, %v178_v27  ;;  %v104_v36 = vld [vmem:[#allocation0 + $0x9] ss:$16 sm:%s290_s20]  }
  0x1c   :  { %v100_v33 = vsel %vm82_vm2, %v98_v24, %v96_v28  ;;  %v107_v37 = vld [vmem:[#allocation0 + $0x9] ss:$16 sm:%s292_s21]   ;;  %v165_v39 = vsel %vm82_vm2, %v163_v31, %v160_v34  ;;  %v122_v41 = vld [vmem:[#allocation0 + $0x1] ss:$16 sm:%s298_s24]   ;;  %s80_s5 = smov 192 }
  0x1d   :  { %v112_v38 = vld [vmem:[#allocation0 + $0x9] ss:$16 sm:%s294_s22]   ;;  %101 = vst [vmem:[%s361_s1] sm:$0xff] %v100_v33   ;;  %v109_v40 = vsel %vm72_vm0, %v107_v37, %v104_v36  ;;  %v125_v42 = vld [vmem:[#allocation0 + $0x1] ss:$16 sm:%s300_s25]   ;;  %v185_v43 = vsel %vm138_vm3, %v183_v35, %v165_v39  ;;  %v71_v54 = vld [vmem:[#allocation0 + $0x8] ss:$16 sm:%s70_s3]  }
  0x1e   :  { %v114_v44 = vsel %vm77_vm1, %v112_v38, %v109_v40  ;;  %v117_v45 = vld [vmem:[#allocation0 + $0x9] ss:$16 sm:%s296_s23]   ;;  %v127_v46 = vsel %vm72_vm0, %v125_v42, %v122_v41  ;;  %v130_v47 = vld [vmem:[#allocation0 + $0x1] ss:$16 sm:%s302_s26]   ;;  %186 = vrot.lane.b32.xlu0 %v185_v43, %s215_s30  ;;  %v76_v55 = vld [vmem:[#allocation0 + $0x8] ss:$16 sm:%s75_s4]   ;;  %v73_v56 = vsel %vm72_vm0, %v71_v54, %v68_v53 }
  0x1f   :  { %v135_v48 = vld [vmem:[#allocation0 + $0x1] ss:$16 sm:%s304_s27]   ;;  %v132_v49 = vsel %vm77_vm1, %v130_v47, %v127_v46  ;;  %v119_v50 = vsel %vm82_vm2, %v117_v45, %v114_v44  ;;  %v81_v57 = vld [vmem:[#allocation0 + $0x8] ss:$16 sm:%s80_s5]   ;;  %v78_v58 = vsel %vm77_vm1, %v76_v55, %v73_v56 }
  0x20   :  { %v137_v51 = vsel %vm82_vm2, %v135_v48, %v132_v49  ;;  %v83_v59 = vsel %vm82_vm2, %v81_v57, %v78_v58 }
  0x21   :  { %v139_v52 = vsel %vm138_vm3, %v137_v51, %v119_v50  ;;  %209 = vst.msk [vmem:[%s361_s1 + $0x8] sm:$0xff] %vm84_vm4, %v83_v59  }
  0x26   :  { %140 = vrot.lane.b32.xlu0 %v139_v52, %s215_s30 }
  0x90   :  { %v187_v60 = vpop.permute.xlu0 %186  }
  0x91   :  { %212 = vst.msk [vmem:[%s361_s1 + $0x10] sm:$0xff] %vm84_vm4, %v187_v60  }
  0x92   :  { %213 = vst.msk [vmem:[%s361_s1 + $0x10] sm:$0xff] %vm145_vm5, %v187_v60  }
  0x98   :  { %v141_v61 = vpop.permute.xlu0 %140  }
  0x99   :  { %210 = vst.msk [vmem:[%s361_s1 + $0x18] sm:$0xff] %vm142_vm6, %v141_v61  }
  0x9a   :  { %211 = vst.msk [vmem:[%s361_s1 + $0x8] sm:$0xff] %vm145_vm5, %v141_v61  }

// kernel: tile.15
= control target key start
LH: loop header
LB: loop body
LE: loop exit
PB: predicated region body
PF: predicated region fallthrough
CT: control target
= control target key end

     0   :  { %vm19_vm0 = vcmask 457728   ;;  %vm25_vm1 = vcmask 916928   ;;  %s63_s0 = inlined_call_operand.vmem [shape: f32[2,56,4], index: 0, kind: input, shape index: {}]   ;;  %s64_s1 = inlined_call_operand.vmem [shape: f32[112,4], index: 1, kind: output, shape index: {}]  }
   0x1   :  { %v33_v0 = vld [vmem:[%s63_s0 + $0x6] sm:$0x3]  ;;  %v34_v1 = vld [vmem:[%s63_s0 + $0x4] sm:$0x3]  ;;  %v35_v2 = vld [vmem:[%s63_s0 + $0x2] sm:$0x3] }
   0x2   :  { %7 = vst [vmem:[#allocation1 + $0x18] sm:$0x3] %v33_v0  ;;  %v16_v3 = vld [vmem:[%s63_s0] sm:$0x3]  ;;  %s37_s0 = smov 56  }
   0x3   :  { %11 = vst [vmem:[#allocation1 + $0x10] sm:$0x3] %v34_v1 }
   0x4   :  { %15 = vst [vmem:[#allocation1 + $0x8] sm:$0x3] %v35_v2 }
   0x5   :  { %17 = vst [vmem:[#allocation1] sm:$0x3] %v16_v3 }
   0xc   :  { %v22_v4 = vld [vmem:[#allocation1 + $0x1] ss:$8 sm:$0xf]   ;;  %v18_v5 = vld [vmem:[#allocation1] ss:$8 sm:$0xf]  }
   0xd   :  { %23 = vrot.lane.b32.xlu0 %v22_v4, %s37_s0  ;;  %20 = vst.msk [vmem:[#allocation0] sm:$0xf] %vm19_vm0, %v18_v5  }
  0x7f   :  { %v24_v6 = vpop.permute.xlu0 %23  }
  0x80   :  { %26 = vst.msk [vmem:[#allocation0] sm:$0xf] %vm25_vm1, %v24_v6  }
  0x87   :  { %v29_v7 = vld [vmem:[#allocation0] sm:$0xf] }
  0x88   :  { %32 = vst [vmem:[%s64_s1] sm:$0xf] %v29_v7 }

// kernel: mnist_lenet_forward.1
= control target key start
LH: loop header
LB: loop body
LE: loop exit
PB: predicated region body
PF: predicated region fallthrough
CT: control target
= control target key end

     0   :  { %vm59_vm0 = vcmask 523264   ;;  %vm72_vm1 = vcmask 519168   ;;  %vm1156_vm2 = vcmask 1043456   ;;  %vm1342_vm3 = vcmask 64512   ;;  %s8097_s1 = inlined_call_operand.vmem [shape: f32[5,64,448], index: 1, kind: input, shape index: {}]   ;;  %s8098_s0 = inlined_call_operand.vmem [shape: f32[32,64], index: 0, kind: input, shape index: {}]   ;;  %s8099_s11 = inlined_call_operand.vmem [shape: f32[448,8], index: 11, kind: input, shape index: {}]   ;;  %s8100_s12 = inlined_call_operand.vmem [shape: f32[8,448], index: 12, kind: input, shape index: {}]   ;;  %s8101_s3 = inlined_call_operand.vmem [shape: f32[448,224], index: 3, kind: input, shape index: {}]   ;;  %s8102_s4 = inlined_call_operand.vmem [shape: f32[448,224], index: 4, kind: input, shape index: {}]   ;;  %s8103_s6 = inlined_call_operand.vmem [shape: f32[14,28], index: 6, kind: input, shape index: {}]   ;;  %s8104_s5 = inlined_call_operand.vmem [shape: f32[14,28], index: 5, kind: input, shape index: {}]   ;;  %s8105_s15 = inlined_call_operand.vmem [shape: f32[224,288], index: 15, kind: input, shape index: {}]   ;;  %s8106_s2 = inlined_call_operand.vmem [shape: f32[5,288,112], index: 2, kind: input, shape index: {}]   ;;  %s8107_s13 = inlined_call_operand.vmem [shape: f32[112,4], index: 13, kind: input, shape index: {}]   ;;  %s8108_s14 = inlined_call_operand.vmem [shape: f32[4,112], index: 14, kind: input, shape index: {}]   ;;  %s8109_s7 = inlined_call_operand.vmem [shape: f32[112,56], index: 7, kind: input, shape index: {}]   ;;  %s8110_s8 = inlined_call_operand.vmem [shape: f32[112,56], index: 8, kind: input, shape index: {}]   ;;  %s8111_s16 = inlined_call_operand.vmem [shape: f32[7,56,64], index: 16, kind: input, shape index: {}]   ;;  %s8112_s9 = inlined_call_operand.vmem [shape: f32[7,14], index: 9, kind: input, shape index: {}]   ;;  %s8113_s10 = inlined_call_operand.vmem [shape: f32[7,14], index: 10, kind: input, shape index: {}]   ;;  %s8114_s17 = inlined_call_operand.vmem [shape: f32[1,64], index: 17, kind: output, shape index: {}]  }
   0x1   :  { %8135 = sst [smem:[#allocation21_spill]] %s8097_s1 }
   0x2   :  { %8136 = sst [smem:[#allocation22_spill]] %s8098_s0 }
   0x3   :  { %s8137_s26 = sld [smem:[#allocation21_spill]] }
   0x4   :  { %s8138_s20 = sld [smem:[#allocation22_spill]] }
   0x9   :  { %v122_v0 = vld [vmem:[%s8137_s26 + $0xe0] sm:$0xff]  ;;  %v123_v1 = vld [vmem:[%s8137_s26 + $0xe8] sm:$0xff]  ;;  %v124_v2 = vld [vmem:[%s8137_s26 + $0xf0] sm:$0xff] }
   0xa   :  { %146 = vmatpush.msra.mxu0 %v122_v0  ;;  %175 = vmatpush.msra.mxu1 %v123_v1  ;;  %v125_v3 = vld [vmem:[%s8137_s26 + $0xf8] sm:$0xff]  ;;  %v118_v4 = vld [vmem:[%s8137_s26 + $0xc0] sm:$0xff]  ;;  %v119_v5 = vld [vmem:[%s8137_s26 + $0xc8] sm:$0xff] }
   0xb   :  { %204 = vmatpush.msra.mxu2 %v124_v2  ;;  %233 = vmatpush.msra.mxu3 %v125_v3  ;;  %v120_v6 = vld [vmem:[%s8137_s26 + $0xd0] sm:$0xff]  ;;  %v121_v7 = vld [vmem:[%s8137_s26 + $0xd8] sm:$0xff]  ;;  %v114_v8 = vld [vmem:[%s8137_s26 + $0xa0] sm:$0xff] }
   0xc   :  { %147 = vmatpush.msra.mxu0 %v118_v4  ;;  %176 = vmatpush.msra.mxu1 %v119_v5  ;;  %v115_v9 = vld [vmem:[%s8137_s26 + $0xa8] sm:$0xff]  ;;  %v116_v10 = vld [vmem:[%s8137_s26 + $0xb0] sm:$0xff]  ;;  %v117_v11 = vld [vmem:[%s8137_s26 + $0xb8] sm:$0xff] }
   0xd   :  { %205 = vmatpush.msra.mxu2 %v120_v6  ;;  %234 = vmatpush.msra.mxu3 %v121_v7  ;;  %v110_v12 = vld [vmem:[%s8137_s26 + $0x80] sm:$0xff]  ;;  %v111_v13 = vld [vmem:[%s8137_s26 + $0x88] sm:$0xff]  ;;  %v112_v14 = vld [vmem:[%s8137_s26 + $0x90] sm:$0xff] }
   0xe   :  { %148 = vmatpush.msra.mxu0 %v114_v8  ;;  %177 = vmatpush.msra.mxu1 %v115_v9  ;;  %v113_v15 = vld [vmem:[%s8137_s26 + $0x98] sm:$0xff]  ;;  %v106_v16 = vld [vmem:[%s8137_s26 + $0x60] sm:$0xff]  ;;  %v107_v17 = vld [vmem:[%s8137_s26 + $0x68] sm:$0xff] }
   0xf   :  { %206 = vmatpush.msra.mxu2 %v116_v10  ;;  %235 = vmatpush.msra.mxu3 %v117_v11  ;;  %v108_v18 = vld [vmem:[%s8137_s26 + $0x70] sm:$0xff]  ;;  %v109_v19 = vld [vmem:[%s8137_s26 + $0x78] sm:$0xff]  ;;  %v102_v20 = vld [vmem:[%s8137_s26 + $0x40] sm:$0xff] }
  0x10   :  { %149 = vmatpush.msra.mxu0 %v110_v12  ;;  %178 = vmatpush.msra.mxu1 %v111_v13  ;;  %v103_v21 = vld [vmem:[%s8137_s26 + $0x48] sm:$0xff]  ;;  %v104_v22 = vld [vmem:[%s8137_s26 + $0x50] sm:$0xff]  ;;  %v105_v23 = vld [vmem:[%s8137_s26 + $0x58] sm:$0xff] }
  0x11   :  { %207 = vmatpush.msra.mxu2 %v112_v14  ;;  %236 = vmatpush.msra.mxu3 %v113_v15  ;;  %v98_v24 = vld [vmem:[%s8137_s26 + $0x20] sm:$0xff]  ;;  %v99_v25 = vld [vmem:[%s8137_s26 + $0x28] sm:$0xff]  ;;  %v100_v26 = vld [vmem:[%s8137_s26 + $0x30] sm:$0xff] }
  0x12   :  { %150 = vmatpush.msra.mxu0 %v106_v16  ;;  %179 = vmatpush.msra.mxu1 %v107_v17  ;;  %v101_v27 = vld [vmem:[%s8137_s26 + $0x38] sm:$0xff]  ;;  %v94_v28 = vld [vmem:[%s8137_s26] sm:$0xff]  ;;  %v95_v29 = vld [vmem:[%s8137_s26 + $0x8] sm:$0xff] }
  0x13   :  { %208 = vmatpush.msra.mxu2 %v108_v18  ;;  %237 = vmatpush.msra.mxu3 %v109_v19  ;;  %v96_v30 = vld [vmem:[%s8137_s26 + $0x10] sm:$0xff]  ;;  %v97_v31 = vld [vmem:[%s8137_s26 + $0x18] sm:$0xff]  ;;  %v90_v32 = vld [vmem:[%s8138_s20] sm:$0xff] }
  0x14   :  { %151 = vmatpush.msra.mxu0 %v102_v20  ;;  %180 = vmatpush.msra.mxu1 %v103_v21  ;;  %v4127_v33 = vld [vmem:[%s8137_s26 + $0x1e0] sm:$0xff]  ;;  %v4128_v34 = vld [vmem:[%s8137_s26 + $0x1e8] sm:$0xff]  ;;  %v4129_v35 = vld [vmem:[%s8137_s26 + $0x1f0] sm:$0xff] }
  0x15   :  { %209 = vmatpush.msra.mxu2 %v104_v22  ;;  %238 = vmatpush.msra.mxu3 %v105_v23  ;;  %v4130_v36 = vld [vmem:[%s8137_s26 + $0x1f8] sm:$0xff]  ;;  %v4123_v37 = vld [vmem:[%s8137_s26 + $0x1c0] sm:$0xff]  ;;  %v4124_v38 = vld [vmem:[%s8137_s26 + $0x1c8] sm:$0xff] }
  0x16   :  { %152 = vmatpush.msra.mxu0 %v98_v24  ;;  %181 = vmatpush.msra.mxu1 %v99_v25  ;;  %v4125_v39 = vld [vmem:[%s8137_s26 + $0x1d0] sm:$0xff]  ;;  %v4126_v40 = vld [vmem:[%s8137_s26 + $0x1d8] sm:$0xff]  ;;  %v4119_v41 = vld [vmem:[%s8137_s26 + $0x1a0] sm:$0xff] }
  0x17   :  { %210 = vmatpush.msra.mxu2 %v100_v26  ;;  %239 = vmatpush.msra.mxu3 %v101_v27  ;;  %v4120_v42 = vld [vmem:[%s8137_s26 + $0x1a8] sm:$0xff]  ;;  %v4121_v43 = vld [vmem:[%s8137_s26 + $0x1b0] sm:$0xff]  ;;  %v4122_v44 = vld [vmem:[%s8137_s26 + $0x1b8] sm:$0xff] }
  0x18   :  { %153 = vmatpush.msra.mxu0 %v94_v28  ;;  %182 = vmatpush.msra.mxu1 %v95_v29  ;;  %v91_v45 = vld [vmem:[%s8138_s20 + $0x8] sm:$0xff]  ;;  %v4115_v46 = vld [vmem:[%s8137_s26 + $0x180] sm:$0xff]  ;;  %v4117_v48 = vld [vmem:[%s8137_s26 + $0x190] sm:$0xff] }
  0x19   :  { %211 = vmatpush.msra.mxu2 %v96_v30  ;;  %240 = vmatpush.msra.mxu3 %v97_v31  ;;  %v4116_v47 = vld [vmem:[%s8137_s26 + $0x188] sm:$0xff]  ;;  %v4118_v49 = vld [vmem:[%s8137_s26 + $0x198] sm:$0xff]  ;;  %v4111_v50 = vld [vmem:[%s8137_s26 + $0x160] sm:$0xff] }
  0x1a   :  { %4083 = vmatmul.msk.f32.vlgmr.msra.gmra.mxu0 %vm59_vm0, %v90_v32  ;;  %4087 = vmatmul.msk.f32.vlgmr.msra.gmra.mxu1 %vm59_vm0, %v90_v32  ;;  %v4112_v51 = vld [vmem:[%s8137_s26 + $0x168] sm:$0xff]  ;;  %v4113_v52 = vld [vmem:[%s8137_s26 + $0x170] sm:$0xff]  ;;  %v4114_v53 = vld [vmem:[%s8137_s26 + $0x178] sm:$0xff] }
  0x1b   :  { %4091 = vmatmul.msk.f32.vlgmr.msra.gmra.mxu2 %vm59_vm0, %v90_v32  ;;  %4095 = vmatmul.msk.f32.vlgmr.msra.gmra.mxu3 %vm59_vm0, %v90_v32  ;;  %v4107_v54 = vld [vmem:[%s8137_s26 + $0x140] sm:$0xff]  ;;  %v4108_v55 = vld [vmem:[%s8137_s26 + $0x148] sm:$0xff]  ;;  %v4109_v56 = vld [vmem:[%s8137_s26 + $0x150] sm:$0xff] }
  0x1c   :  { %359 = vmatpush.msrb.mxu0 %v4127_v33  ;;  %388 = vmatpush.msrb.mxu1 %v4128_v34  ;;  %v4110_v57 = vld [vmem:[%s8137_s26 + $0x158] sm:$0xff]  ;;  %v92_v58 = vld [vmem:[%s8138_s20 + $0x10] sm:$0xff]  ;;  %v4103_v59 = vld [vmem:[%s8137_s26 + $0x120] sm:$0xff] }
  0x1d   :  { %417 = vmatpush.msrb.mxu2 %v4129_v35  ;;  %446 = vmatpush.msrb.mxu3 %v4130_v36  ;;  %v4104_v60 = vld [vmem:[%s8137_s26 + $0x128] sm:$0xff]  ;;  %v4105_v61 = vld [vmem:[%s8137_s26 + $0x130] sm:$0xff]  ;;  %v4106_v62 = vld [vmem:[%s8137_s26 + $0x138] sm:$0xff] }
  0x1e   :  { %360 = vmatpush.msrb.mxu0 %v4123_v37  ;;  %389 = vmatpush.msrb.mxu1 %v4124_v38  ;;  %v4099_v63 = vld [vmem:[%s8137_s26 + $0x100] sm:$0xff]  ;;  %v4100_v0 = vld [vmem:[%s8137_s26 + $0x108] sm:$0xff]  ;;  %v4101_v1 = vld [vmem:[%s8137_s26 + $0x110] sm:$0xff] }
  0x1f   :  { %418 = vmatpush.msrb.mxu2 %v4125_v39  ;;  %447 = vmatpush.msrb.mxu3 %v4126_v40  ;;  %v4102_v2 = vld [vmem:[%s8137_s26 + $0x118] sm:$0xff]  ;;  %v4175_v3 = vld [vmem:[%s8137_s26 + $0x2e0] sm:$0xff]  ;;  %v4176_v4 = vld [vmem:[%s8137_s26 + $0x2e8] sm:$0xff] }
  0x20   :  { %361 = vmatpush.msrb.mxu0 %v4119_v41  ;;  %390 = vmatpush.msrb.mxu1 %v4120_v42  ;;  %v4177_v5 = vld [vmem:[%s8137_s26 + $0x2f0] sm:$0xff]  ;;  %v4178_v6 = vld [vmem:[%s8137_s26 + $0x2f8] sm:$0xff]  ;;  %v4171_v8 = vld [vmem:[%s8137_s26 + $0x2c0] sm:$0xff] }
  0x21   :  { %419 = vmatpush.msrb.mxu2 %v4121_v43  ;;  %448 = vmatpush.msrb.mxu3 %v4122_v44  ;;  %v93_v7 = vld [vmem:[%s8138_s20 + $0x18] sm:$0xf]  ;;  %v4172_v9 = vld [vmem:[%s8137_s26 + $0x2c8] sm:$0xff]  ;;  %v4173_v10 = vld [vmem:[%s8137_s26 + $0x2d0] sm:$0xff] }
  0x22   :  { %4084 = vmatmul.msk.f32.gmra.mxu0 %vm59_vm0, %v91_v45  ;;  %4088 = vmatmul.msk.f32.gmra.mxu1 %vm59_vm0, %v91_v45  ;;  %v4174_v11 = vld [vmem:[%s8137_s26 + $0x2d8] sm:$0xff]  ;;  %v4167_v12 = vld [vmem:[%s8137_s26 + $0x2a0] sm:$0xff]  ;;  %v4168_v13 = vld [vmem:[%s8137_s26 + $0x2a8] sm:$0xff] }
  0x23   :  { %4092 = vmatmul.msk.f32.gmra.mxu2 %vm59_vm0, %v91_v45  ;;  %4096 = vmatmul.msk.f32.gmra.mxu3 %vm59_vm0, %v91_v45  ;;  %v4169_v14 = vld [vmem:[%s8137_s26 + $0x2b0] sm:$0xff]  ;;  %v4170_v15 = vld [vmem:[%s8137_s26 + $0x2b8] sm:$0xff]  ;;  %v4163_v16 = vld [vmem:[%s8137_s26 + $0x280] sm:$0xff] }
  0x24   :  { %362 = vmatpush.msrb.mxu0 %v4115_v46  ;;  %391 = vmatpush.msrb.mxu1 %v4116_v47  ;;  %v4164_v17 = vld [vmem:[%s8137_s26 + $0x288] sm:$0xff]  ;;  %v4165_v18 = vld [vmem:[%s8137_s26 + $0x290] sm:$0xff]  ;;  %v4166_v19 = vld [vmem:[%s8137_s26 + $0x298] sm:$0xff] }
  0x25   :  { %420 = vmatpush.msrb.mxu2 %v4117_v48  ;;  %449 = vmatpush.msrb.mxu3 %v4118_v49  ;;  %v302_v20 = vld [vmem:[%s8138_s20 + $0x1] sm:$0xff]  ;;  %v4161_v23 = vld [vmem:[%s8137_s26 + $0x270] sm:$0xff]  ;;  %v4162_v24 = vld [vmem:[%s8137_s26 + $0x278] sm:$0xff] }
  0x26   :  { %363 = vmatpush.msrb.mxu0 %v4111_v50  ;;  %392 = vmatpush.msrb.mxu1 %v4112_v51  ;;  %v4159_v21 = vld [vmem:[%s8137_s26 + $0x260] sm:$0xff]  ;;  %v4160_v22 = vld [vmem:[%s8137_s26 + $0x268] sm:$0xff]  ;;  %v4157_v27 = vld [vmem:[%s8137_s26 + $0x250] sm:$0xff] }
  0x27   :  { %421 = vmatpush.msrb.mxu2 %v4113_v52  ;;  %450 = vmatpush.msrb.mxu3 %v4114_v53  ;;  %v4155_v25 = vld [vmem:[%s8137_s26 + $0x240] sm:$0xff]  ;;  %v4156_v26 = vld [vmem:[%s8137_s26 + $0x248] sm:$0xff]  ;;  %v4158_v28 = vld [vmem:[%s8137_s26 + $0x258] sm:$0xff] }
  0x28   :  { %364 = vmatpush.msrb.mxu0 %v4107_v54  ;;  %393 = vmatpush.msrb.mxu1 %v4108_v55  ;;  %v4151_v29 = vld [vmem:[%s8137_s26 + $0x220] sm:$0xff]  ;;  %v4152_v30 = vld [vmem:[%s8137_s26 + $0x228] sm:$0xff]  ;;  %v4153_v31 = vld [vmem:[%s8137_s26 + $0x230] sm:$0xff] }
  0x29   :  { %422 = vmatpush.msrb.mxu2 %v4109_v56  ;;  %451 = vmatpush.msrb.mxu3 %v4110_v57  ;;  %v4154_v32 = vld [vmem:[%s8137_s26 + $0x238] sm:$0xff]  ;;  %v303_v33 = vld [vmem:[%s8138_s20 + $0x9] sm:$0xff]  ;;  %v4147_v34 = vld [vmem:[%s8137_s26 + $0x200] sm:$0xff] }
  0x2a   :  { %4085 = vmatmul.msk.f32.gmra.mxu0 %vm59_vm0, %v92_v58  ;;  %4089 = vmatmul.msk.f32.gmra.mxu1 %vm59_vm0, %v92_v58  ;;  %v4148_v35 = vld [vmem:[%s8137_s26 + $0x208] sm:$0xff]  ;;  %v4149_v36 = vld [vmem:[%s8137_s26 + $0x210] sm:$0xff]  ;;  %v4150_v37 = vld [vmem:[%s8137_s26 + $0x218] sm:$0xff] }
  0x2b   :  { %4093 = vmatmul.msk.f32.gmra.mxu2 %vm59_vm0, %v92_v58  ;;  %4097 = vmatmul.msk.f32.gmra.mxu3 %vm59_vm0, %v92_v58  ;;  %v304_v38 = vld [vmem:[%s8138_s20 + $0x11] sm:$0xff]  ;;  %v4223_v39 = vld [vmem:[%s8137_s26 + $0x3e0] sm:$0xff]  ;;  %v4224_v40 = vld [vmem:[%s8137_s26 + $0x3e8] sm:$0xff] }
  0x2c   :  { %365 = vmatpush.msrb.mxu0 %v4103_v59  ;;  %394 = vmatpush.msrb.mxu1 %v4104_v60  ;;  %v4225_v41 = vld [vmem:[%s8137_s26 + $0x3f0] sm:$0xff]  ;;  %v4226_v42 = vld [vmem:[%s8137_s26 + $0x3f8] sm:$0xff]  ;;  %v4219_v43 = vld [vmem:[%s8137_s26 + $0x3c0] sm:$0xff] }
  0x2d   :  { %423 = vmatpush.msrb.mxu2 %v4105_v61  ;;  %452 = vmatpush.msrb.mxu3 %v4106_v62  ;;  %v4220_v44 = vld [vmem:[%s8137_s26 + $0x3c8] sm:$0xff]  ;;  %v4221_v45 = vld [vmem:[%s8137_s26 + $0x3d0] sm:$0xff]  ;;  %v4222_v46 = vld [vmem:[%s8137_s26 + $0x3d8] sm:$0xff] }
  0x2e   :  { %366 = vmatpush.msrb.mxu0 %v4099_v63  ;;  %395 = vmatpush.msrb.mxu1 %v4100_v0  ;;  %v4215_v47 = vld [vmem:[%s8137_s26 + $0x3a0] sm:$0xff]  ;;  %v4216_v48 = vld [vmem:[%s8137_s26 + $0x3a8] sm:$0xff]  ;;  %v4217_v49 = vld [vmem:[%s8137_s26 + $0x3b0] sm:$0xff] }
  0x2f   :  { %424 = vmatpush.msrb.mxu2 %v4101_v1  ;;  %453 = vmatpush.msrb.mxu3 %v4102_v2  ;;  %v4218_v50 = vld [vmem:[%s8137_s26 + $0x3b8] sm:$0xff]  ;;  %v4211_v52 = vld [vmem:[%s8137_s26 + $0x380] sm:$0xff]  ;;  %v4212_v53 = vld [vmem:[%s8137_s26 + $0x388] sm:$0xff] }
  0x30   :  { %572 = vmatpush.msra.mxu0 %v4175_v3  ;;  %601 = vmatpush.msra.mxu1 %v4176_v4  ;;  %v305_v51 = vld [vmem:[%s8138_s20 + $0x19] sm:$0xf]  ;;  %v4213_v54 = vld [vmem:[%s8137_s26 + $0x390] sm:$0xff]  ;;  %v4207_v56 = vld [vmem:[%s8137_s26 + $0x360] sm:$0xff] }
  0x31   :  { %630 = vmatpush.msra.mxu2 %v4177_v5  ;;  %659 = vmatpush.msra.mxu3 %v4178_v6  ;;  %v4214_v55 = vld [vmem:[%s8137_s26 + $0x398] sm:$0xff]  ;;  %v4208_v57 = vld [vmem:[%s8137_s26 + $0x368] sm:$0xff]  ;;  %v4209_v58 = vld [vmem:[%s8137_s26 + $0x370] sm:$0xff] }
  0x32   :  { %4086 = vmatmul.msk.f32.gmra.mxu0 %vm59_vm0, %v93_v7  ;;  %4090 = vmatmul.msk.f32.gmra.mxu1 %vm59_vm0, %v93_v7  ;;  %v4210_v59 = vld [vmem:[%s8137_s26 + $0x378] sm:$0xff]  ;;  %v4203_v60 = vld [vmem:[%s8137_s26 + $0x340] sm:$0xff]  ;;  %v4204_v61 = vld [vmem:[%s8137_s26 + $0x348] sm:$0xff] }
  0x33   :  { %4094 = vmatmul.msk.f32.gmra.mxu2 %vm59_vm0, %v93_v7  ;;  %4098 = vmatmul.msk.f32.gmra.mxu3 %vm59_vm0, %v93_v7  ;;  %v4205_v62 = vld [vmem:[%s8137_s26 + $0x350] sm:$0xff]  ;;  %v4206_v63 = vld [vmem:[%s8137_s26 + $0x358] sm:$0xff]  ;;  %v515_v0 = vld [vmem:[%s8138_s20 + $0x2] sm:$0xff] }
  0x34   :  { %573 = vmatpush.msra.mxu0 %v4171_v8  ;;  %602 = vmatpush.msra.mxu1 %v4172_v9  ;;  %v4199_v1 = vld [vmem:[%s8137_s26 + $0x320] sm:$0xff]  ;;  %v4200_v2 = vld [vmem:[%s8137_s26 + $0x328] sm:$0xff]  ;;  %v4201_v3 = vld [vmem:[%s8137_s26 + $0x330] sm:$0xff] }
  0x35   :  { %631 = vmatpush.msra.mxu2 %v4173_v10  ;;  %660 = vmatpush.msra.mxu3 %v4174_v11  ;;  %v4202_v4 = vld [vmem:[%s8137_s26 + $0x338] sm:$0xff]  ;;  %v4195_v5 = vld [vmem:[%s8137_s26 + $0x300] sm:$0xff]  ;;  %v4196_v6 = vld [vmem:[%s8137_s26 + $0x308] sm:$0xff] }
  0x36   :  { %574 = vmatpush.msra.mxu0 %v4167_v12  ;;  %603 = vmatpush.msra.mxu1 %v4168_v13  ;;  %v4197_v7 = vld [vmem:[%s8137_s26 + $0x310] sm:$0xff]  ;;  %v4198_v8 = vld [vmem:[%s8137_s26 + $0x318] sm:$0xff]  ;;  %v4271_v11 = vld [vmem:[%s8137_s26 + $0x4e0] sm:$0xff] }
  0x37   :  { %632 = vmatpush.msra.mxu2 %v4169_v14  ;;  %661 = vmatpush.msra.mxu3 %v4170_v15  ;;  %v516_v9 = vld [vmem:[%s8138_s20 + $0xa] sm:$0xff]  ;;  %v517_v10 = vld [vmem:[%s8138_s20 + $0x12] sm:$0xff]  ;;  %v4267_v15 = vld [vmem:[%s8137_s26 + $0x4c0] sm:$0xff] }
  0x38   :  { %575 = vmatpush.msra.mxu0 %v4163_v16  ;;  %604 = vmatpush.msra.mxu1 %v4164_v17  ;;  %v4272_v12 = vld [vmem:[%s8137_s26 + $0x4e8] sm:$0xff]  ;;  %v4273_v13 = vld [vmem:[%s8137_s26 + $0x4f0] sm:$0xff]  ;;  %v4274_v14 = vld [vmem:[%s8137_s26 + $0x4f8] sm:$0xff] }
  0x39   :  { %633 = vmatpush.msra.mxu2 %v4165_v18  ;;  %662 = vmatpush.msra.mxu3 %v4166_v19  ;;  %v4268_v16 = vld [vmem:[%s8137_s26 + $0x4c8] sm:$0xff]  ;;  %v4269_v17 = vld [vmem:[%s8137_s26 + $0x4d0] sm:$0xff]  ;;  %v4270_v18 = vld [vmem:[%s8137_s26 + $0x4d8] sm:$0xff] }
  0x3a   :  { %4131 = vmatmul.msk.f32.vlgmr.msrb.gmra.mxu0 %vm59_vm0, %v302_v20  ;;  %4135 = vmatmul.msk.f32.vlgmr.msrb.gmra.mxu1 %vm59_vm0, %v302_v20  ;;  %v4263_v19 = vld [vmem:[%s8137_s26 + $0x4a0] sm:$0xff] }
  0x3b   :  { %4139 = vmatmul.msk.f32.vlgmr.msrb.gmra.mxu2 %vm59_vm0, %v302_v20  ;;  %4143 = vmatmul.msk.f32.vlgmr.msrb.gmra.mxu3 %vm59_vm0, %v302_v20  ;;  %v4264_v20 = vld [vmem:[%s8137_s26 + $0x4a8] sm:$0xff] }
  0x3c   :  { %576 = vmatpush.msra.mxu0 %v4159_v21  ;;  %605 = vmatpush.msra.mxu1 %v4160_v22  ;;  %v4265_v21 = vld [vmem:[%s8137_s26 + $0x4b0] sm:$0xff]  ;;  %v4266_v22 = vld [vmem:[%s8137_s26 + $0x4b8] sm:$0xff] }
  0x3d   :  { %634 = vmatpush.msra.mxu2 %v4161_v23  ;;  %663 = vmatpush.msra.mxu3 %v4162_v24  ;;  %v518_v23 = vld [vmem:[%s8138_s20 + $0x1a] sm:$0xf]  ;;  %v4259_v24 = vld [vmem:[%s8137_s26 + $0x480] sm:$0xff] }
  0x3e   :  { %577 = vmatpush.msra.mxu0 %v4155_v25  ;;  %606 = vmatpush.msra.mxu1 %v4156_v26  ;;  %v4260_v25 = vld [vmem:[%s8137_s26 + $0x488] sm:$0xff]  ;;  %v4261_v26 = vld [vmem:[%s8137_s26 + $0x490] sm:$0xff] }
  0x3f   :  { %635 = vmatpush.msra.mxu2 %v4157_v27  ;;  %664 = vmatpush.msra.mxu3 %v4158_v28  ;;  %v4262_v27 = vld [vmem:[%s8137_s26 + $0x498] sm:$0xff]  ;;  %v4255_v28 = vld [vmem:[%s8137_s26 + $0x460] sm:$0xff] }
  0x40   :  { %578 = vmatpush.msra.mxu0 %v4151_v29  ;;  %607 = vmatpush.msra.mxu1 %v4152_v30  ;;  %v4256_v29 = vld [vmem:[%s8137_s26 + $0x468] sm:$0xff]  ;;  %v4257_v30 = vld [vmem:[%s8137_s26 + $0x470] sm:$0xff] }
  0x41   :  { %636 = vmatpush.msra.mxu2 %v4153_v31  ;;  %665 = vmatpush.msra.mxu3 %v4154_v32  ;;  %v4258_v31 = vld [vmem:[%s8137_s26 + $0x478] sm:$0xff]  ;;  %v8117_v32 = vmov 0.0  }
  0x42   :  { %4132 = vmatmul.msk.f32.gmra.mxu0 %vm59_vm0, %v303_v33  ;;  %4136 = vmatmul.msk.f32.gmra.mxu1 %vm59_vm0, %v303_v33  ;;  %60 = vst.msk [vmem:[#allocation2 + $0x18] sm:$0xff] %vm59_vm0, %v8117_v32 }
  0x43   :  { %4140 = vmatmul.msk.f32.gmra.mxu2 %vm59_vm0, %v303_v33  ;;  %4144 = vmatmul.msk.f32.gmra.mxu3 %vm59_vm0, %v303_v33  ;;  %v4251_v33 = vld [vmem:[%s8137_s26 + $0x440] sm:$0xff]  ;;  %64 = vst.msk [vmem:[#allocation2 + $0x38] sm:$0xff] %vm59_vm0, %v8117_v32 }
  0x44   :  { %579 = vmatpush.msra.mxu0 %v4147_v34  ;;  %608 = vmatpush.msra.mxu1 %v4148_v35  ;;  %v4252_v34 = vld [vmem:[%s8137_s26 + $0x448] sm:$0xff]  ;;  %v4253_v35 = vld [vmem:[%s8137_s26 + $0x450] sm:$0xff]  ;;  %68 = vst.msk [vmem:[#allocation2 + $0x58] sm:$0xff] %vm59_vm0, %v8117_v32 }
  0x45   :  { %637 = vmatpush.msra.mxu2 %v4149_v36  ;;  %666 = vmatpush.msra.mxu3 %v4150_v37  ;;  %v4254_v36 = vld [vmem:[%s8137_s26 + $0x458] sm:$0xff]  ;;  %v728_v37 = vld [vmem:[%s8138_s20 + $0x3] sm:$0xff]  ;;  %69 = vst [vmem:[#allocation2 + $0x60] sm:$0xf] %v8117_v32 }
  0x46   :  { %785 = vmatpush.msrb.mxu0 %v4223_v39  ;;  %814 = vmatpush.msrb.mxu1 %v4224_v40  ;;  %70 = vst [vmem:[#allocation2 + $0x68] sm:$0xf] %v8117_v32  ;;  %v4248_v39 = vld [vmem:[%s8137_s26 + $0x428] sm:$0xff]  ;;  %v4249_v40 = vld [vmem:[%s8137_s26 + $0x430] sm:$0xff] }
  0x47   :  { %843 = vmatpush.msrb.mxu2 %v4225_v41  ;;  %872 = vmatpush.msrb.mxu3 %v4226_v42  ;;  %71 = vst [vmem:[#allocation2 + $0x70] sm:$0xf] %v8117_v32  ;;  %v4250_v41 = vld [vmem:[%s8137_s26 + $0x438] sm:$0xff]  ;;  %v4243_v42 = vld [vmem:[%s8137_s26 + $0x400] sm:$0xff] }
  0x48   :  { %786 = vmatpush.msrb.mxu0 %v4219_v43  ;;  %815 = vmatpush.msrb.mxu1 %v4220_v44  ;;  %2578 = vst [vmem:[#allocation3] sm:$0x3] %v8117_v32  ;;  %v4244_v43 = vld [vmem:[%s8137_s26 + $0x408] sm:$0xff]  ;;  %v4245_v44 = vld [vmem:[%s8137_s26 + $0x410] sm:$0xff] }
  0x49   :  { %844 = vmatpush.msrb.mxu2 %v4221_v45  ;;  %873 = vmatpush.msrb.mxu3 %v4222_v46  ;;  %2579 = vst [vmem:[#allocation3 + $0x8] sm:$0x3] %v8117_v32  ;;  %v4246_v45 = vld [vmem:[%s8137_s26 + $0x418] sm:$0xff]  ;;  %v729_v46 = vld [vmem:[%s8138_s20 + $0xb] sm:$0xff] }
  0x4a   :  { %4133 = vmatmul.msk.f32.gmra.mxu0 %vm59_vm0, %v304_v38  ;;  %4137 = vmatmul.msk.f32.gmra.mxu1 %vm59_vm0, %v304_v38  ;;  %2582 = vst [vmem:[#allocation3 + $0x30] sm:$0x3] %v8117_v32 }
  0x4b   :  { %4141 = vmatmul.msk.f32.gmra.mxu2 %vm59_vm0, %v304_v38  ;;  %4145 = vmatmul.msk.f32.gmra.mxu3 %vm59_vm0, %v304_v38  ;;  %v4247_v38 = vld [vmem:[%s8137_s26 + $0x420] sm:$0xff]  ;;  %2583 = vst [vmem:[#allocation3 + $0x38] sm:$0x3] %v8117_v32 }
  0x4c   :  { %787 = vmatpush.msrb.mxu0 %v4215_v47  ;;  %816 = vmatpush.msrb.mxu1 %v4216_v48  ;;  %v730_v47 = vld [vmem:[%s8138_s20 + $0x13] sm:$0xff]  ;;  %v731_v48 = vld [vmem:[%s8138_s20 + $0x1b] sm:$0xf]  ;;  %73 = vst.msk [vmem:[#allocation2 + $0x78] sm:$0xf] %vm72_vm1, %v8117_v32 }
  0x4d   :  { %845 = vmatpush.msrb.mxu2 %v4217_v49  ;;  %874 = vmatpush.msrb.mxu3 %v4218_v50 }
  0x4e   :  { %788 = vmatpush.msrb.mxu0 %v4211_v52  ;;  %817 = vmatpush.msrb.mxu1 %v4212_v53  ;;  %v77_v52 = vld [vmem:[#allocation2 + $0x18] sm:$0xff] }
  0x4f   :  { %846 = vmatpush.msrb.mxu2 %v4213_v54  ;;  %875 = vmatpush.msrb.mxu3 %v4214_v55 }
  0x50   :  { %789 = vmatpush.msrb.mxu0 %v4207_v56  ;;  %818 = vmatpush.msrb.mxu1 %v4208_v57 }
  0x51   :  { %847 = vmatpush.msrb.mxu2 %v4209_v58  ;;  %876 = vmatpush.msrb.mxu3 %v4210_v59  ;;  %v942_v58 = vld [vmem:[%s8138_s20 + $0xc] sm:$0xff]  ;;  %v81_v59 = vld [vmem:[#allocation2 + $0x38] sm:$0xff] }
  0x52   :  { %4134 = vmatmul.msk.f32.gmra.mxu0 %vm59_vm0, %v305_v51  ;;  %4138 = vmatmul.msk.f32.gmra.mxu1 %vm59_vm0, %v305_v51 }
  0x53   :  { %4142 = vmatmul.msk.f32.gmra.mxu2 %vm59_vm0, %v305_v51  ;;  %4146 = vmatmul.msk.f32.gmra.mxu3 %vm59_vm0, %v305_v51  ;;  %v941_v51 = vld [vmem:[%s8138_s20 + $0x4] sm:$0xff] }
  0x54   :  { %790 = vmatpush.msrb.mxu0 %v4203_v60  ;;  %819 = vmatpush.msrb.mxu1 %v4204_v61 }
  0x55   :  { %848 = vmatpush.msrb.mxu2 %v4205_v62  ;;  %877 = vmatpush.msrb.mxu3 %v4206_v63 }
  0x56   :  { %791 = vmatpush.msrb.mxu0 %v4199_v1  ;;  %820 = vmatpush.msrb.mxu1 %v4200_v2  ;;  %v943_v1 = vld [vmem:[%s8138_s20 + $0x14] sm:$0xff] }
  0x57   :  { %849 = vmatpush.msrb.mxu2 %v4201_v3  ;;  %878 = vmatpush.msrb.mxu3 %v4202_v4  ;;  %v85_v2 = vld [vmem:[#allocation2 + $0x58] sm:$0xff]  ;;  %v86_v3 = vld [vmem:[#allocation2 + $0x60] sm:$0xf]  ;;  %v87_v4 = vld [vmem:[#allocation2 + $0x68] sm:$0xf] }
  0x58   :  { %792 = vmatpush.msrb.mxu0 %v4195_v5  ;;  %821 = vmatpush.msrb.mxu1 %v4196_v6 }
  0x59   :  { %850 = vmatpush.msrb.mxu2 %v4197_v7  ;;  %879 = vmatpush.msrb.mxu3 %v4198_v8 }
  0x5a   :  { %4179 = vmatmul.msk.f32.vlgmr.msra.gmra.mxu0 %vm59_vm0, %v515_v0  ;;  %4183 = vmatmul.msk.f32.vlgmr.msra.gmra.mxu1 %vm59_vm0, %v515_v0 }
  0x5b   :  { %4187 = vmatmul.msk.f32.vlgmr.msra.gmra.mxu2 %vm59_vm0, %v515_v0  ;;  %4191 = vmatmul.msk.f32.vlgmr.msra.gmra.mxu3 %vm59_vm0, %v515_v0 }
  0x5c   :  { %998 = vmatpush.msra.mxu0 %v4271_v11  ;;  %1027 = vmatpush.msra.mxu1 %v4272_v12 }
  0x5d   :  { %1056 = vmatpush.msra.mxu2 %v4273_v13  ;;  %1085 = vmatpush.msra.mxu3 %v4274_v14  ;;  %v88_v13 = vld [vmem:[#allocation2 + $0x70] sm:$0xf]  ;;  %v89_v14 = vld [vmem:[#allocation2 + $0x78] sm:$0xf] }
  0x5e   :  { %999 = vmatpush.msra.mxu0 %v4267_v15  ;;  %1028 = vmatpush.msra.mxu1 %v4268_v16 }
  0x5f   :  { %1057 = vmatpush.msra.mxu2 %v4269_v17  ;;  %1086 = vmatpush.msra.mxu3 %v4270_v18 }
  0x60   :  { %1000 = vmatpush.msra.mxu0 %v4263_v19  ;;  %1029 = vmatpush.msra.mxu1 %v4264_v20 }
  0x61   :  { %1058 = vmatpush.msra.mxu2 %v4265_v21  ;;  %1087 = vmatpush.msra.mxu3 %v4266_v22 }
  0x62   :  { %4180 = vmatmul.msk.f32.gmra.mxu0 %vm59_vm0, %v516_v9  ;;  %4184 = vmatmul.msk.f32.gmra.mxu1 %vm59_vm0, %v516_v9 }
  0x63   :  { %4188 = vmatmul.msk.f32.gmra.mxu2 %vm59_vm0, %v516_v9  ;;  %4192 = vmatmul.msk.f32.gmra.mxu3 %vm59_vm0, %v516_v9 }
  0x64   :  { %1001 = vmatpush.msra.mxu0 %v4259_v24  ;;  %1030 = vmatpush.msra.mxu1 %v4260_v25 }
  0x65   :  { %1059 = vmatpush.msra.mxu2 %v4261_v26  ;;  %1088 = vmatpush.msra.mxu3 %v4262_v27 }
  0x66   :  { %1002 = vmatpush.msra.mxu0 %v4255_v28  ;;  %1031 = vmatpush.msra.mxu1 %v4256_v29 }
  0x67   :  { %1060 = vmatpush.msra.mxu2 %v4257_v30  ;;  %1089 = vmatpush.msra.mxu3 %v4258_v31 }
  0x68   :  { %1003 = vmatpush.msra.mxu0 %v4251_v33  ;;  %1032 = vmatpush.msra.mxu1 %v4252_v34 }
  0x69   :  { %1061 = vmatpush.msra.mxu2 %v4253_v35  ;;  %1090 = vmatpush.msra.mxu3 %v4254_v36 }
  0x6a   :  { %4181 = vmatmul.msk.f32.gmra.mxu0 %vm59_vm0, %v517_v10  ;;  %4185 = vmatmul.msk.f32.gmra.mxu1 %vm59_vm0, %v517_v10 }
  0x6b   :  { %4189 = vmatmul.msk.f32.gmra.mxu2 %vm59_vm0, %v517_v10  ;;  %4193 = vmatmul.msk.f32.gmra.mxu3 %vm59_vm0, %v517_v10  ;;  %v944_v10 = vld [vmem:[%s8138_s20 + $0x1c] sm:$0xf] }
  0x6c   :  { %1004 = vmatpush.msra.mxu0 %v4247_v38  ;;  %1033 = vmatpush.msra.mxu1 %v4248_v39 }
  0x6d   :  { %1062 = vmatpush.msra.mxu2 %v4249_v40  ;;  %1091 = vmatpush.msra.mxu3 %v4250_v41 }
  0x6e   :  { %1005 = vmatpush.msra.mxu0 %v4243_v42  ;;  %1034 = vmatpush.msra.mxu1 %v4244_v43 }
  0x6f   :  { %1063 = vmatpush.msra.mxu2 %v4245_v44  ;;  %1092 = vmatpush.msra.mxu3 %v4246_v45 }
  0x72   :  { %4182 = vmatmul.msk.f32.gmra.mxu0 %vm59_vm0, %v518_v23  ;;  %4186 = vmatmul.msk.f32.gmra.mxu1 %vm59_vm0, %v518_v23 }
  0x73   :  { %4190 = vmatmul.msk.f32.gmra.mxu2 %vm59_vm0, %v518_v23  ;;  %4194 = vmatmul.msk.f32.gmra.mxu3 %vm59_vm0, %v518_v23 }
  0x7a   :  { %4227 = vmatmul.msk.f32.vlgmr.msrb.gmra.mxu0 %vm59_vm0, %v728_v37  ;;  %4231 = vmatmul.msk.f32.vlgmr.msrb.gmra.mxu1 %vm59_vm0, %v728_v37 }
  0x7b   :  { %4235 = vmatmul.msk.f32.vlgmr.msrb.gmra.mxu2 %vm59_vm0, %v728_v37  ;;  %4239 = vmatmul.msk.f32.vlgmr.msrb.gmra.mxu3 %vm59_vm0, %v728_v37 }
  0x82   :  { %4228 = vmatmul.msk.f32.gmra.mxu0 %vm59_vm0, %v729_v46  ;;  %4232 = vmatmul.msk.f32.gmra.mxu1 %vm59_vm0, %v729_v46 }
  0x83   :  { %4236 = vmatmul.msk.f32.gmra.mxu2 %vm59_vm0, %v729_v46  ;;  %4240 = vmatmul.msk.f32.gmra.mxu3 %vm59_vm0, %v729_v46 }
  0x8a   :  { %4229 = vmatmul.msk.f32.gmra.mxu0 %vm59_vm0, %v730_v47  ;;  %4233 = vmatmul.msk.f32.gmra.mxu1 %vm59_vm0, %v730_v47 }
  0x8b   :  { %4237 = vmatmul.msk.f32.gmra.mxu2 %vm59_vm0, %v730_v47  ;;  %4241 = vmatmul.msk.f32.gmra.mxu3 %vm59_vm0, %v730_v47 }
  0x92   :  { %4230 = vmatmul.msk.f32.gmra.mxu0 %vm59_vm0, %v731_v48  ;;  %4234 = vmatmul.msk.f32.gmra.mxu1 %vm59_vm0, %v731_v48 }
  0x93   :  { %4238 = vmatmul.msk.f32.gmra.mxu2 %vm59_vm0, %v731_v48  ;;  %4242 = vmatmul.msk.f32.gmra.mxu3 %vm59_vm0, %v731_v48 }
  0x97   :  { %v5255_v49 = vpop.f32.mrf.mxu0  ;;  %v5257_v50 = vpop.f32.mrf.mxu1 }
  0x9a   :  { %4275 = vmatmul.msk.f32.vlgmr.msra.gmra.mxu0 %vm59_vm0, %v941_v51  ;;  %4279 = vmatmul.msk.f32.vlgmr.msra.gmra.mxu1 %vm59_vm0, %v941_v51 }
  0x9b   :  { %4283 = vmatmul.msk.f32.vlgmr.msra.gmra.mxu2 %vm59_vm0, %v941_v51  ;;  %4287 = vmatmul.msk.f32.vlgmr.msra.gmra.mxu3 %vm59_vm0, %v941_v51 }
  0x9e   :  { %v5266_v53 = vpop.f32.mrf.mxu2  ;;  %v242_v54 = vpop.f32.mrf.mxu3 }
  0x9f   :  { %v257_v55 = vadd.f32 %v242_v54, %v77_v52  ;;  %v5268_v56 = vpop.f32.mrf.mxu0  ;;  %v5270_v57 = vpop.f32.mrf.mxu1 }
  0xa1   :  { %273 = vst.msk [vmem:[#allocation2 + $0x18] sm:$0xff] %vm59_vm0, %v257_v55 }
  0xa2   :  { %4276 = vmatmul.msk.f32.gmra.mxu0 %vm59_vm0, %v942_v58  ;;  %4280 = vmatmul.msk.f32.gmra.mxu1 %vm59_vm0, %v942_v58 }
  0xa3   :  { %4284 = vmatmul.msk.f32.gmra.mxu2 %vm59_vm0, %v942_v58  ;;  %4288 = vmatmul.msk.f32.gmra.mxu3 %vm59_vm0, %v942_v58 }
  0xa6   :  { %v5280_v60 = vpop.f32.mrf.mxu2  ;;  %v245_v61 = vpop.f32.mrf.mxu3 }
  0xa7   :  { %v261_v62 = vadd.f32 %v245_v61, %v81_v59  ;;  %v5282_v63 = vpop.f32.mrf.mxu0  ;;  %v5284_v0 = vpop.f32.mrf.mxu1 }
  0xa8   :  { %v289_v22 = vld [vmem:[#allocation2 + $0x18] sm:$0xff] }
  0xa9   :  { %277 = vst.msk [vmem:[#allocation2 + $0x38] sm:$0xff] %vm59_vm0, %v261_v62 }
  0xaa   :  { %4277 = vmatmul.msk.f32.gmra.mxu0 %vm59_vm0, %v943_v1  ;;  %4281 = vmatmul.msk.f32.gmra.mxu1 %vm59_vm0, %v943_v1 }
  0xab   :  { %4285 = vmatmul.msk.f32.gmra.mxu2 %vm59_vm0, %v943_v1  ;;  %4289 = vmatmul.msk.f32.gmra.mxu3 %vm59_vm0, %v943_v1 }
  0xae   :  { %v5294_v5 = vpop.f32.mrf.mxu2  ;;  %v248_v6 = vpop.f32.mrf.mxu3 }
  0xaf   :  { %v265_v7 = vadd.f32 %v248_v6, %v85_v2  ;;  %v164_v8 = vpop.f32.mrf.mxu0  ;;  %v193_v9 = vpop.f32.mrf.mxu1 }
  0xb0   :  { %v266_v11 = vadd.f32 %v164_v8, %v86_v3  ;;  %v267_v12 = vadd.f32 %v193_v9, %v87_v4  ;;  %v293_v28 = vld [vmem:[#allocation2 + $0x38] sm:$0xff] }
  0xb1   :  { %281 = vst.msk [vmem:[#allocation2 + $0x58] sm:$0xff] %vm59_vm0, %v265_v7 }
  0xb2   :  { %282 = vst [vmem:[#allocation2 + $0x60] sm:$0xf] %v266_v11  ;;  %4278 = vmatmul.msk.f32.gmra.mxu0 %vm59_vm0, %v944_v10  ;;  %4282 = vmatmul.msk.f32.gmra.mxu1 %vm59_vm0, %v944_v10 }
  0xb3   :  { %283 = vst [vmem:[#allocation2 + $0x68] sm:$0xf] %v267_v12  ;;  %4286 = vmatmul.msk.f32.gmra.mxu2 %vm59_vm0, %v944_v10  ;;  %4290 = vmatmul.msk.f32.gmra.mxu3 %vm59_vm0, %v944_v10 }
  0xb6   :  { %v222_v15 = vpop.f32.mrf.mxu2  ;;  %v251_v16 = vpop.f32.mrf.mxu3 }
  0xb7   :  { %v268_v17 = vadd.f32 %v222_v15, %v88_v13  ;;  %v269_v18 = vadd.f32 %v251_v16, %v89_v14  ;;  %v5304_v19 = vpop.f32.mrf.mxu0  ;;  %v5306_v20 = vpop.f32.mrf.mxu1 }
  0xb8   :  { %v297_v35 = vld [vmem:[#allocation2 + $0x58] sm:$0xff] }
  0xb9   :  { %284 = vst [vmem:[#allocation2 + $0x70] sm:$0xf] %v268_v17  ;;  %v298_v38 = vld [vmem:[#allocation2 + $0x60] sm:$0xf] }
  0xba   :  { %285 = vst.msk [vmem:[#allocation2 + $0x78] sm:$0xf] %vm72_vm1, %v269_v18  ;;  %v299_v40 = vld [vmem:[#allocation2 + $0x68] sm:$0xf] }
  0xbe   :  { %v5309_v21 = vpop.f32.mrf.mxu2  ;;  %v455_v23 = vpop.f32.mrf.mxu3 }
  0xbf   :  { %v470_v24 = vadd.f32 %v455_v23, %v289_v22  ;;  %v5311_v25 = vpop.f32.mrf.mxu0  ;;  %v5313_v26 = vpop.f32.mrf.mxu1 }
  0xc0   :  { %v300_v44 = vld [vmem:[#allocation2 + $0x70] sm:$0xf] }
  0xc1   :  { %486 = vst.msk [vmem:[#allocation2 + $0x18] sm:$0xff] %vm59_vm0, %v470_v24  ;;  %v301_v46 = vld [vmem:[#allocation2 + $0x78] sm:$0xf] }
  0xc6   :  { %v5316_v27 = vpop.f32.mrf.mxu2  ;;  %v458_v29 = vpop.f32.mrf.mxu3 }
  0xc7   :  { %v474_v30 = vadd.f32 %v458_v29, %v293_v28  ;;  %v5318_v31 = vpop.f32.mrf.mxu0  ;;  %v5320_v33 = vpop.f32.mrf.mxu1 }
  0xc8   :  { %v502_v58 = vld [vmem:[#allocation2 + $0x18] sm:$0xff] }
  0xc9   :  { %490 = vst.msk [vmem:[#allocation2 + $0x38] sm:$0xff] %vm59_vm0, %v474_v30 }
  0xce   :  { %v5323_v34 = vpop.f32.mrf.mxu2  ;;  %v461_v36 = vpop.f32.mrf.mxu3 }
  0xcf   :  { %v478_v37 = vadd.f32 %v461_v36, %v297_v35  ;;  %v377_v39 = vpop.f32.mrf.mxu0  ;;  %v406_v41 = vpop.f32.mrf.mxu1 }
  0xd0   :  { %v479_v42 = vadd.f32 %v377_v39, %v298_v38  ;;  %v480_v43 = vadd.f32 %v406_v41, %v299_v40  ;;  %v506_v3 = vld [vmem:[#allocation2 + $0x38] sm:$0xff] }
  0xd1   :  { %494 = vst.msk [vmem:[#allocation2 + $0x58] sm:$0xff] %vm59_vm0, %v478_v37 }
  0xd2   :  { %495 = vst [vmem:[#allocation2 + $0x60] sm:$0xf] %v479_v42 }
  0xd3   :  { %496 = vst [vmem:[#allocation2 + $0x68] sm:$0xf] %v480_v43 }
  0xd6   :  { %v435_v45 = vpop.f32.mrf.mxu2  ;;  %v464_v47 = vpop.f32.mrf.mxu3 }
  0xd7   :  { %v481_v48 = vadd.f32 %v435_v45, %v300_v44  ;;  %v482_v51 = vadd.f32 %v464_v47, %v301_v46  ;;  %v5326_v52 = vpop.f32.mrf.mxu0  ;;  %v5328_v54 = vpop.f32.mrf.mxu1 }
  0xd8   :  { %v510_v10 = vld [vmem:[#allocation2 + $0x58] sm:$0xff] }
  0xd9   :  { %497 = vst [vmem:[#allocation2 + $0x70] sm:$0xf] %v481_v48  ;;  %v511_v13 = vld [vmem:[#allocation2 + $0x60] sm:$0xf] }
  0xda   :  { %498 = vst.msk [vmem:[#allocation2 + $0x78] sm:$0xf] %vm72_vm1, %v482_v51  ;;  %v512_v15 = vld [vmem:[#allocation2 + $0x68] sm:$0xf]  ;;  %v5370_v51 = vld [vmem:[%s8099_s11 + $0x78] sm:$0xff] }
  0xdb   :  { %1257 = vmatpush.msrb.mxu0 %v5370_v51 }
  0xde   :  { %v5331_v55 = vpop.f32.mrf.mxu2  ;;  %v668_v59 = vpop.f32.mrf.mxu3 }
  0xdf   :  { %v683_v61 = vadd.f32 %v668_v59, %v502_v58  ;;  %v5333_v62 = vpop.f32.mrf.mxu0  ;;  %v5335_v1 = vpop.f32.mrf.mxu1  ;;  %v5375_v58 = vld [vmem:[%s8099_s11 + $0xf8] sm:$0xff]  ;;  %v5382_v59 = vld [vmem:[%s8099_s11 + $0x70] sm:$0xff] }
  0xe0   :  { %v513_v22 = vld [vmem:[#allocation2 + $0x70] sm:$0xf]  ;;  %1277 = vmatpush.msrb.mxu1 %v5375_v58  ;;  %1258 = vmatpush.msrb.mxu0 %v5382_v59 }
  0xe1   :  { %699 = vst.msk [vmem:[#allocation2 + $0x18] sm:$0xff] %vm59_vm0, %v683_v61  ;;  %v514_v24 = vld [vmem:[#allocation2 + $0x78] sm:$0xf]  ;;  %v5387_v61 = vld [vmem:[%s8099_s11 + $0xf0] sm:$0xff] }
  0xe2   :  { %1278 = vmatpush.msrb.mxu1 %v5387_v61 }
  0xe6   :  { %v5338_v2 = vpop.f32.mrf.mxu2  ;;  %v671_v4 = vpop.f32.mrf.mxu3 }
  0xe7   :  { %v687_v6 = vadd.f32 %v671_v4, %v506_v3  ;;  %v5340_v7 = vpop.f32.mrf.mxu0  ;;  %v5342_v8 = vpop.f32.mrf.mxu1 }
  0xe8   :  { %v715_v38 = vld [vmem:[#allocation2 + $0x18] sm:$0xff] }
  0xe9   :  { %703 = vst.msk [vmem:[#allocation2 + $0x38] sm:$0xff] %vm59_vm0, %v687_v6 }
  0xee   :  { %v5345_v9 = vpop.f32.mrf.mxu2  ;;  %v674_v11 = vpop.f32.mrf.mxu3 }
  0xef   :  { %v691_v12 = vadd.f32 %v674_v11, %v510_v10  ;;  %v590_v14 = vpop.f32.mrf.mxu0  ;;  %v619_v16 = vpop.f32.mrf.mxu1 }
  0xf0   :  { %v692_v17 = vadd.f32 %v590_v14, %v511_v13  ;;  %v693_v18 = vadd.f32 %v619_v16, %v512_v15  ;;  %v719_v44 = vld [vmem:[#allocation2 + $0x38] sm:$0xff]  ;;  %v5396_v15 = vld [vmem:[%s8099_s11 + $0x68] sm:$0xff] }
  0xf1   :  { %707 = vst.msk [vmem:[#allocation2 + $0x58] sm:$0xff] %vm59_vm0, %v691_v12  ;;  %v5401_v16 = vld [vmem:[%s8099_s11 + $0xe8] sm:$0xff]  ;;  %1259 = vmatpush.msrb.mxu0 %v5396_v15 }
  0xf2   :  { %708 = vst [vmem:[#allocation2 + $0x60] sm:$0xf] %v692_v17  ;;  %1279 = vmatpush.msrb.mxu1 %v5401_v16 }
  0xf3   :  { %709 = vst [vmem:[#allocation2 + $0x68] sm:$0xf] %v693_v18 }
  0xf6   :  { %v648_v23 = vpop.f32.mrf.mxu2  ;;  %v677_v28 = vpop.f32.mrf.mxu3 }
  0xf7   :  { %v694_v29 = vadd.f32 %v648_v23, %v513_v22  ;;  %v695_v30 = vadd.f32 %v677_v28, %v514_v24  ;;  %v5348_v35 = vpop.f32.mrf.mxu0  ;;  %v5350_v36 = vpop.f32.mrf.mxu1  ;;  %v5409_v22 = vld [vmem:[%s8099_s11 + $0x60] sm:$0xff]  ;;  %v5419_v24 = vld [vmem:[%s8099_s11 + $0x178] sm:$0xff]  ;;  %v467_v28 = vadd.f32 %v5304_v19, %v5255_v49 }
  0xf8   :  { %v723_v4 = vld [vmem:[#allocation2 + $0x58] sm:$0xff]  ;;  %v5414_v23 = vld [vmem:[%s8099_s11 + $0xe0] sm:$0xff]  ;;  %1260 = vmatpush.msrb.mxu0 %v5409_v22  ;;  %1297 = vmatpush.msrb.mxu2 %v5419_v24 }
  0xf9   :  { %710 = vst [vmem:[#allocation2 + $0x70] sm:$0xf] %v694_v29  ;;  %v724_v10 = vld [vmem:[#allocation2 + $0x60] sm:$0xf]  ;;  %v468_v29 = vadd.f32 %v5306_v20, %v5257_v50  ;;  %1280 = vmatpush.msrb.mxu1 %v5414_v23  ;;  %v5436_v49 = vld [vmem:[%s8099_s11 + $0xd8] sm:$0xff]  ;;  %v5441_v50 = vld [vmem:[%s8099_s11 + $0x170] sm:$0xff]  ;;  %v680_v19 = vadd.f32 %v5326_v52, %v467_v28 }
  0xfa   :  { %711 = vst.msk [vmem:[#allocation2 + $0x78] sm:$0xf] %vm72_vm1, %v695_v30  ;;  %v725_v13 = vld [vmem:[#allocation2 + $0x68] sm:$0xf]  ;;  %v5431_v30 = vld [vmem:[%s8099_s11 + $0x58] sm:$0xff]  ;;  %1298 = vmatpush.msrb.mxu2 %v5441_v50  ;;  %v5495_v28 = vld [vmem:[%s8099_s11 + $0x40] sm:$0xff] }
  0xfb   :  { %v681_v20 = vadd.f32 %v5328_v54, %v468_v29  ;;  %1261 = vmatpush.msrb.mxu0 %v5431_v30  ;;  %1281 = vmatpush.msrb.mxu1 %v5436_v49  ;;  %v5460_v52 = vld [vmem:[%s8099_s11 + $0x168] sm:$0xff]  ;;  %v893_v54 = vadd.f32 %v5348_v35, %v680_v19  ;;  %v5500_v29 = vld [vmem:[%s8099_s11 + $0xc0] sm:$0xff]  ;;  %v471_v19 = vadd.f32 %v5311_v25, %v5268_v56  ;;  %v5529_v25 = vld [vmem:[%s8099_s11 + $0x150] sm:$0xff] }
  0xfc   :  { %1299 = vmatpush.msrb.mxu2 %v5460_v52  ;;  %v5471_v35 = vld [vmem:[%s8099_s11 + $0x48] sm:$0xff] }
  0xfe   :  { %v5353_v37 = vpop.f32.mrf.mxu2  ;;  %v881_v39 = vpop.f32.mrf.mxu3 }
  0xff   :  { %v896_v40 = vadd.f32 %v881_v39, %v715_v38  ;;  %v5355_v41 = vpop.f32.mrf.mxu0  ;;  %v5357_v42 = vpop.f32.mrf.mxu1  ;;  %v5450_v38 = vld [vmem:[%s8099_s11 + $0x50] sm:$0xff] }
 0x100   :  { %v5455_v39 = vld [vmem:[%s8099_s11 + $0xd0] sm:$0xff]  ;;  %1262 = vmatpush.msrb.mxu0 %v5450_v38 }
 0x101   :  { %912 = vst.msk [vmem:[#allocation2 + $0x18] sm:$0xff] %vm59_vm0, %v896_v40  ;;  %v894_v40 = vadd.f32 %v5350_v36, %v681_v20  ;;  %1282 = vmatpush.msrb.mxu1 %v5455_v39  ;;  %v5476_v36 = vld [vmem:[%s8099_s11 + $0xc8] sm:$0xff]  ;;  %v472_v20 = vadd.f32 %v5313_v26, %v5270_v57  ;;  %v5524_v57 = vld [vmem:[%s8099_s11 + $0xb8] sm:$0xff]  ;;  %v5534_v26 = vld [vmem:[%s8099_s11 + $0x30] sm:$0xff] }
 0x102   :  { %1263 = vmatpush.msrb.mxu0 %v5471_v35 }
 0x103   :  { %1283 = vmatpush.msrb.mxu1 %v5476_v36 }
 0x104   :  { %1264 = vmatpush.msrb.mxu0 %v5495_v28 }
 0x105   :  { %1284 = vmatpush.msrb.mxu1 %v5500_v29 }
 0x106   :  { %v5360_v43 = vpop.f32.mrf.mxu2  ;;  %v884_v45 = vpop.f32.mrf.mxu3 }
 0x107   :  { %v900_v46 = vadd.f32 %v884_v45, %v719_v44  ;;  %v5362_v47 = vpop.f32.mrf.mxu0  ;;  %v5364_v48 = vpop.f32.mrf.mxu1  ;;  %v726_v44 = vld [vmem:[#allocation2 + $0x70] sm:$0xf]  ;;  %1285 = vmatpush.msrb.mxu1 %v5524_v57 }
 0x109   :  { %916 = vst.msk [vmem:[#allocation2 + $0x38] sm:$0xff] %vm59_vm0, %v900_v46  ;;  %v727_v46 = vld [vmem:[#allocation2 + $0x78] sm:$0xf] }
 0x10e   :  { %v5389_v3 = vpop.f32.mrf.mxu2  ;;  %v887_v6 = vpop.f32.mrf.mxu3 }
 0x10f   :  { %v904_v11 = vadd.f32 %v887_v6, %v723_v4  ;;  %v803_v12 = vpop.f32.mrf.mxu0  ;;  %v832_v14 = vpop.f32.mrf.mxu1 }
 0x110   :  { %v905_v17 = vadd.f32 %v803_v12, %v724_v10  ;;  %v906_v18 = vadd.f32 %v832_v14, %v725_v13  ;;  %v5481_v13 = vld [vmem:[%s8099_s11 + $0x160] sm:$0xff] }
 0x111   :  { %920 = vst.msk [vmem:[#allocation2 + $0x58] sm:$0xff] %vm59_vm0, %v904_v11  ;;  %1300 = vmatpush.msrb.mxu2 %v5481_v13 }
 0x112   :  { %921 = vst [vmem:[#allocation2 + $0x60] sm:$0xf] %v905_v17 }
 0x113   :  { %922 = vst [vmem:[#allocation2 + $0x68] sm:$0xf] %v906_v18  ;;  %v469_v18 = vadd.f32 %v5309_v21, %v5266_v53  ;;  %v5512_v53 = vld [vmem:[%s8099_s11 + $0x158] sm:$0xff] }
 0x114   :  { %v5517_v21 = vld [vmem:[%s8099_s11 + $0x38] sm:$0xff]  ;;  %1301 = vmatpush.msrb.mxu2 %v5512_v53 }
 0x115   :  { %v682_v56 = vadd.f32 %v5331_v55, %v469_v18  ;;  %v685_v55 = vadd.f32 %v5335_v1, %v472_v20  ;;  %1265 = vmatpush.msrb.mxu0 %v5517_v21  ;;  %v5560_v1 = vld [vmem:[%s8099_s11 + $0xa8] sm:$0xff]  ;;  %v5582_v20 = vld [vmem:[%s8099_s11 + $0x20] sm:$0xff] }
 0x116   :  { %v861_v45 = vpop.f32.mrf.mxu2  ;;  %v890_v4 = vpop.f32.mrf.mxu3  ;;  %1302 = vmatpush.msrb.mxu2 %v5529_v25  ;;  %8140 = vst [vmem:[#allocation6_spill] sm:$0xff] %v5582_v20 }
 0x117   :  { %v907_v6 = vadd.f32 %v861_v45, %v726_v44  ;;  %v908_v10 = vadd.f32 %v890_v4, %v727_v46  ;;  %v1007_v11 = vpop.f32.mrf.mxu0  ;;  %v1036_v12 = vpop.f32.mrf.mxu1  ;;  %v5548_v44 = vld [vmem:[%s8099_s11 + $0x148] sm:$0xff]  ;;  %v895_v45 = vadd.f32 %v5353_v37, %v682_v56  ;;  %v898_v4 = vadd.f32 %v5357_v42, %v685_v55  ;;  %1266 = vmatpush.msrb.mxu0 %v5534_v26  ;;  %v5569_v37 = vld [vmem:[%s8099_s11 + $0x140] sm:$0xff] }
 0x118   :  { %v5483_v14 = vadd.f32 %v1007_v11, %v893_v54  ;;  %v5485_v17 = vadd.f32 %v1036_v12, %v894_v40  ;;  %v684_v54 = vadd.f32 %v5333_v62, %v471_v19  ;;  %v5543_v40 = vld [vmem:[%s8099_s11 + $0xb0] sm:$0xff]  ;;  %v5555_v62 = vld [vmem:[%s8099_s11 + $0x28] sm:$0xff]  ;;  %v5574_v12 = vld [vmem:[%s8099_s11 + $0x1b8] sm:$0xff]  ;;  %1303 = vmatpush.msrb.mxu2 %v5548_v44 }
 0x119   :  { %923 = vst [vmem:[#allocation2 + $0x70] sm:$0xf] %v907_v6  ;;  %1286 = vmatpush.msrb.mxu1 %v5543_v40  ;;  %v5587_v56 = vld [vmem:[%s8099_s11 + $0xa0] sm:$0xff]  ;;  %1325 = vmatpush.msrb.mxu3 %v5574_v12 }
 0x11a   :  { %924 = vst.msk [vmem:[#allocation2 + $0x78] sm:$0xf] %vm72_vm1, %v908_v10  ;;  %v897_v46 = vadd.f32 %v5355_v41, %v684_v54  ;;  %v928_v10 = vld [vmem:[#allocation2 + $0x18] sm:$0xff]  ;;  %1267 = vmatpush.msrb.mxu0 %v5555_v62  ;;  %1304 = vmatpush.msrb.mxu2 %v5569_v37 }
 0x11b   :  { %8139 = vst [vmem:[#allocation5_spill] sm:$0xff] %v5574_v12  ;;  %1287 = vmatpush.msrb.mxu1 %v5560_v1 }
 0x11c   :  { %1268 = vmatpush.msrb.mxu0 %v5582_v20 }
 0x11d   :  { %1288 = vmatpush.msrb.mxu1 %v5587_v56 }
 0x11e   :  { %v1065_v6 = vpop.f32.mrf.mxu2  ;;  %v1094_v11 = vpop.f32.mrf.mxu3 }
 0x11f   :  { %v5576_v41 = vadd.f32 %v1065_v6, %v895_v45  ;;  %v1109_v42 = vadd.f32 %v1094_v11, %v928_v10  ;;  %v1010_v18 = vpop.f32.mrf.mxu0  ;;  %v1039_v19 = vpop.f32.mrf.mxu1  ;;  %v5599_v45 = vld [vmem:[%s8099_s11 + $0x138] sm:$0xff]  ;;  %v5604_v6 = vld [vmem:[%s8099_s11 + $0x1b0] sm:$0xff]  ;;  %v475_v11 = vadd.f32 %v5318_v31, %v5282_v63 }
 0x120   :  { %v5590_v54 = vadd.f32 %v1010_v18, %v897_v46  ;;  %v5592_v55 = vadd.f32 %v1039_v19, %v898_v4  ;;  %8141 = vst [vmem:[#allocation7_spill] sm:$0xff] %v5604_v6  ;;  %v473_v46 = vadd.f32 %v5316_v27, %v5280_v60  ;;  %v5612_v4 = vld [vmem:[%s8099_s11 + $0x18] sm:$0xff]  ;;  %1326 = vmatpush.msrb.mxu3 %v5604_v6  ;;  %v5630_v27 = vld [vmem:[%s8099_s11 + $0x130] sm:$0xff]  ;;  %v5635_v18 = vld [vmem:[%s8099_s11 + $0x1a8] sm:$0xff] }
 0x121   :  { %8142 = vst [vmem:[#allocation8_spill] sm:$0xff] %v5612_v4  ;;  %v5617_v10 = vld [vmem:[%s8099_s11 + $0x98] sm:$0xff]  ;;  %v476_v60 = vadd.f32 %v5320_v33, %v5284_v0  ;;  %1305 = vmatpush.msrb.mxu2 %v5599_v45  ;;  %v5642_v0 = vld [vmem:[%s8099_s11 + $0x10] sm:$0xff]  ;;  %v5653_v33 = vld [vmem:[%s8099_s11 + $0x1a0] sm:$0xff]  ;;  %1269 = vmatpush.msrb.mxu0 %v5612_v4 }
 0x122   :  { %1125 = vst.msk [vmem:[#allocation2 + $0x18] sm:$0xff] %vm59_vm0, %v1109_v42  ;;  %v686_v63 = vadd.f32 %v5338_v2, %v473_v46  ;;  %v5647_v31 = vld [vmem:[%s8099_s11 + $0x90] sm:$0xff]  ;;  %1327 = vmatpush.msrb.mxu3 %v5635_v18  ;;  %v688_v2 = vadd.f32 %v5340_v7, %v475_v11  ;;  %1289 = vmatpush.msrb.mxu1 %v5617_v10  ;;  %v5662_v19 = vld [vmem:[%s8099_s11 + $0x128] sm:$0xff]  ;;  %v5667_v46 = vld [vmem:[%s8099_s11 + $0x198] sm:$0xff] }
 0x123   :  { %8143 = vst [vmem:[#allocation9_spill] sm:$0xff] %v5635_v18  ;;  %v689_v42 = vadd.f32 %v5342_v8, %v476_v60  ;;  %1306 = vmatpush.msrb.mxu2 %v5630_v27  ;;  %v5674_v7 = vld [vmem:[%s8099_s11 + $0x8] sm:$0xff]  ;;  %1270 = vmatpush.msrb.mxu0 %v5642_v0  ;;  %v5689_v6 = vld [vmem:[%s8099_s11 + $0x120] sm:$0xff] }
 0x124   :  { %8144 = vst [vmem:[#allocation10_spill] sm:$0xff] %v5653_v33  ;;  %v899_v32 = vadd.f32 %v5360_v43, %v686_v63  ;;  %v5679_v8 = vld [vmem:[%s8099_s11 + $0x88] sm:$0xff]  ;;  %1328 = vmatpush.msrb.mxu3 %v5653_v33  ;;  %v901_v11 = vadd.f32 %v5362_v47, %v688_v2  ;;  %v932_v43 = vld [vmem:[#allocation2 + $0x38] sm:$0xff]  ;;  %1290 = vmatpush.msrb.mxu1 %v5647_v31  ;;  %v5697_v47 = vld [vmem:[%s8099_s11] sm:$0xff] }
 0x125   :  { %8145 = vst [vmem:[#allocation11_spill] sm:$0xff] %v5667_v46  ;;  %v902_v60 = vadd.f32 %v5364_v48, %v689_v42  ;;  %1307 = vmatpush.msrb.mxu2 %v5662_v19  ;;  %v5702_v48 = vld [vmem:[%s8099_s11 + $0x80] sm:$0xff]  ;;  %1271 = vmatpush.msrb.mxu0 %v5674_v7  ;;  %v477_v42 = vadd.f32 %v5323_v34, %v5294_v5  ;;  %v5732_v5 = vld [vmem:[%s8099_s11 + $0x190] sm:$0xff]  ;;  %v5739_v34 = vld [vmem:[%s8099_s11 + $0x108] sm:$0xff] }
 0x126   :  { %8146 = vst [vmem:[#allocation12_spill] sm:$0xff] %v5674_v7  ;;  %v1068_v18 = vpop.f32.mrf.mxu2  ;;  %v1097_v63 = vpop.f32.mrf.mxu3  ;;  %1329 = vmatpush.msrb.mxu3 %v5667_v46  ;;  %1291 = vmatpush.msrb.mxu1 %v5679_v8  ;;  %v938_v46 = vld [vmem:[#allocation2 + $0x68] sm:$0xf] }
 0x127   :  { %v5691_v12 = vadd.f32 %v1068_v18, %v899_v32  ;;  %v1113_v4 = vadd.f32 %v1097_v63, %v932_v43  ;;  %v1013_v33 = vpop.f32.mrf.mxu0  ;;  %v1042_v20 = vpop.f32.mrf.mxu1  ;;  %8148 = vst [vmem:[#allocation14_spill] sm:$0xff] %v5697_v47  ;;  %v5714_v18 = vld [vmem:[%s8099_s11 + $0x118] sm:$0xff]  ;;  %1308 = vmatpush.msrb.mxu2 %v5689_v6  ;;  %1272 = vmatpush.msrb.mxu0 %v5697_v47  ;;  %v5758_v63 = vld [vmem:[%s8099_s11 + $0x100] sm:$0xff] }
 0x128   :  { %v5705_v2 = vadd.f32 %v1013_v33, %v901_v11  ;;  %v5707_v32 = vadd.f32 %v1042_v20, %v902_v60  ;;  %1292 = vmatpush.msrb.mxu1 %v5702_v48  ;;  %v690_v20 = vadd.f32 %v5345_v9, %v477_v42  ;;  %v5727_v33 = vld [vmem:[%s8099_s11 + $0x110] sm:$0xff]  ;;  %8149 = vst [vmem:[#allocation15_spill] sm:$0xff] %v5732_v5  ;;  %v5744_v9 = vld [vmem:[%s8099_s11 + $0x188] sm:$0xff]  ;;  %v936_v60 = vld [vmem:[#allocation2 + $0x58] sm:$0xff] }
 0x129   :  { %8147 = vst [vmem:[#allocation13_spill] sm:$0xff] %v5691_v12  ;;  %1309 = vmatpush.msrb.mxu2 %v5714_v18  ;;  %1330 = vmatpush.msrb.mxu3 %v5732_v5 }
 0x12a   :  { %1129 = vst.msk [vmem:[#allocation2 + $0x38] sm:$0xff] %vm59_vm0, %v1113_v4  ;;  %1528 = vmatpush.msra.mxu1 %v5375_v58  ;;  %v903_v4 = vadd.f32 %v5389_v3, %v690_v20  ;;  %v5751_v58 = vld [vmem:[%s8099_s11 + $0x180] sm:$0xff] }
 0x12b   :  { %1310 = vmatpush.msrb.mxu2 %v5727_v33  ;;  %1331 = vmatpush.msrb.mxu3 %v5744_v9  ;;  %v937_v20 = vld [vmem:[#allocation2 + $0x60] sm:$0xf] }
 0x12c   :  { %1529 = vmatpush.msra.mxu1 %v5387_v61 }
 0x12d   :  { %1311 = vmatpush.msrb.mxu2 %v5739_v34  ;;  %1332 = vmatpush.msrb.mxu3 %v5751_v58 }
 0x12e   :  { %v1071_v11 = vpop.f32.mrf.mxu2  ;;  %v1100_v43 = vpop.f32.mrf.mxu3  ;;  %1530 = vmatpush.msra.mxu1 %v5401_v16 }
 0x12f   :  { %v5760_v3 = vadd.f32 %v1071_v11, %v903_v4  ;;  %v1117_v42 = vadd.f32 %v1100_v43, %v936_v60  ;;  %v1016_v5 = vpop.f32.mrf.mxu0  ;;  %v1045_v47 = vpop.f32.mrf.mxu1  ;;  %1312 = vmatpush.msrb.mxu2 %v5758_v63  ;;  %v939_v4 = vld [vmem:[#allocation2 + $0x70] sm:$0xf]  ;;  %v940_v60 = vld [vmem:[#allocation2 + $0x78] sm:$0xf] }
 0x130   :  { %v1118_v61 = vadd.f32 %v1016_v5, %v937_v20  ;;  %v1119_v7 = vadd.f32 %v1045_v47, %v938_v46  ;;  %1531 = vmatpush.msra.mxu1 %v5414_v23  ;;  %v1154_v47 = vadd.f32 %v5590_v54, %v5483_v14  ;;  %v1165_v23 = vadd.f32 %v5592_v55, %v5485_v17  ;;  %v5787_v20 = vld [vmem:[#allocation2 + $0x18] sm:$0xff] }
 0x131   :  { %1133 = vst.msk [vmem:[#allocation2 + $0x58] sm:$0xff] %vm59_vm0, %v1117_v42 }
 0x132   :  { %1134 = vst [vmem:[#allocation2 + $0x60] sm:$0xf] %v1118_v61  ;;  %1532 = vmatpush.msra.mxu1 %v5436_v49  ;;  %v5775_v49 = vld [vmem:[#allocation2 + $0x38] sm:$0xff]  ;;  %v1166_v42 = vadd.f32 %v1165_v23, %v5707_v32 }
 0x133   :  { %1135 = vst [vmem:[#allocation2 + $0x68] sm:$0xf] %v1119_v7  ;;  %v1155_v7 = vadd.f32 %v1154_v47, %v5705_v2 }
 0x134   :  { %1533 = vmatpush.msra.mxu1 %v5455_v39  ;;  %8150 = vst [vmem:[#allocation16_spill] sm:$0xff] %v5775_v49 }
 0x135   :  { %8151 = vst [vmem:[#allocation17_spill] sm:$0xff] %v5787_v20 }
 0x136   :  { %v1074_v11 = vpop.f32.mrf.mxu2  ;;  %v1103_v16 = vpop.f32.mrf.mxu3  ;;  %1534 = vmatpush.msra.mxu1 %v5476_v36 }
 0x137   :  { %v1120_v5 = vadd.f32 %v1074_v11, %v939_v4  ;;  %v1121_v46 = vadd.f32 %v1103_v16, %v940_v60  ;;  %v1186_v11 = vsel %vm59_vm0, %v5775_v49, 0.0 }
 0x138   :  { %1535 = vmatpush.msra.mxu1 %v5500_v29  ;;  %v5789_v61 = vld [vmem:[#allocation2 + $0x58] sm:$0xff] }
 0x139   :  { %1136 = vst [vmem:[#allocation2 + $0x70] sm:$0xf] %v1120_v5  ;;  %v5779_v39 = vld [vmem:[#allocation2 + $0x60] sm:$0xf]  ;;  %v1175_v5 = vadd.f32 %v5691_v12, %v5576_v41 }
 0x13a   :  { %1137 = vst.msk [vmem:[#allocation2 + $0x78] sm:$0xf] %vm72_vm1, %v1121_v46  ;;  %v1157_v36 = vsel %vm1156_vm2, %v5779_v39, 0.0  ;;  %v5784_v43 = vld [vmem:[#allocation2 + $0x68] sm:$0xf]  ;;  %1536 = vmatpush.msra.mxu1 %v5524_v57  ;;  %v1185_v46 = vsel %vm59_vm0, %v5787_v20, 0.0 }
 0x13b   :  { %8152 = vst [vmem:[#allocation18_spill] sm:$0xff] %v5789_v61  ;;  %v1158_v29 = vadd.f32 %v1157_v36, %v1155_v7  ;;  %v1167_v4 = vsel %vm1156_vm2, %v5784_v43, 0.0  ;;  %v1188_v57 = vsel %vm59_vm0, %v5789_v61, 0.0  ;;  %v1187_v23 = vadd.f32 %v1186_v11, %v1185_v46 }
 0x13c   :  { %v1168_v60 = vadd.f32 %v1167_v4, %v1166_v42  ;;  %1537 = vmatpush.msra.mxu1 %v5543_v40  ;;  %v1176_v42 = vadd.f32 %v1175_v5, %v5760_v3 }
 0x13d   :  { %v1159_v16 = vrot.slane %v1158_v29, 4  ;;  %v1189_v12 = vadd.f32 %v1188_v57, %v1187_v23 }
 0x13e   :  { %v1169_v47 = vrot.slane %v1168_v60, 4  ;;  %1538 = vmatpush.msra.mxu1 %v5560_v1 }
 0x13f   :  { %v1160_v7 = vadd.f32 %v1159_v16, %v1158_v29 }
 0x140   :  { %v5804_v36 = vld [vmem:[#allocation2 + $0x70] sm:$0xf]  ;;  %v1170_v40 = vadd.f32 %v1169_v47, %v1168_v60  ;;  %1539 = vmatpush.msra.mxu1 %v5587_v56 }
 0x141   :  { %8153 = vst [vmem:[#allocation19_spill] sm:$0xff] %v5804_v36  ;;  %v1177_v4 = vsel %vm1156_vm2, %v5804_v36, 0.0  ;;  %v5809_v49 = vld [vmem:[#allocation2 + $0x78] sm:$0xf]  ;;  %v1161_v20 = vrot.slane %v1160_v7, 2 }
 0x142   :  { %8154 = vst [vmem:[#allocation20_spill] sm:$0xff] %v5809_v49  ;;  %v1178_v61 = vadd.f32 %v1177_v4, %v1176_v42  ;;  %v1190_v11 = vsel %vm72_vm1, %v5809_v49, 0.0  ;;  %v1171_v1 = vrot.slane %v1170_v40, 2  ;;  %1540 = vmatpush.msra.mxu1 %v5617_v10 }
 0x143   :  { %v1191_v29 = vadd.f32 %v1190_v11, %v1189_v12  ;;  %v1162_v16 = vadd.f32 %v1161_v20, %v1160_v7 }
 0x144   :  { %v1179_v5 = vrot.slane %v1178_v61, 4  ;;  %v1172_v60 = vadd.f32 %v1171_v1, %v1170_v40  ;;  %1541 = vmatpush.msra.mxu1 %v5647_v31 }
 0x145   :  { %v1192_v46 = vrot.slane %v1191_v29, 4  ;;  %v1163_v47 = vrot.slane %v1162_v16, 1 }
 0x146   :  { %v1180_v36 = vadd.f32 %v1179_v5, %v1178_v61  ;;  %v1173_v57 = vrot.slane %v1172_v60, 1  ;;  %1542 = vmatpush.msra.mxu1 %v5679_v8  ;;  %v1338_v8 = vld [vmem:[%s8100_s12] sm:$0xff]  ;;  %v5825_v61 = vld [vmem:[%s8100_s12 + $0x8] sm:$0xff]  ;;  %v8165_v5 = vld [vmem:[#allocation13_spill] sm:$0xff] }
 0x147   :  { %v1193_v23 = vadd.f32 %v1192_v46, %v1191_v29  ;;  %v1164_v56 = vadd.f32 %v1163_v47, %v1162_v16  ;;  %1361 = vmatpush.msra.mxu0 %v1338_v8  ;;  %1381 = vmatpush.msra.mxu3 %v5825_v61 }
 0x148   :  { %v1181_v42 = vrot.slane %v1180_v36, 2  ;;  %v1174_v4 = vadd.f32 %v1173_v57, %v1172_v60  ;;  %1543 = vmatpush.msra.mxu1 %v5702_v48  ;;  %v1340_v48 = vld [vmem:[%s8100_s12 + $0x10] sm:$0xff] }
 0x149   :  { %v1194_v49 = vrot.slane %v1193_v23, 2  ;;  %1273 = vmatmul.f32.vlgmr.msrb.gmra.mxu0 %v1164_v56  ;;  %1401 = vmatpush.msra.mxu2 %v1340_v48 }
 0x14a   :  { %v1182_v12 = vadd.f32 %v1181_v42, %v1180_v36  ;;  %1293 = vmatmul.f32.vlgmr.msrb.gmra.mxu1 %v1174_v4  ;;  %1508 = vmatpush.msrb.mxu0 %v5370_v51 }
 0x14b   :  { %v1195_v10 = vadd.f32 %v1194_v49, %v1193_v23  ;;  %v1341_v49 = vld [vmem:[%s8100_s12 + $0x18] sm:$0xff] }
 0x14c   :  { %v1183_v20 = vrot.slane %v1182_v12, 1  ;;  %1509 = vmatpush.msrb.mxu0 %v5382_v59  ;;  %1678 = vmatpush.msrb.mxu1 %v1341_v49 }
 0x14d   :  { %v1196_v7 = vrot.slane %v1195_v10, 1 }
 0x14e   :  { %v1184_v40 = vadd.f32 %v1183_v20, %v1182_v12  ;;  %1510 = vmatpush.msrb.mxu0 %v5396_v15  ;;  %v8155_v15 = vld [vmem:[#allocation6_spill] sm:$0xff] }
 0x14f   :  { %v1197_v31 = vadd.f32 %v1196_v7, %v1195_v10 }
 0x150   :  { %1313 = vmatmul.f32.vlgmr.msrb.gmra.mxu2 %v1184_v40  ;;  %1511 = vmatpush.msrb.mxu0 %v5409_v22 }
 0x151   :  { %4291 = vmatmul.msk.f32.vlgmr.msrb.gmra.mxu3 %vm59_vm0, %v1197_v31  ;;  %1548 = vmatpush.msrb.mxu2 %v5419_v24  ;;  %v8156_v24 = vld [vmem:[#allocation8_spill] sm:$0xff] }
 0x152   :  { %1421 = vmatpush.msrb.mxu3 %v1341_v49  ;;  %1512 = vmatpush.msrb.mxu0 %v5431_v30 }
 0x153   :  { %1549 = vmatpush.msrb.mxu2 %v5441_v50 }
 0x154   :  { %1513 = vmatpush.msrb.mxu0 %v5450_v38 }
 0x155   :  { %1550 = vmatpush.msrb.mxu2 %v5460_v52 }
 0x156   :  { %1514 = vmatpush.msrb.mxu0 %v5471_v35  ;;  %v8157_v35 = vld [vmem:[#allocation12_spill] sm:$0xff] }
 0x157   :  { %1551 = vmatpush.msrb.mxu2 %v5481_v13 }
 0x158   :  { %1515 = vmatpush.msrb.mxu0 %v5495_v28  ;;  %v8158_v28 = vld [vmem:[#allocation14_spill] sm:$0xff] }
 0x159   :  { %1552 = vmatpush.msrb.mxu2 %v5512_v53  ;;  %v8159_v53 = vld [vmem:[#allocation5_spill] sm:$0xff] }
 0x15a   :  { %1516 = vmatpush.msrb.mxu0 %v5517_v21  ;;  %v8160_v21 = vld [vmem:[#allocation7_spill] sm:$0xff] }
 0x15b   :  { %1553 = vmatpush.msrb.mxu2 %v5529_v25  ;;  %v8161_v25 = vld [vmem:[#allocation9_spill] sm:$0xff] }
 0x15c   :  { %1517 = vmatpush.msrb.mxu0 %v5534_v26  ;;  %v8162_v26 = vld [vmem:[#allocation10_spill] sm:$0xff] }
 0x15d   :  { %1554 = vmatpush.msrb.mxu2 %v5548_v44  ;;  %v8163_v44 = vld [vmem:[#allocation11_spill] sm:$0xff] }
 0x15e   :  { %1518 = vmatpush.msrb.mxu0 %v5555_v62  ;;  %v8164_v62 = vld [vmem:[#allocation15_spill] sm:$0xff] }
 0x15f   :  { %1555 = vmatpush.msrb.mxu2 %v5569_v37 }
 0x160   :  { %1519 = vmatpush.msrb.mxu0 %v8155_v15  ;;  %v8168_v15 = vld [vmem:[#allocation16_spill] sm:$0xff] }
 0x161   :  { %1556 = vmatpush.msrb.mxu2 %v5599_v45 }
 0x162   :  { %1520 = vmatpush.msrb.mxu0 %v8156_v24  ;;  %v8169_v24 = vld [vmem:[#allocation18_spill] sm:$0xff] }
 0x163   :  { %1557 = vmatpush.msrb.mxu2 %v5630_v27 }
 0x164   :  { %1521 = vmatpush.msrb.mxu0 %v5642_v0 }
 0x165   :  { %1558 = vmatpush.msrb.mxu2 %v5662_v19 }
 0x166   :  { %1522 = vmatpush.msrb.mxu0 %v8157_v35 }
 0x167   :  { %1559 = vmatpush.msrb.mxu2 %v5689_v6 }
 0x168   :  { %1523 = vmatpush.msrb.mxu0 %v8158_v28 }
 0x169   :  { %1560 = vmatpush.msrb.mxu2 %v5714_v18 }
 0x16b   :  { %1561 = vmatpush.msrb.mxu2 %v5727_v33 }
 0x16d   :  { %1562 = vmatpush.msrb.mxu2 %v5739_v34 }
 0x16f   :  { %1563 = vmatpush.msrb.mxu2 %v5758_v63 }
 0x1c6   :  { %v1274_v51 = vpop.f32.mrf.mxu0 }
 0x1c7   :  { %v1294_v59 = vpop.f32.mrf.mxu1 }
 0x1c8   :  { %v1295_v22 = vadd.f32 %v1294_v59, %v1274_v51  ;;  %v8167_v51 = vld [vmem:[#allocation17_spill] sm:$0xff] }
 0x1d3   :  { %v1314_v30 = vpop.f32.mrf.mxu2 }
 0x1d4   :  { %v1315_v50 = vadd.f32 %v1314_v30, %v1295_v22  ;;  %v1334_v38 = vpop.f32.mrf.mxu3 }
 0x1d6   :  { %v1335_v52 = vadd.f32 %v1334_v38, %v1315_v50  ;;  %v8170_v50 = vld [vmem:[#allocation20_spill] sm:$0xff] }
 0x1d8   :  { %v1337_v13 = vmul.f32 0.0006377551, %v1335_v52 }
 0x1da   :  { %4292 = vmatmul.msk.f32.vlgmr.msra.gmra.mxu0 %vm1342_vm3, %v1337_v13  ;;  %4293 = vmatmul.msk.f32.vlgmr.msra.gmra.mxu3 %vm1342_vm3, %v1337_v13 }
 0x1db   :  { %4294 = vmatmul.msk.f32.vlgmr.msra.gmra.mxu2 %vm1342_vm3, %v1337_v13  ;;  %1576 = vmatpush.msra.mxu3 %v8159_v53 }
 0x1dc   :  { %1658 = vmatpush.msra.mxu0 %v1340_v48 }
 0x1dd   :  { %1577 = vmatpush.msra.mxu3 %v8160_v21 }
 0x1df   :  { %1578 = vmatpush.msra.mxu3 %v8161_v25 }
 0x1e1   :  { %1579 = vmatpush.msra.mxu3 %v8162_v26 }
 0x1e2   :  { %4295 = vmatmul.msk.f32.vlgmr.msrb.gmra.mxu3 %vm1342_vm3, %v1337_v13 }
 0x1e3   :  { %1580 = vmatpush.msra.mxu3 %v8163_v44 }
 0x1e5   :  { %1581 = vmatpush.msra.mxu3 %v8164_v62 }
 0x1e7   :  { %1582 = vmatpush.msra.mxu3 %v5744_v9 }
 0x1e9   :  { %1583 = vmatpush.msra.mxu3 %v5751_v58 }
 0x1eb   :  { %1618 = vmatpush.msrb.mxu3 %v1338_v8 }
 0x257   :  { %v1363_v37 = vpop.f32.mrf.mxu0 }
 0x258   :  { %v1426_v45 = vperm.slane %v1363_v37, 0 }
 0x25a   :  { %v5879_v6 = vsub.f32 %v5483_v14, %v1426_v45  ;;  %v5882_v27 = vsub.f32 %v5590_v54, %v1426_v45  ;;  %v5885_v0 = vsub.f32 %v5705_v2, %v1426_v45  ;;  %v5888_v19 = vsub.f32 %v5779_v39, %v1426_v45 }
 0x25c   :  { %v1446_v18 = vmul.f32 %v5879_v6, %v5879_v6  ;;  %v1450_v33 = vmul.f32 %v5882_v27, %v5882_v27  ;;  %v1454_v14 = vmul.f32 %v5885_v0, %v5885_v0  ;;  %v1458_v2 = vmul.f32 %v5888_v19, %v5888_v19 }
 0x25d   :  { %v1383_v34 = vpop.f32.mrf.mxu3 }
 0x25e   :  { %v1462_v9 = vadd.f32 %v1450_v33, %v1446_v18  ;;  %v1427_v58 = vperm.slane %v1383_v34, 0  ;;  %v1403_v54 = vpop.f32.mrf.mxu2 }
 0x25f   :  { %v1428_v63 = vperm.slane %v1403_v54, 0 }
 0x260   :  { %v1463_v36 = vadd.f32 %v1462_v9, %v1454_v14  ;;  %v5899_v39 = vsub.f32 %v5485_v17, %v1427_v58  ;;  %v5902_v11 = vsub.f32 %v5592_v55, %v1427_v58  ;;  %v5905_v1 = vsub.f32 %v5707_v32, %v1427_v58  ;;  %v8166_v32 = vld [vmem:[#allocation19_spill] sm:$0xff] }
 0x261   :  { %v5908_v29 = vsub.f32 %v5784_v43, %v1427_v58  ;;  %v5911_v16 = vsub.f32 %v5576_v41, %v1428_v63  ;;  %v5914_v60 = vsub.f32 %v8165_v5, %v1428_v63  ;;  %v5917_v46 = vsub.f32 %v5760_v3, %v1428_v63 }
 0x262   :  { %v1447_v17 = vmul.f32 %v5899_v39, %v5899_v39  ;;  %v1451_v55 = vmul.f32 %v5902_v11, %v5902_v11  ;;  %v5924_v47 = vsub.f32 %v8166_v32, %v1428_v63  ;;  %v1464_v43 = vsel %vm1156_vm2, %v1458_v2, 0.0 }
 0x263   :  { %v1459_v41 = vmul.f32 %v5908_v29, %v5908_v29  ;;  %v1448_v57 = vmul.f32 %v5911_v16, %v5911_v16  ;;  %v1452_v3 = vmul.f32 %v5914_v60, %v5914_v60  ;;  %v1455_v23 = vmul.f32 %v5905_v1, %v5905_v1 }
 0x264   :  { %v1472_v56 = vadd.f32 %v1451_v55, %v1447_v17  ;;  %v1460_v42 = vmul.f32 %v5924_v47, %v5924_v47  ;;  %v1465_v4 = vadd.f32 %v1464_v43, %v1463_v36  ;;  %v1456_v12 = vmul.f32 %v5917_v46, %v5917_v46 }
 0x265   :  { %v1482_v10 = vadd.f32 %v1452_v3, %v1448_v57  ;;  %v1423_v20 = vpop.f32.mrf.mxu3  ;;  %v1474_v8 = vsel %vm1156_vm2, %v1459_v41, 0.0 }
 0x266   :  { %v1473_v7 = vadd.f32 %v1472_v56, %v1455_v23  ;;  %v1429_v40 = vperm.slane %v1423_v20, 0  ;;  %v1466_v31 = vrot.slane %v1465_v4, 4  ;;  %v1484_v49 = vsel %vm1156_vm2, %v1460_v42, 0.0 }
 0x267   :  { %v1483_v48 = vadd.f32 %v1482_v10, %v1456_v12 }
 0x268   :  { %v5942_v59 = vsub.f32 %v8167_v51, %v1429_v40  ;;  %v5945_v22 = vsub.f32 %v8168_v15, %v1429_v40  ;;  %v5948_v30 = vsub.f32 %v8169_v24, %v1429_v40  ;;  %v5951_v38 = vsub.f32 %v8170_v50, %v1429_v40  ;;  %v1845_v51 = vld [vmem:[%s8101_s3 + $0x2f0] sm:$0xff]  ;;  %v1843_v15 = vld [vmem:[%s8101_s3 + $0x2e0] sm:$0xff] }
 0x269   :  { %v1467_v52 = vadd.f32 %v1466_v31, %v1465_v4  ;;  %v1475_v35 = vadd.f32 %v1474_v8, %v1473_v7  ;;  %v1485_v13 = vadd.f32 %v1484_v49, %v1483_v48  ;;  %v1779_v24 = vld [vmem:[%s8101_s3 + $0xe0] sm:$0xff] }
 0x26a   :  { %v1449_v28 = vmul.f32 %v5942_v59, %v5942_v59  ;;  %v1453_v53 = vmul.f32 %v5945_v22, %v5945_v22  ;;  %v1457_v21 = vmul.f32 %v5948_v30, %v5948_v30  ;;  %v1461_v62 = vmul.f32 %v5951_v38, %v5951_v38 }
 0x26b   :  { %v1468_v25 = vrot.slane %v1467_v52, 2  ;;  %v1476_v26 = vrot.slane %v1475_v35, 4  ;;  %v1486_v44 = vrot.slane %v1485_v13, 4 }
 0x26c   :  { %v1492_v37 = vsel %vm59_vm0, %v1449_v28, 0.0  ;;  %v1493_v45 = vsel %vm59_vm0, %v1453_v53, 0.0  ;;  %v1495_v9 = vsel %vm59_vm0, %v1457_v21, 0.0  ;;  %v1497_v36 = vsel %vm72_vm1, %v1461_v62, 0.0  ;;  %v1839_v28 = vld [vmem:[%s8101_s3 + $0x2c0] sm:$0xff]  ;;  %v1861_v21 = vld [vmem:[%s8101_s3 + $0x370] sm:$0xff] }
 0x26d   :  { %v1494_v18 = vadd.f32 %v1493_v45, %v1492_v37  ;;  %v1469_v33 = vadd.f32 %v1468_v25, %v1467_v52  ;;  %v1477_v34 = vadd.f32 %v1476_v26, %v1475_v35  ;;  %v1487_v14 = vadd.f32 %v1486_v44, %v1485_v13  ;;  %v1841_v52 = vld [vmem:[%s8101_s3 + $0x2d0] sm:$0xff]  ;;  %v1775_v53 = vld [vmem:[%s8101_s3 + $0xc0] sm:$0xff] }
 0x26e   :  { %v1777_v35 = vld [vmem:[%s8101_s3 + $0xd0] sm:$0xff]  ;;  %v1859_v44 = vld [vmem:[%s8101_s3 + $0x360] sm:$0xff] }
 0x26f   :  { %v1496_v58 = vadd.f32 %v1495_v9, %v1494_v18  ;;  %v1470_v54 = vrot.slane %v1469_v33, 1  ;;  %v1478_v2 = vrot.slane %v1477_v34, 2  ;;  %v1488_v63 = vrot.slane %v1487_v14, 2  ;;  %v1837_v25 = vld [vmem:[%s8101_s3 + $0x2b0] sm:$0xff]  ;;  %v1835_v62 = vld [vmem:[%s8101_s3 + $0x2a0] sm:$0xff] }
 0x270   :  { %v1773_v26 = vld [vmem:[%s8101_s3 + $0xb0] sm:$0xff]  ;;  %v1771_v45 = vld [vmem:[%s8101_s3 + $0xa0] sm:$0xff] }
 0x271   :  { %v1498_v5 = vadd.f32 %v1497_v36, %v1496_v58  ;;  %v1471_v17 = vadd.f32 %v1470_v54, %v1469_v33  ;;  %v1479_v55 = vadd.f32 %v1478_v2, %v1477_v34  ;;  %v1489_v32 = vadd.f32 %v1488_v63, %v1487_v14  ;;  %v1857_v37 = vld [vmem:[%s8101_s3 + $0x350] sm:$0xff]  ;;  %v1855_v18 = vld [vmem:[%s8101_s3 + $0x340] sm:$0xff] }
 0x272   :  { %v1833_v33 = vld [vmem:[%s8101_s3 + $0x290] sm:$0xff]  ;;  %v1831_v9 = vld [vmem:[%s8101_s3 + $0x280] sm:$0xff] }
 0x273   :  { %v1499_v43 = vrot.slane %v1498_v5, 4  ;;  %1524 = vmatmul.f32.vlgmr.msrb.gmra.mxu0 %v1471_v17  ;;  %v1480_v41 = vrot.slane %v1479_v55, 1  ;;  %v1490_v57 = vrot.slane %v1489_v32, 1  ;;  %v1769_v34 = vld [vmem:[%s8101_s3 + $0x90] sm:$0xff]  ;;  %v1767_v54 = vld [vmem:[%s8101_s3 + $0x80] sm:$0xff] }
 0x274   :  { %1933 = vmatpush.msrb.mxu0 %v1845_v51  ;;  %v1829_v2 = vld [vmem:[%s8101_s3 + $0x270] sm:$0xff]  ;;  %v1799_v51 = vld [vmem:[%s8101_s3 + $0x180] sm:$0xff] }
 0x275   :  { %v1481_v3 = vadd.f32 %v1480_v41, %v1479_v55  ;;  %v1491_v23 = vadd.f32 %v1490_v57, %v1489_v32  ;;  %v1500_v56 = vadd.f32 %v1499_v43, %v1498_v5  ;;  %v1765_v36 = vld [vmem:[%s8101_s3 + $0x70] sm:$0xff]  ;;  %v1827_v5 = vld [vmem:[%s8101_s3 + $0x260] sm:$0xff] }
 0x276   :  { %1934 = vmatpush.msrb.mxu0 %v1843_v15  ;;  %v1825_v55 = vld [vmem:[%s8101_s3 + $0x250] sm:$0xff]  ;;  %v1823_v43 = vld [vmem:[%s8101_s3 + $0x240] sm:$0xff] }
 0x277   :  { %1544 = vmatmul.f32.vlgmr.msra.gmra.mxu1 %v1481_v3  ;;  %1564 = vmatmul.f32.vlgmr.msrb.gmra.mxu2 %v1491_v23  ;;  %v1501_v42 = vrot.slane %v1500_v56, 2  ;;  %v1813_v57 = vld [vmem:[%s8101_s3 + $0x1f0] sm:$0xff]  ;;  %v1811_v23 = vld [vmem:[%s8101_s3 + $0x1e0] sm:$0xff] }
 0x278   :  { %1935 = vmatpush.msrb.mxu0 %v1841_v52  ;;  %1970 = vmatpush.msra.mxu1 %v1861_v21  ;;  %v1817_v15 = vld [vmem:[%s8101_s3 + $0x210] sm:$0xff]  ;;  %v1815_v52 = vld [vmem:[%s8101_s3 + $0x200] sm:$0xff] }
 0x279   :  { %v1502_v4 = vadd.f32 %v1501_v42, %v1500_v56  ;;  %v1809_v56 = vld [vmem:[%s8101_s3 + $0x1d0] sm:$0xff]  ;;  %v1807_v42 = vld [vmem:[%s8101_s3 + $0x1c0] sm:$0xff] }
 0x27a   :  { %1936 = vmatpush.msrb.mxu0 %v1839_v28  ;;  %1971 = vmatpush.msra.mxu1 %v1859_v44  ;;  %v1795_v28 = vld [vmem:[%s8101_s3 + $0x160] sm:$0xff]  ;;  %v1753_v21 = vld [vmem:[%s8101_s3 + $0x10] sm:$0xff] }
 0x27b   :  { %v1503_v12 = vrot.slane %v1502_v4, 1  ;;  %v1751_v44 = vld [vmem:[%s8101_s3] sm:$0xff] }
 0x27c   :  { %1937 = vmatpush.msrb.mxu0 %v1837_v25  ;;  %1972 = vmatpush.msra.mxu1 %v1857_v37  ;;  %v1793_v25 = vld [vmem:[%s8101_s3 + $0x150] sm:$0xff]  ;;  %v1778_v37 = vld [vmem:[%s8101_s3 + $0xd8] sm:$0xff] }
 0x27d   :  { %v1504_v10 = vadd.f32 %v1503_v12, %v1502_v4  ;;  %v1805_v4 = vld [vmem:[%s8101_s3 + $0x1b0] sm:$0xff]  ;;  %v1763_v12 = vld [vmem:[%s8101_s3 + $0x60] sm:$0xff] }
 0x27e   :  { %1938 = vmatpush.msrb.mxu0 %v1835_v62  ;;  %1973 = vmatpush.msra.mxu1 %v1855_v18  ;;  %v1791_v62 = vld [vmem:[%s8101_s3 + $0x140] sm:$0xff]  ;;  %v1776_v18 = vld [vmem:[%s8101_s3 + $0xc8] sm:$0xff] }
 0x27f   :  { %4296 = vmatmul.msk.f32.vlgmr.msra.gmra.mxu3 %vm59_vm0, %v1504_v10  ;;  %v1803_v10 = vld [vmem:[%s8101_s3 + $0x1a0] sm:$0xff] }
 0x280   :  { %1638 = vmatpush.msra.mxu3 %v5825_v61  ;;  %v1781_v61 = vld [vmem:[%s8101_s3 + $0xf0] sm:$0xff]  ;;  %1939 = vmatpush.msrb.mxu0 %v1833_v33  ;;  %v1814_v33 = vld [vmem:[%s8101_s3 + $0x1f8] sm:$0xff] }
 0x281   :  { %1875 = vmatpush.msra.mxu2 %v1781_v61  ;;  %v1849_v61 = vld [vmem:[%s8101_s3 + $0x310] sm:$0xff] }
 0x282   :  { %1940 = vmatpush.msrb.mxu0 %v1831_v9  ;;  %v1812_v9 = vld [vmem:[%s8101_s3 + $0x1e8] sm:$0xff] }
 0x283   :  { %1876 = vmatpush.msra.mxu2 %v1779_v24  ;;  %v1757_v24 = vld [vmem:[%s8101_s3 + $0x30] sm:$0xff] }
 0x284   :  { %1941 = vmatpush.msrb.mxu0 %v1829_v2  ;;  %v1772_v2 = vld [vmem:[%s8101_s3 + $0xa8] sm:$0xff] }
 0x285   :  { %1877 = vmatpush.msra.mxu2 %v1777_v35  ;;  %v1847_v35 = vld [vmem:[%s8101_s3 + $0x300] sm:$0xff] }
 0x286   :  { %1942 = vmatpush.msrb.mxu0 %v1827_v5  ;;  %v1770_v5 = vld [vmem:[%s8101_s3 + $0x98] sm:$0xff] }
 0x287   :  { %1878 = vmatpush.msra.mxu2 %v1775_v53  ;;  %v1782_v53 = vld [vmem:[%s8101_s3 + $0xf8] sm:$0xff] }
 0x288   :  { %1943 = vmatpush.msrb.mxu0 %v1825_v55  ;;  %v1806_v55 = vld [vmem:[%s8101_s3 + $0x1b8] sm:$0xff] }
 0x289   :  { %1879 = vmatpush.msra.mxu2 %v1773_v26  ;;  %v1780_v26 = vld [vmem:[%s8101_s3 + $0xe8] sm:$0xff] }
 0x28a   :  { %1944 = vmatpush.msrb.mxu0 %v1823_v43  ;;  %v1804_v43 = vld [vmem:[%s8101_s3 + $0x1a8] sm:$0xff] }
 0x28b   :  { %1880 = vmatpush.msra.mxu2 %v1771_v45  ;;  %v1789_v45 = vld [vmem:[%s8101_s3 + $0x130] sm:$0xff] }
 0x28d   :  { %1881 = vmatpush.msra.mxu2 %v1769_v34  ;;  %v1787_v34 = vld [vmem:[%s8101_s3 + $0x120] sm:$0xff] }
 0x28f   :  { %1882 = vmatpush.msra.mxu2 %v1767_v54  ;;  %v1810_v54 = vld [vmem:[%s8101_s3 + $0x1d8] sm:$0xff] }
 0x291   :  { %1883 = vmatpush.msra.mxu2 %v1765_v36  ;;  %v1808_v36 = vld [vmem:[%s8101_s3 + $0x1c8] sm:$0xff] }
 0x293   :  { %1884 = vmatpush.msra.mxu2 %v1763_v12  ;;  %v1840_v12 = vld [vmem:[%s8101_s3 + $0x2c8] sm:$0xff] }
 0x2f0   :  { %v1525_v7 = vpop.f32.mrf.mxu0 }
 0x2f4   :  { %v1545_v20 = vpop.f32.mrf.mxu1 }
 0x2f5   :  { %v1546_v31 = vadd.f32 %v1545_v20, %v1525_v7  ;;  %v1821_v20 = vld [vmem:[%s8101_s3 + $0x230] sm:$0xff] }
 0x2f6   :  { %v1853_v7 = vld [vmem:[%s8101_s3 + $0x330] sm:$0xff]  ;;  %1945 = vmatpush.msrb.mxu0 %v1821_v20  ;;  %v1858_v20 = vld [vmem:[%s8101_s3 + $0x358] sm:$0xff] }
 0x2f7   :  { %1974 = vmatpush.msra.mxu1 %v1853_v7  ;;  %v1762_v7 = vld [vmem:[%s8101_s3 + $0x58] sm:$0xff] }
 0x2fa   :  { %v1565_v40 = vpop.f32.mrf.mxu2 }
 0x2fb   :  { %v1566_v8 = vadd.f32 %v1565_v40, %v1546_v31  ;;  %v1761_v40 = vld [vmem:[%s8101_s3 + $0x50] sm:$0xff] }
 0x2fc   :  { %v1801_v31 = vld [vmem:[%s8101_s3 + $0x190] sm:$0xff]  ;;  %1885 = vmatpush.msra.mxu2 %v1761_v40  ;;  %v1838_v40 = vld [vmem:[%s8101_s3 + $0x2b8] sm:$0xff] }
 0x302   :  { %v1585_v48 = vpop.f32.mrf.mxu3 }
 0x303   :  { %v1586_v49 = vadd.f32 %v1585_v48, %v1566_v8  ;;  %v1819_v8 = vld [vmem:[%s8101_s3 + $0x220] sm:$0xff] }
 0x304   :  { %v1851_v48 = vld [vmem:[%s8101_s3 + $0x320] sm:$0xff]  ;;  %1946 = vmatpush.msrb.mxu0 %v1819_v8  ;;  %v1856_v8 = vld [vmem:[%s8101_s3 + $0x348] sm:$0xff] }
 0x305   :  { %v1588_v50 = vmul.f32 0.0006377551, %v1586_v49  ;;  %v1759_v49 = vld [vmem:[%s8101_s3 + $0x40] sm:$0xff]  ;;  %1975 = vmatpush.msra.mxu1 %v1851_v48 }
 0x306   :  { %1886 = vmatpush.msra.mxu2 %v1759_v49  ;;  %1947 = vmatpush.msrb.mxu0 %v1817_v15  ;;  %v1760_v49 = vld [vmem:[%s8101_s3 + $0x48] sm:$0xff] }
 0x307   :  { %v1589_v13 = vadd.f32 0.0001, %v1588_v50  ;;  %v1797_v50 = vld [vmem:[%s8101_s3 + $0x170] sm:$0xff]  ;;  %1976 = vmatpush.msra.mxu1 %v1849_v61  ;;  %v1796_v61 = vld [vmem:[%s8101_s3 + $0x168] sm:$0xff] }
 0x308   :  { %1887 = vmatpush.msra.mxu2 %v1757_v24  ;;  %1948 = vmatpush.msrb.mxu0 %v1815_v52  ;;  %v1836_v52 = vld [vmem:[%s8101_s3 + $0x2a8] sm:$0xff] }
 0x309   :  { %4553 = vrsqrt.f32 %v1589_v13  ;;  %vm1596_vm5 = vweird.f32 %v1589_v13  ;;  %1977 = vmatpush.msra.mxu1 %v1847_v35 }
 0x30f   :  { %v4554_v14 = vpop.eup %4553 }
 0x310   :  { %v1591_v58 = vmul.f32 %v4554_v14, %v1589_v13  ;;  %vm1597_vm4 = vweird.f32 %v4554_v14  ;;  %v1755_v13 = vld [vmem:[%s8101_s3 + $0x20] sm:$0xff] }
 0x311   :  { %vm1598_vm6 = vmor %vm1596_vm5, %vm1597_vm4  ;;  %1888 = vmatpush.msra.mxu2 %v1755_v13  ;;  %v1854_v13 = vld [vmem:[%s8101_s3 + $0x338] sm:$0xff] }
 0x312   :  { %v1592_v63 = vmul.f32 %v4554_v14, %v1591_v58  ;;  %v1785_v58 = vld [vmem:[%s8101_s3 + $0x110] sm:$0xff] }
 0x313   :  { %1889 = vmatpush.msra.mxu2 %v1753_v21  ;;  %v1756_v21 = vld [vmem:[%s8101_s3 + $0x28] sm:$0xff] }
 0x314   :  { %v1593_v17 = vmul.f32 0.5, %v1592_v63  ;;  %v1783_v63 = vld [vmem:[%s8101_s3 + $0x100] sm:$0xff] }
 0x315   :  { %1890 = vmatpush.msra.mxu2 %v1751_v44 }
 0x316   :  { %v1594_v32 = vsub.f32 1.5, %v1593_v17  ;;  %v1846_v17 = vld [vmem:[%s8101_s3 + $0x2f8] sm:$0xff] }
 0x317   :  { %2020 = vmatpush.msrb.mxu2 %v1814_v33  ;;  %v1754_v33 = vld [vmem:[%s8101_s3 + $0x18] sm:$0xff] }
 0x318   :  { %v1595_v41 = vmul.f32 %v4554_v14, %v1594_v32  ;;  %v1768_v32 = vld [vmem:[%s8101_s3 + $0x88] sm:$0xff] }
 0x319   :  { %2021 = vmatpush.msrb.mxu2 %v1812_v9 }
 0x31a   :  { %v1599_v3 = vsel %vm1598_vm6, %v4554_v14, %v1595_v41  ;;  %v1774_v14 = vld [vmem:[%s8101_s3 + $0xb8] sm:$0xff]  ;;  %v1844_v41 = vld [vmem:[%s8101_s3 + $0x2e8] sm:$0xff] }
 0x31b   :  { %4297 = vmatmul.msk.f32.vlgmr.msrb.gmra.mxu3 %vm1342_vm3, %v1599_v3  ;;  %4299 = vmatmul.msk.f32.vlgmr.msra.gmra.mxu0 %vm1342_vm3, %v1599_v3 }
 0x31c   :  { %4300 = vmatmul.msk.f32.vlgmr.msrb.gmra.mxu1 %vm1342_vm3, %v1599_v3  ;;  %1904 = vmatpush.msrb.mxu3 %v1813_v57  ;;  %v1766_v57 = vld [vmem:[%s8101_s3 + $0x78] sm:$0xff] }
 0x31d   :  { %1991 = vmatpush.msrb.mxu1 %v1782_v53  ;;  %2022 = vmatpush.msrb.mxu2 %v1810_v54 }
 0x31e   :  { %1905 = vmatpush.msrb.mxu3 %v1811_v23  ;;  %v1802_v23 = vld [vmem:[%s8101_s3 + $0x198] sm:$0xff] }
 0x31f   :  { %1992 = vmatpush.msrb.mxu1 %v1780_v26  ;;  %2023 = vmatpush.msrb.mxu2 %v1808_v36  ;;  %v1792_v26 = vld [vmem:[%s8101_s3 + $0x148] sm:$0xff] }
 0x320   :  { %1906 = vmatpush.msrb.mxu3 %v1809_v56  ;;  %v1842_v56 = vld [vmem:[%s8101_s3 + $0x2d8] sm:$0xff]  ;;  %v1788_v36 = vld [vmem:[%s8101_s3 + $0x128] sm:$0xff] }
 0x321   :  { %1993 = vmatpush.msrb.mxu1 %v1778_v37  ;;  %2024 = vmatpush.msrb.mxu2 %v1806_v55 }
 0x322   :  { %1907 = vmatpush.msrb.mxu3 %v1807_v42  ;;  %v1860_v42 = vld [vmem:[%s8101_s3 + $0x368] sm:$0xff] }
 0x323   :  { %4298 = vmatmul.msk.f32.vlgmr.msra.gmra.mxu3 %vm1342_vm3, %v1599_v3  ;;  %1994 = vmatpush.msrb.mxu1 %v1776_v18  ;;  %v1862_v3 = vld [vmem:[%s8101_s3 + $0x378] sm:$0xff] }
 0x324   :  { %1908 = vmatpush.msrb.mxu3 %v1805_v4  ;;  %2025 = vmatpush.msrb.mxu2 %v1804_v43  ;;  %v1764_v4 = vld [vmem:[%s8101_s3 + $0x68] sm:$0xff]  ;;  %v1786_v43 = vld [vmem:[%s8101_s3 + $0x118] sm:$0xff] }
 0x325   :  { %1995 = vmatpush.msrb.mxu1 %v1774_v14  ;;  %2086 = vmatpush.msra.mxu0 %v1862_v3  ;;  %v1826_v3 = vld [vmem:[%s8101_s3 + $0x258] sm:$0xff] }
 0x326   :  { %1909 = vmatpush.msrb.mxu3 %v1803_v10  ;;  %v1800_v10 = vld [vmem:[%s8101_s3 + $0x188] sm:$0xff]  ;;  %2026 = vmatpush.msrb.mxu2 %v1802_v23 }
 0x327   :  { %1996 = vmatpush.msrb.mxu1 %v1772_v2  ;;  %2087 = vmatpush.msra.mxu0 %v1860_v42  ;;  %v1830_v2 = vld [vmem:[%s8101_s3 + $0x278] sm:$0xff] }
 0x328   :  { %1910 = vmatpush.msrb.mxu3 %v1801_v31  ;;  %v1798_v31 = vld [vmem:[%s8101_s3 + $0x178] sm:$0xff]  ;;  %2027 = vmatpush.msrb.mxu2 %v1800_v10 }
 0x329   :  { %1997 = vmatpush.msrb.mxu1 %v1770_v5  ;;  %2088 = vmatpush.msra.mxu0 %v1858_v20 }
 0x32a   :  { %1911 = vmatpush.msrb.mxu3 %v1799_v51  ;;  %2028 = vmatpush.msrb.mxu2 %v1798_v31 }
 0x32b   :  { %1998 = vmatpush.msrb.mxu1 %v1768_v32  ;;  %2089 = vmatpush.msra.mxu0 %v1856_v8  ;;  %v2137_v32 = vld [vmem:[%s8102_s4 + $0xf0] sm:$0xff]  ;;  %v1822_v8 = vld [vmem:[%s8101_s3 + $0x238] sm:$0xff] }
 0x32c   :  { %1912 = vmatpush.msrb.mxu3 %v1797_v50  ;;  %v1758_v50 = vld [vmem:[%s8101_s3 + $0x38] sm:$0xff]  ;;  %2029 = vmatpush.msrb.mxu2 %v1796_v61 }
 0x32d   :  { %1999 = vmatpush.msrb.mxu1 %v1766_v57  ;;  %2090 = vmatpush.msra.mxu0 %v1854_v13 }
 0x32e   :  { %1913 = vmatpush.msrb.mxu3 %v1795_v28  ;;  %v1794_v28 = vld [vmem:[%s8101_s3 + $0x158] sm:$0xff] }
 0x32f   :  { %2000 = vmatpush.msrb.mxu1 %v1764_v4  ;;  %2030 = vmatpush.msrb.mxu2 %v1794_v28 }
 0x330   :  { %1914 = vmatpush.msrb.mxu3 %v1793_v25 }
 0x331   :  { %2001 = vmatpush.msrb.mxu1 %v1762_v7  ;;  %2031 = vmatpush.msrb.mxu2 %v1792_v26  ;;  %v2169_v7 = vld [vmem:[%s8102_s4 + $0x1f0] sm:$0xff] }
 0x332   :  { %1915 = vmatpush.msrb.mxu3 %v1791_v62  ;;  %v1852_v62 = vld [vmem:[%s8101_s3 + $0x328] sm:$0xff] }
 0x333   :  { %2002 = vmatpush.msrb.mxu1 %v1760_v49  ;;  %2091 = vmatpush.msra.mxu0 %v1852_v62  ;;  %v2127_v62 = vld [vmem:[%s8102_s4 + $0xa0] sm:$0xff] }
 0x334   :  { %1916 = vmatpush.msrb.mxu3 %v1789_v45 }
 0x335   :  { %2003 = vmatpush.msrb.mxu1 %v1758_v50  ;;  %v2131_v50 = vld [vmem:[%s8102_s4 + $0xc0] sm:$0xff] }
 0x336   :  { %1917 = vmatpush.msrb.mxu3 %v1787_v34  ;;  %v1832_v34 = vld [vmem:[%s8101_s3 + $0x288] sm:$0xff] }
 0x337   :  { %2004 = vmatpush.msrb.mxu1 %v1756_v21 }
 0x338   :  { %1918 = vmatpush.msrb.mxu3 %v1785_v58  ;;  %v1790_v58 = vld [vmem:[%s8101_s3 + $0x138] sm:$0xff] }
 0x339   :  { %2005 = vmatpush.msrb.mxu1 %v1754_v33  ;;  %2032 = vmatpush.msrb.mxu2 %v1790_v58  ;;  %v2125_v58 = vld [vmem:[%s8102_s4 + $0x90] sm:$0xff] }
 0x33a   :  { %1919 = vmatpush.msrb.mxu3 %v1783_v63  ;;  %v1848_v63 = vld [vmem:[%s8101_s3 + $0x308] sm:$0xff] }
 0x33b   :  { %2033 = vmatpush.msrb.mxu2 %v1788_v36 }
 0x33c   :  { %2049 = vmatpush.msra.mxu3 %v1846_v17  ;;  %v1828_v17 = vld [vmem:[%s8101_s3 + $0x268] sm:$0xff] }
 0x33d   :  { %2034 = vmatpush.msrb.mxu2 %v1786_v43 }
 0x33e   :  { %2050 = vmatpush.msra.mxu3 %v1844_v41 }
 0x340   :  { %2051 = vmatpush.msra.mxu3 %v1842_v56 }
 0x342   :  { %2052 = vmatpush.msra.mxu3 %v1840_v12  ;;  %v1784_v12 = vld [vmem:[%s8101_s3 + $0x108] sm:$0xff] }
 0x343   :  { %2035 = vmatpush.msrb.mxu2 %v1784_v12  ;;  %v2193_v12 = vld [vmem:[%s8102_s4 + $0x2b0] sm:$0xff] }
 0x344   :  { %2053 = vmatpush.msra.mxu3 %v1838_v40 }
 0x346   :  { %2054 = vmatpush.msra.mxu3 %v1836_v52  ;;  %v1820_v52 = vld [vmem:[%s8101_s3 + $0x228] sm:$0xff] }
 0x398   :  { %v1660_v48 = vpop.f32.mrf.mxu0 }
 0x399   :  { %v6229_v51 = vperm.slane %v1660_v48, 0  ;;  %v1680_v15 = vpop.f32.mrf.mxu1  ;;  %v2167_v48 = vld [vmem:[%s8102_s4 + $0x1e0] sm:$0xff] }
 0x39a   :  { %v6234_v24 = vperm.slane %v1680_v15, 0 }
 0x39b   :  { %v1689_v35 = vmul.f32 %v6229_v51, %v5911_v16  ;;  %v1834_v16 = vld [vmem:[%s8101_s3 + $0x298] sm:$0xff]  ;;  %v1693_v18 = vmul.f32 %v6229_v51, %v5914_v60  ;;  %v1697_v4 = vmul.f32 %v6229_v51, %v5917_v46  ;;  %v1824_v46 = vld [vmem:[%s8101_s3 + $0x248] sm:$0xff] }
 0x39c   :  { %v1690_v53 = vmul.f32 %v6234_v24, %v5942_v59  ;;  %2055 = vmatpush.msra.mxu3 %v1834_v16  ;;  %v1694_v9 = vmul.f32 %v6234_v24, %v5945_v22  ;;  %v1850_v60 = vld [vmem:[%s8101_s3 + $0x318] sm:$0xff]  ;;  %v1752_v22 = vld [vmem:[%s8101_s3 + $0x8] sm:$0xff]  ;;  %v1698_v20 = vmul.f32 %v6234_v24, %v5948_v30  ;;  %v2133_v30 = vld [vmem:[%s8102_s4 + $0xd0] sm:$0xff] }
 0x39d   :  { %vm1705_vm7 = vcmp.ge.f32.partialorder %v1689_v35, 0.0  ;;  %v1721_v25 = vmul.f32 0.01, %v1689_v35  ;;  %v1725_v5 = vmul.f32 0.01, %v1693_v18  ;;  %2092 = vmatpush.msra.mxu0 %v1850_v60  ;;  %vm1709_vm10 = vcmp.ge.f32.partialorder %v1693_v18, 0.0  ;;  %2006 = vmatpush.msrb.mxu1 %v1752_v22 }
 0x39e   :  { %v1620_v44 = vpop.f32.mrf.mxu3  ;;  %vm1706_vm8 = vcmp.ge.f32.partialorder %v1690_v53, 0.0  ;;  %v1722_v59 = vmul.f32 0.01, %v1690_v53  ;;  %2056 = vmatpush.msra.mxu3 %v1832_v34  ;;  %v1726_v55 = vmul.f32 0.01, %v1694_v9  ;;  %vm1710_vm11 = vcmp.ge.f32.partialorder %v1694_v9, 0.0 }
 0x39f   :  { %v6264_v37 = vperm.slane %v1620_v44, 0  ;;  %v6266_v45 = vsel %vm1705_vm7, %v1689_v35, %v1721_v25  ;;  %2093 = vmatpush.msra.mxu0 %v1848_v63  ;;  %v6323_v42 = vsel %vm1709_vm10, %v1693_v18, %v1725_v5  ;;  %v1729_v49 = vmul.f32 0.01, %v1697_v4  ;;  %v2129_v16 = vld [vmem:[%s8102_s4 + $0xb0] sm:$0xff]  ;;  %v2163_v25 = vld [vmem:[%s8102_s4 + $0x1c0] sm:$0xff] }
 0x3a0   :  { %1949 = vmatmul.f32.vlgmr.msrb.gmra.mxu0 %v6266_v45  ;;  %v6277_v14 = vsel %vm1706_vm8, %v1690_v53, %v1722_v59  ;;  %2057 = vmatpush.msra.mxu3 %v1830_v2  ;;  %v6335_v10 = vsel %vm1710_vm11, %v1694_v9, %v1726_v55  ;;  %vm1713_vm14 = vcmp.ge.f32.partialorder %v1697_v4, 0.0  ;;  %v1730_v15 = vmul.f32 0.01, %v1698_v20  ;;  %v1818_v53 = vld [vmem:[%s8101_s3 + $0x218] sm:$0xff]  ;;  %v2161_v18 = vld [vmem:[%s8102_s4 + $0x1b0] sm:$0xff]  ;;  %v2215_v34 = vld [vmem:[%s8102_s4 + $0x360] sm:$0xff] }
 0x3a1   :  { %4301 = vmatmul.msk.f32.vlgmr.msra.gmra.mxu1 %vm59_vm0, %v6277_v14  ;;  %v1687_v54 = vmul.f32 %v6264_v37, %v5879_v6  ;;  %v1691_v57 = vmul.f32 %v6264_v37, %v5882_v27  ;;  %v2135_v27 = vld [vmem:[%s8102_s4 + $0xe0] sm:$0xff]  ;;  %v1695_v61 = vmul.f32 %v6264_v37, %v5885_v0  ;;  %vm1714_vm15 = vcmp.ge.f32.partialorder %v1698_v20, 0.0  ;;  %v2165_v0 = vld [vmem:[%s8102_s4 + $0x1d0] sm:$0xff] }
 0x3a2   :  { %2058 = vmatpush.msra.mxu3 %v1828_v17  ;;  %2219 = vmatpush.msra.mxu1 %v2137_v32  ;;  %v6382_v21 = vsel %vm1713_vm14, %v1697_v4, %v1729_v49  ;;  %v6393_v26 = vsel %vm1714_vm15, %v1698_v20, %v1730_v15  ;;  %v1702_v44 = vmul.f32 %v6234_v24, %v5951_v38  ;;  %v2201_v38 = vld [vmem:[%s8102_s4 + $0x2f0] sm:$0xff]  ;;  %v2155_v17 = vld [vmem:[%s8102_s4 + $0x180] sm:$0xff]  ;;  %vm2580_vm10 = vcmask 254976  }
 0x3a3   :  { %vm1703_vm9 = vcmp.ge.f32.partialorder %v1687_v54, 0.0  ;;  %v1719_v6 = vmul.f32 0.01, %v1687_v54  ;;  %v1723_v31 = vmul.f32 0.01, %v1691_v57  ;;  %vm1707_vm12 = vcmp.ge.f32.partialorder %v1691_v57, 0.0 }
 0x3a4   :  { %2059 = vmatpush.msra.mxu3 %v1826_v3  ;;  %2220 = vmatpush.msra.mxu1 %v2135_v27  ;;  %vm1711_vm1 = vcmp.ge.f32.partialorder %v1695_v61, 0.0  ;;  %v2217_v24 = vld [vmem:[%s8102_s4 + $0x370] sm:$0xff]  ;;  %v1734_v9 = vmul.f32 0.01, %v1702_v44  ;;  %v1699_v60 = vmul.f32 %v6264_v37, %v5888_v19  ;;  %vm1718_vm5 = vcmp.ge.f32.partialorder %v1702_v44, 0.0  ;;  %v2199_v37 = vld [vmem:[%s8102_s4 + $0x2e0] sm:$0xff] }
 0x3a5   :  { %v6312_v41 = vsel %vm1703_vm9, %v1687_v54, %v1719_v6  ;;  %v6367_v35 = vsel %vm1707_vm12, %v1691_v57, %v1723_v31  ;;  %2314 = vmatpush.msrb.mxu0 %v2217_v24  ;;  %v2159_v54 = vld [vmem:[%s8102_s4 + $0x1a0] sm:$0xff]  ;;  %v2157_v63 = vld [vmem:[%s8102_s4 + $0x190] sm:$0xff]  ;;  %vm2669_vm9 = vcmask 785408   ;;  %vm2820_vm11 = vcmask 1041408  }
 0x3a6   :  { %v1640_v23 = vpop.f32.mrf.mxu3  ;;  %1891 = vmatmul.f32.vlgmr.msra.gmra.mxu2 %v6312_v41  ;;  %2060 = vmatpush.msra.mxu3 %v1824_v46  ;;  %v2197_v6 = vld [vmem:[%s8102_s4 + $0x2d0] sm:$0xff]  ;;  %v6451_v5 = vsel %vm1718_vm5, %v1702_v44, %v1734_v9  ;;  %v1731_v32 = vmul.f32 0.01, %v1699_v60  ;;  %v2195_v3 = vld [vmem:[%s8102_s4 + $0x2c0] sm:$0xff]  ;;  %vm1715_vm6 = vcmp.ge.f32.partialorder %v1699_v60, 0.0  ;;  %vm2838_vm12 = vcmask 261122  }
 0x3a7   :  { %v6320_v56 = vperm.slane %v1640_v23, 0  ;;  %2248 = vmatpush.msra.mxu2 %v2169_v7  ;;  %2221 = vmatpush.msra.mxu1 %v2133_v30  ;;  %v2213_v55 = vld [vmem:[%s8102_s4 + $0x350] sm:$0xff]  ;;  %v2211_v4 = vld [vmem:[%s8102_s4 + $0x340] sm:$0xff]  ;;  %vm3022_vm14 = vcmask 1046528   ;;  %vm2842_vm15 = vcmask 261120   ;;  %vm3612_vm5 = vcmask 31744  }
 0x3a8   :  { %1952 = vmatmul.f32.gmra.mxu0 %v6323_v42  ;;  %2061 = vmatpush.msra.mxu3 %v1822_v8  ;;  %v2121_v57 = vld [vmem:[%s8102_s4 + $0x70] sm:$0xff]  ;;  %v2119_v27 = vld [vmem:[%s8102_s4 + $0x60] sm:$0xff]  ;;  %v6479_v20 = vsel %vm1715_vm6, %v1699_v60, %v1731_v32  ;;  %v2134_v60 = vld [vmem:[%s8102_s4 + $0xd8] sm:$0xff] }
 0x3a9   :  { %v1688_v40 = vmul.f32 %v6320_v56, %v5899_v39  ;;  %4302 = vmatmul.msk.f32.gmra.mxu1 %vm59_vm0, %v6335_v10  ;;  %v1692_v28 = vmul.f32 %v6320_v56, %v5902_v11  ;;  %2249 = vmatpush.msra.mxu2 %v2167_v48  ;;  %v1701_v11 = vmul.f32 %v6229_v51, %v5924_v47  ;;  %v1816_v47 = vld [vmem:[%s8101_s3 + $0x208] sm:$0xff]  ;;  %v1727_v51 = vmul.f32 0.01, %v1695_v61  ;;  %v2153_v23 = vld [vmem:[%s8102_s4 + $0x170] sm:$0xff]  ;;  %v2191_v31 = vld [vmem:[%s8102_s4 + $0x2a0] sm:$0xff] }
 0x3aa   :  { %2222 = vmatpush.msra.mxu1 %v2131_v50  ;;  %2062 = vmatpush.msra.mxu3 %v1820_v52  ;;  %v1696_v19 = vmul.f32 %v6320_v56, %v5905_v1  ;;  %v2123_v1 = vld [vmem:[%s8102_s4 + $0x80] sm:$0xff]  ;;  %v1700_v7 = vmul.f32 %v6320_v56, %v5908_v29  ;;  %v2117_v30 = vld [vmem:[%s8102_s4 + $0x50] sm:$0xff]  ;;  %v2164_v32 = vld [vmem:[%s8102_s4 + $0x1c8] sm:$0xff] }
 0x3ab   :  { %vm1704_vm13 = vcmp.ge.f32.partialorder %v1688_v40, 0.0  ;;  %v1720_v39 = vmul.f32 0.01, %v1688_v40  ;;  %2250 = vmatpush.msra.mxu2 %v2165_v0  ;;  %v1724_v59 = vmul.f32 0.01, %v1692_v28  ;;  %vm1708_vm3 = vcmp.ge.f32.partialorder %v1692_v28, 0.0  ;;  %2315 = vmatpush.msrb.mxu0 %v2215_v34 }
 0x3ac   :  { %2063 = vmatpush.msra.mxu3 %v1818_v53  ;;  %2223 = vmatpush.msra.mxu1 %v2129_v16  ;;  %v1733_v33 = vmul.f32 0.01, %v1701_v11  ;;  %vm1717_vm4 = vcmp.ge.f32.partialorder %v1701_v11, 0.0  ;;  %v6426_v22 = vsel %vm1711_vm1, %v1695_v61, %v1727_v51  ;;  %v1728_v43 = vmul.f32 0.01, %v1696_v19  ;;  %v2209_v29 = vld [vmem:[%s8102_s4 + $0x330] sm:$0xff] }
 0x3ad   :  { %v6369_v13 = vsel %vm1704_vm13, %v1688_v40, %v1720_v39  ;;  %2251 = vmatpush.msra.mxu2 %v2163_v25  ;;  %v6429_v2 = vsel %vm1708_vm3, %v1692_v28, %v1724_v59  ;;  %vm1712_vm7 = vcmp.ge.f32.partialorder %v1696_v19, 0.0  ;;  %2316 = vmatpush.msrb.mxu0 %v2213_v55  ;;  %v2151_v40 = vld [vmem:[%s8102_s4 + $0x160] sm:$0xff]  ;;  %v2149_v56 = vld [vmem:[%s8102_s4 + $0x150] sm:$0xff]  ;;  %v1732_v48 = vmul.f32 0.01, %v1700_v7  ;;  %v2170_v34 = vld [vmem:[%s8102_s4 + $0x1f8] sm:$0xff] }
 0x3ae   :  { %1894 = vmatmul.f32.gmra.mxu2 %v6367_v35  ;;  %1920 = vmatmul.f32.vlgmr.msrb.gmra.mxu3 %v6369_v13  ;;  %v6442_v36 = vsel %vm1717_vm4, %v1701_v11, %v1733_v33  ;;  %v6481_v46 = vsel %vm1712_vm7, %v1696_v19, %v1728_v43  ;;  %v2189_v8 = vld [vmem:[%s8102_s4 + $0x290] sm:$0xff]  ;;  %v2115_v39 = vld [vmem:[%s8102_s4 + $0x40] sm:$0xff]  ;;  %vm1716_vm8 = vcmp.ge.f32.partialorder %v1700_v7, 0.0  ;;  %v2136_v33 = vld [vmem:[%s8102_s4 + $0xe8] sm:$0xff]  ;;  %vm3164_vm13 = vcmask 1045504  }
 0x3af   :  { %2064 = vmatpush.msra.mxu3 %v1816_v47  ;;  %2224 = vmatpush.msra.mxu1 %v2127_v62  ;;  %v2207_v49 = vld [vmem:[%s8102_s4 + $0x320] sm:$0xff]  ;;  %v2113_v50 = vld [vmem:[%s8102_s4 + $0x30] sm:$0xff]  ;;  %v6526_v28 = vsel %vm1716_vm8, %v1700_v7, %v1732_v48  ;;  %v2218_v19 = vld [vmem:[%s8102_s4 + $0x378] sm:$0xff]  ;;  %vm3312_vm1 = vcmask 1044480   ;;  %vm2844_vm3 = vcmask 916480   ;;  %vm2846_vm4 = vcmask 914432  }
 0x3b0   :  { %1955 = vmatmul.f32.gmra.mxu0 %v6382_v21  ;;  %2252 = vmatpush.msra.mxu2 %v2161_v18  ;;  %v2147_v15 = vld [vmem:[%s8102_s4 + $0x140] sm:$0xff]  ;;  %v2205_v52 = vld [vmem:[%s8102_s4 + $0x310] sm:$0xff]  ;;  %v2130_v55 = vld [vmem:[%s8102_s4 + $0xb8] sm:$0xff] }
 0x3b1   :  { %4303 = vmatmul.msk.f32.gmra.mxu1 %vm59_vm0, %v6393_v26  ;;  %2277 = vmatpush.msrb.mxu3 %v2201_v38  ;;  %v2187_v61 = vld [vmem:[%s8102_s4 + $0x280] sm:$0xff]  ;;  %v2145_v0 = vld [vmem:[%s8102_s4 + $0x130] sm:$0xff]  ;;  %v2138_v38 = vld [vmem:[%s8102_s4 + $0xf8] sm:$0xff] }
 0x3b2   :  { %2225 = vmatpush.msra.mxu1 %v2125_v58  ;;  %2253 = vmatpush.msra.mxu2 %v2159_v54  ;;  %v2185_v53 = vld [vmem:[%s8102_s4 + $0x270] sm:$0xff]  ;;  %v2111_v11 = vld [vmem:[%s8102_s4 + $0x20] sm:$0xff]  ;;  %v2168_v58 = vld [vmem:[%s8102_s4 + $0x1e8] sm:$0xff] }
 0x3b3   :  { %2278 = vmatpush.msrb.mxu3 %v2199_v37  ;;  %2317 = vmatpush.msrb.mxu0 %v2211_v4  ;;  %v2203_v16 = vld [vmem:[%s8102_s4 + $0x300] sm:$0xff]  ;;  %v2109_v47 = vld [vmem:[%s8102_s4 + $0x10] sm:$0xff]  ;;  %v2216_v37 = vld [vmem:[%s8102_s4 + $0x368] sm:$0xff] }
 0x3b4   :  { %2254 = vmatpush.msra.mxu2 %v2157_v63  ;;  %2226 = vmatpush.msra.mxu1 %v2123_v1  ;;  %v2143_v25 = vld [vmem:[%s8102_s4 + $0x120] sm:$0xff]  ;;  %v2141_v51 = vld [vmem:[%s8102_s4 + $0x110] sm:$0xff]  ;;  %v2132_v63 = vld [vmem:[%s8102_s4 + $0xc8] sm:$0xff] }
 0x3b5   :  { %2279 = vmatpush.msrb.mxu3 %v2197_v6  ;;  %2318 = vmatpush.msrb.mxu0 %v2209_v29  ;;  %v2183_v44 = vld [vmem:[%s8102_s4 + $0x260] sm:$0xff]  ;;  %v2181_v59 = vld [vmem:[%s8102_s4 + $0x250] sm:$0xff]  ;;  %v2166_v6 = vld [vmem:[%s8102_s4 + $0x1d8] sm:$0xff] }
 0x3b6   :  { %1897 = vmatmul.f32.gmra.mxu2 %v6426_v22  ;;  %1923 = vmatmul.f32.gmra.mxu3 %v6429_v2  ;;  %v2107_v62 = vld [vmem:[%s8102_s4] sm:$0xff]  ;;  %v2177_v9 = vld [vmem:[%s8102_s4 + $0x230] sm:$0xff]  ;;  %v2202_v43 = vld [vmem:[%s8102_s4 + $0x2f8] sm:$0xff] }
 0x3b7   :  { %2255 = vmatpush.msra.mxu2 %v2155_v17  ;;  %2227 = vmatpush.msra.mxu1 %v2121_v57  ;;  %v2139_v18 = vld [vmem:[%s8102_s4 + $0x100] sm:$0xff]  ;;  %v2173_v1 = vld [vmem:[%s8102_s4 + $0x210] sm:$0xff]  ;;  %v2214_v57 = vld [vmem:[%s8102_s4 + $0x358] sm:$0xff] }
 0x3b8   :  { %1958 = vmatmul.f32.gmra.mxu0 %v6442_v36  ;;  %2280 = vmatpush.msrb.mxu3 %v2195_v3  ;;  %v2179_v24 = vld [vmem:[%s8102_s4 + $0x240] sm:$0xff]  ;;  %v2128_v3 = vld [vmem:[%s8102_s4 + $0xa8] sm:$0xff]  ;;  %v2122_v48 = vld [vmem:[%s8102_s4 + $0x78] sm:$0xff] }
 0x3b9   :  { %4304 = vmatmul.msk.f32.gmra.mxu1 %vm59_vm0, %v6451_v5  ;;  %2256 = vmatpush.msra.mxu2 %v2153_v23  ;;  %v2175_v54 = vld [vmem:[%s8102_s4 + $0x220] sm:$0xff]  ;;  %v2162_v23 = vld [vmem:[%s8102_s4 + $0x1b8] sm:$0xff]  ;;  %v2200_v4 = vld [vmem:[%s8102_s4 + $0x2e8] sm:$0xff] }
 0x3ba   :  { %2228 = vmatpush.msra.mxu1 %v2119_v27  ;;  %2281 = vmatpush.msrb.mxu3 %v2193_v12  ;;  %v2171_v17 = vld [vmem:[%s8102_s4 + $0x200] sm:$0xff]  ;;  %v2212_v27 = vld [vmem:[%s8102_s4 + $0x348] sm:$0xff]  ;;  %v2126_v12 = vld [vmem:[%s8102_s4 + $0x98] sm:$0xff] }
 0x3bb   :  { %2257 = vmatpush.msra.mxu2 %v2151_v40  ;;  %2319 = vmatpush.msrb.mxu0 %v2207_v49  ;;  %v2160_v7 = vld [vmem:[%s8102_s4 + $0x1a8] sm:$0xff]  ;;  %v2198_v40 = vld [vmem:[%s8102_s4 + $0x2d8] sm:$0xff] }
 0x3bc   :  { %2282 = vmatpush.msrb.mxu3 %v2191_v31  ;;  %2229 = vmatpush.msra.mxu1 %v2117_v30  ;;  %v2158_v31 = vld [vmem:[%s8102_s4 + $0x198] sm:$0xff]  ;;  %v2124_v30 = vld [vmem:[%s8102_s4 + $0x88] sm:$0xff] }
 0x3bd   :  { %2258 = vmatpush.msra.mxu2 %v2149_v56  ;;  %2320 = vmatpush.msrb.mxu0 %v2205_v52  ;;  %v2196_v29 = vld [vmem:[%s8102_s4 + $0x2c8] sm:$0xff]  ;;  %v2154_v49 = vld [vmem:[%s8102_s4 + $0x178] sm:$0xff] }
 0x3be   :  { %1900 = vmatmul.f32.gmra.mxu2 %v6479_v20  ;;  %1926 = vmatmul.f32.gmra.mxu3 %v6481_v46  ;;  %v2156_v56 = vld [vmem:[%s8102_s4 + $0x188] sm:$0xff] }
 0x3bf   :  { %2283 = vmatpush.msrb.mxu3 %v2189_v8  ;;  %2230 = vmatpush.msra.mxu1 %v2115_v39  ;;  %v2210_v8 = vld [vmem:[%s8102_s4 + $0x338] sm:$0xff]  ;;  %v2192_v52 = vld [vmem:[%s8102_s4 + $0x2a8] sm:$0xff] }
 0x3c0   :  { %4305 = vmatmul.msk.f32.vlgmr.msra.gmra.mxu0 %vm59_vm0, %v6277_v14  ;;  %2259 = vmatpush.msra.mxu2 %v2147_v15  ;;  %v2194_v39 = vld [vmem:[%s8102_s4 + $0x2b8] sm:$0xff]  ;;  %v2208_v15 = vld [vmem:[%s8102_s4 + $0x328] sm:$0xff] }
 0x3c1   :  { %2007 = vmatmul.f32.vlgmr.msrb.gmra.mxu1 %v6312_v41  ;;  %2284 = vmatpush.msrb.mxu3 %v2187_v61  ;;  %v2120_v61 = vld [vmem:[%s8102_s4 + $0x68] sm:$0xff] }
 0x3c2   :  { %2231 = vmatpush.msra.mxu1 %v2113_v50  ;;  %2260 = vmatpush.msra.mxu2 %v2145_v0  ;;  %v2152_v50 = vld [vmem:[%s8102_s4 + $0x168] sm:$0xff]  ;;  %v2150_v0 = vld [vmem:[%s8102_s4 + $0x158] sm:$0xff] }
 0x3c3   :  { %2285 = vmatpush.msrb.mxu3 %v2185_v53  ;;  %2321 = vmatpush.msrb.mxu0 %v2203_v16  ;;  %v2118_v53 = vld [vmem:[%s8102_s4 + $0x58] sm:$0xff]  ;;  %v2148_v16 = vld [vmem:[%s8102_s4 + $0x148] sm:$0xff] }
 0x3c4   :  { %2232 = vmatpush.msra.mxu1 %v2111_v11  ;;  %2261 = vmatpush.msra.mxu2 %v2143_v25  ;;  %v2190_v11 = vld [vmem:[%s8102_s4 + $0x298] sm:$0xff] }
 0x3c5   :  { %2286 = vmatpush.msrb.mxu3 %v2183_v44  ;;  %2430 = vmatpush.msra.mxu0 %v2218_v19  ;;  %v2206_v25 = vld [vmem:[%s8102_s4 + $0x318] sm:$0xff]  ;;  %v2116_v44 = vld [vmem:[%s8102_s4 + $0x48] sm:$0xff] }
 0x3c6   :  { %1929 = vmatmul.f32.gmra.mxu3 %v6526_v28  ;;  %2036 = vmatmul.f32.vlgmr.msrb.gmra.mxu2 %v6369_v13  ;;  %v2108_v19 = vld [vmem:[%s8102_s4 + $0x8] sm:$0xff] }
 0x3c7   :  { %2233 = vmatpush.msra.mxu1 %v2109_v47  ;;  %2262 = vmatpush.msra.mxu2 %v2141_v51  ;;  %v2188_v47 = vld [vmem:[%s8102_s4 + $0x288] sm:$0xff]  ;;  %v2146_v51 = vld [vmem:[%s8102_s4 + $0x138] sm:$0xff] }
 0x3c8   :  { %4306 = vmatmul.msk.f32.gmra.mxu0 %vm59_vm0, %v6335_v10  ;;  %2287 = vmatpush.msrb.mxu3 %v2181_v59  ;;  %v2204_v59 = vld [vmem:[%s8102_s4 + $0x308] sm:$0xff] }
 0x3c9   :  { %2010 = vmatmul.f32.gmra.mxu1 %v6367_v35  ;;  %2263 = vmatpush.msra.mxu2 %v2139_v18  ;;  %v2186_v18 = vld [vmem:[%s8102_s4 + $0x278] sm:$0xff] }
 0x3ca   :  { %2234 = vmatpush.msra.mxu1 %v2107_v62  ;;  %2288 = vmatpush.msrb.mxu3 %v2179_v24  ;;  %v2114_v62 = vld [vmem:[%s8102_s4 + $0x38] sm:$0xff]  ;;  %v2184_v24 = vld [vmem:[%s8102_s4 + $0x268] sm:$0xff] }
 0x3cb   :  { %2364 = vmatpush.msrb.mxu2 %v2170_v34  ;;  %2431 = vmatpush.msra.mxu0 %v2216_v37  ;;  %v2142_v34 = vld [vmem:[%s8102_s4 + $0x118] sm:$0xff] }
 0x3cc   :  { %2335 = vmatpush.msrb.mxu1 %v2138_v38  ;;  %2289 = vmatpush.msrb.mxu3 %v2177_v9  ;;  %v2144_v38 = vld [vmem:[%s8102_s4 + $0x128] sm:$0xff]  ;;  %v2182_v9 = vld [vmem:[%s8102_s4 + $0x258] sm:$0xff] }
 0x3cd   :  { %2365 = vmatpush.msrb.mxu2 %v2168_v58  ;;  %2432 = vmatpush.msra.mxu0 %v2214_v57  ;;  %v2140_v58 = vld [vmem:[%s8102_s4 + $0x108] sm:$0xff]  ;;  %v2178_v37 = vld [vmem:[%s8102_s4 + $0x238] sm:$0xff] }
 0x3ce   :  { %2039 = vmatmul.f32.gmra.mxu2 %v6429_v2  ;;  %2065 = vmatmul.f32.vlgmr.msra.gmra.mxu3 %v6266_v45 }
 0x3cf   :  { %2336 = vmatpush.msrb.mxu1 %v2136_v33  ;;  %2290 = vmatpush.msrb.mxu3 %v2175_v54  ;;  %v2112_v33 = vld [vmem:[%s8102_s4 + $0x28] sm:$0xff] }
 0x3d0   :  { %4307 = vmatmul.msk.f32.gmra.mxu0 %vm59_vm0, %v6393_v26  ;;  %2366 = vmatpush.msrb.mxu2 %v2166_v6  ;;  %v2180_v54 = vld [vmem:[%s8102_s4 + $0x248] sm:$0xff] }
 0x3d1   :  { %2013 = vmatmul.f32.gmra.mxu1 %v6426_v22  ;;  %2291 = vmatpush.msrb.mxu3 %v2173_v1  ;;  %v2174_v1 = vld [vmem:[%s8102_s4 + $0x218] sm:$0xff]  ;;  %v2172_v6 = vld [vmem:[%s8102_s4 + $0x208] sm:$0xff] }
 0x3d2   :  { %2337 = vmatpush.msrb.mxu1 %v2134_v60  ;;  %2367 = vmatpush.msrb.mxu2 %v2164_v32  ;;  %v2110_v60 = vld [vmem:[%s8102_s4 + $0x18] sm:$0xff] }
 0x3d3   :  { %2292 = vmatpush.msrb.mxu3 %v2171_v17  ;;  %2433 = vmatpush.msra.mxu0 %v2212_v27 }
 0x3d4   :  { %2338 = vmatpush.msrb.mxu1 %v2132_v63  ;;  %2368 = vmatpush.msrb.mxu2 %v2162_v23  ;;  %v2176_v63 = vld [vmem:[%s8102_s4 + $0x228] sm:$0xff] }
 0x3d5   :  { %2393 = vmatpush.msra.mxu3 %v2202_v43  ;;  %2434 = vmatpush.msra.mxu0 %v2210_v8 }
 0x3d6   :  { %2042 = vmatmul.f32.gmra.mxu2 %v6481_v46  ;;  %2068 = vmatmul.f32.gmra.mxu3 %v6323_v42 }
 0x3d7   :  { %2339 = vmatpush.msrb.mxu1 %v2130_v55  ;;  %2394 = vmatpush.msra.mxu3 %v2200_v4 }
 0x3d8   :  { %4308 = vmatmul.msk.f32.gmra.mxu0 %vm59_vm0, %v6451_v5  ;;  %2369 = vmatpush.msrb.mxu2 %v2160_v7 }
 0x3d9   :  { %2016 = vmatmul.f32.gmra.mxu1 %v6479_v20  ;;  %2395 = vmatpush.msra.mxu3 %v2198_v40 }
 0x3da   :  { %2340 = vmatpush.msrb.mxu1 %v2128_v3  ;;  %2370 = vmatpush.msrb.mxu2 %v2158_v31 }
 0x3db   :  { %2396 = vmatpush.msra.mxu3 %v2196_v29  ;;  %2435 = vmatpush.msra.mxu0 %v2208_v15 }
 0x3dc   :  { %2341 = vmatpush.msrb.mxu1 %v2126_v12  ;;  %2371 = vmatpush.msrb.mxu2 %v2156_v56 }
 0x3dd   :  { %2397 = vmatpush.msra.mxu3 %v2194_v39  ;;  %2436 = vmatpush.msra.mxu0 %v2206_v25 }
 0x3de   :  { %2045 = vmatmul.f32.gmra.mxu2 %v6526_v28  ;;  %2071 = vmatmul.f32.gmra.mxu3 %v6382_v21 }
 0x3df   :  { %2342 = vmatpush.msrb.mxu1 %v2124_v30  ;;  %2372 = vmatpush.msrb.mxu2 %v2154_v49 }
 0x3e0   :  { %4309 = vmatmul.msk.f32.vlgmr.msrb.gmra.mxu0 %vm59_vm0, %v6277_v14  ;;  %2398 = vmatpush.msra.mxu3 %v2192_v52 }
 0x3e1   :  { %2235 = vmatmul.f32.vlgmr.msra.gmra.mxu1 %v6312_v41  ;;  %2373 = vmatpush.msrb.mxu2 %v2152_v50 }
 0x3e2   :  { %2343 = vmatpush.msrb.mxu1 %v2122_v48  ;;  %2399 = vmatpush.msra.mxu3 %v2190_v11 }
 0x3e3   :  { %2374 = vmatpush.msrb.mxu2 %v2150_v0  ;;  %2437 = vmatpush.msra.mxu0 %v2204_v59 }
 0x3e4   :  { %2344 = vmatpush.msrb.mxu1 %v2120_v61  ;;  %2400 = vmatpush.msra.mxu3 %v2188_v47 }
 0x3e5   :  { %2375 = vmatpush.msrb.mxu2 %v2148_v16 }
 0x3e6   :  { %2074 = vmatmul.f32.gmra.mxu3 %v6442_v36  ;;  %2264 = vmatmul.f32.vlgmr.msra.gmra.mxu2 %v6369_v13 }
 0x3e7   :  { %2345 = vmatpush.msrb.mxu1 %v2118_v53  ;;  %2376 = vmatpush.msrb.mxu2 %v2146_v51 }
 0x3e8   :  { %4310 = vmatmul.msk.f32.gmra.mxu0 %vm59_vm0, %v6335_v10  ;;  %2401 = vmatpush.msra.mxu3 %v2186_v18 }
 0x3e9   :  { %2238 = vmatmul.f32.gmra.mxu1 %v6367_v35  ;;  %2377 = vmatpush.msrb.mxu2 %v2144_v38 }
 0x3ea   :  { %2346 = vmatpush.msrb.mxu1 %v2116_v44  ;;  %2402 = vmatpush.msra.mxu3 %v2184_v24 }
 0x3eb   :  { %2378 = vmatpush.msrb.mxu2 %v2142_v34 }
 0x3ec   :  { %2347 = vmatpush.msrb.mxu1 %v2114_v62  ;;  %2403 = vmatpush.msra.mxu3 %v2182_v9 }
 0x3ed   :  { %2379 = vmatpush.msrb.mxu2 %v2140_v58 }
 0x3ee   :  { %2267 = vmatmul.f32.gmra.mxu2 %v6429_v2  ;;  %2293 = vmatmul.f32.vlgmr.msrb.gmra.mxu3 %v6266_v45 }
 0x3ef   :  { %2348 = vmatpush.msrb.mxu1 %v2112_v33  ;;  %2404 = vmatpush.msra.mxu3 %v2180_v54 }
 0x3f0   :  { %4311 = vmatmul.msk.f32.gmra.mxu0 %vm59_vm0, %v6393_v26 }
 0x3f1   :  { %2241 = vmatmul.f32.gmra.mxu1 %v6426_v22  ;;  %2405 = vmatpush.msra.mxu3 %v2178_v37 }
 0x3f2   :  { %2349 = vmatpush.msrb.mxu1 %v2110_v60 }
 0x3f3   :  { %2406 = vmatpush.msra.mxu3 %v2176_v63 }
 0x3f4   :  { %2350 = vmatpush.msrb.mxu1 %v2108_v19 }
 0x3f5   :  { %2407 = vmatpush.msra.mxu3 %v2174_v1 }
 0x3f6   :  { %2270 = vmatmul.f32.gmra.mxu2 %v6481_v46  ;;  %2296 = vmatmul.f32.gmra.mxu3 %v6323_v42 }
 0x3f7   :  { %2408 = vmatpush.msra.mxu3 %v2172_v6 }
 0x3f8   :  { %4312 = vmatmul.msk.f32.gmra.mxu0 %vm59_vm0, %v6451_v5 }
 0x3f9   :  { %2244 = vmatmul.f32.gmra.mxu1 %v6479_v20 }
 0x3fe   :  { %2273 = vmatmul.f32.gmra.mxu2 %v6526_v28  ;;  %2299 = vmatmul.f32.gmra.mxu3 %v6382_v21 }
 0x400   :  { %4313 = vmatmul.msk.f32.vlgmr.msra.gmra.mxu0 %vm59_vm0, %v6277_v14 }
 0x401   :  { %2351 = vmatmul.f32.vlgmr.msrb.gmra.mxu1 %v6312_v41 }
 0x406   :  { %2302 = vmatmul.f32.gmra.mxu3 %v6442_v36  ;;  %2380 = vmatmul.f32.vlgmr.msrb.gmra.mxu2 %v6369_v13 }
 0x408   :  { %4314 = vmatmul.msk.f32.gmra.mxu0 %vm59_vm0, %v6335_v10 }
 0x409   :  { %2354 = vmatmul.f32.gmra.mxu1 %v6367_v35 }
 0x40e   :  { %2383 = vmatmul.f32.gmra.mxu2 %v6429_v2  ;;  %2409 = vmatmul.f32.vlgmr.msra.gmra.mxu3 %v6266_v45 }
 0x410   :  { %4315 = vmatmul.msk.f32.gmra.mxu0 %vm59_vm0, %v6393_v26 }
 0x411   :  { %2357 = vmatmul.f32.gmra.mxu1 %v6426_v22 }
 0x416   :  { %2386 = vmatmul.f32.gmra.mxu2 %v6481_v46  ;;  %2412 = vmatmul.f32.gmra.mxu3 %v6323_v42 }
 0x418   :  { %4316 = vmatmul.msk.f32.gmra.mxu0 %vm59_vm0, %v6451_v5  ;;  %vm2461_vm0 = vcmask 228352  }
 0x419   :  { %2360 = vmatmul.f32.gmra.mxu1 %v6479_v20 }
 0x41d   :  { %v6799_v14 = vpop.f32.mrf.mxu0 }
 0x41e   :  { %v6801_v41 = vpop.f32.mrf.mxu1  ;;  %2389 = vmatmul.f32.gmra.mxu2 %v6526_v28  ;;  %2415 = vmatmul.f32.gmra.mxu3 %v6382_v21 }
 0x425   :  { %v1953_v45 = vpop.f32.mrf.mxu0 }
 0x426   :  { %v6805_v10 = vpop.f32.mrf.mxu1  ;;  %2418 = vmatmul.f32.gmra.mxu3 %v6442_v36 }
 0x429   :  { %v1892_v35 = vpop.f32.mrf.mxu2 }
 0x42d   :  { %v1956_v42 = vpop.f32.mrf.mxu0 }
 0x42e   :  { %v6808_v13 = vpop.f32.mrf.mxu1 }
 0x431   :  { %v1895_v26 = vpop.f32.mrf.mxu2  ;;  %v1921_v22 = vpop.f32.mrf.mxu3 }
 0x432   :  { %v1922_v60 = vadd.f32 %v1921_v22, %v1892_v35 }
 0x435   :  { %v1959_v2 = vpop.f32.mrf.mxu0 }
 0x436   :  { %v1988_v5 = vpop.f32.mrf.mxu1 }
 0x439   :  { %v1898_v20 = vpop.f32.mrf.mxu2  ;;  %v1924_v46 = vpop.f32.mrf.mxu3 }
 0x43a   :  { %v1925_v18 = vadd.f32 %v1924_v46, %v1895_v26 }
 0x43c   :  { %v1954_v6 = vadd.f32 %v1953_v45, %v1925_v18 }
 0x43d   :  { %v6810_v17 = vpop.f32.mrf.mxu0 }
 0x43e   :  { %8171 = vst [vmem:[#allocation6_spill] sm:$0xff] %v6810_v17  ;;  %v6812_v28 = vpop.f32.mrf.mxu1  ;;  %v1983_v22 = vadd.f32 %v6805_v10, %v1954_v6  ;;  %v6859_v10 = vld [vmem:[%s8103_s6] sm:$0xff] }
 0x441   :  { %v1901_v21 = vpop.f32.mrf.mxu2  ;;  %v1927_v55 = vpop.f32.mrf.mxu3 }
 0x442   :  { %v1928_v59 = vadd.f32 %v1927_v55, %v1898_v20 }
 0x444   :  { %v1957_v19 = vadd.f32 %v1956_v42, %v1928_v59  ;;  %v2621_v59 = vld [vmem:[%s8105_s15 + $0x120] sm:$0xff] }
 0x445   :  { %v6816_v43 = vpop.f32.mrf.mxu0 }
 0x446   :  { %v6814_v32 = vpop.f32.mrf.mxu1  ;;  %v1986_v46 = vadd.f32 %v6808_v13, %v1957_v19  ;;  %v2615_v19 = vld [vmem:[%s8105_s15 + $0xf0] sm:$0xff] }
 0x449   :  { %v1930_v36 = vpop.f32.mrf.mxu3  ;;  %v6818_v57 = vpop.f32.mrf.mxu2 }
 0x44a   :  { %v1931_v51 = vadd.f32 %v1930_v36, %v1901_v21 }
 0x44c   :  { %v1960_v38 = vadd.f32 %v1959_v2, %v1931_v51  ;;  %v1951_v2 = vadd.f32 %v6799_v14, %v1922_v60  ;;  %v2625_v51 = vld [vmem:[%s8105_s15 + $0x140] sm:$0xff] }
 0x44d   :  { %v6822_v23 = vpop.f32.mrf.mxu0 }
 0x44e   :  { %v6820_v3 = vpop.f32.mrf.mxu1  ;;  %v1989_v17 = vadd.f32 %v1988_v5, %v1960_v38  ;;  %v2618_v38 = vld [vmem:[%s8105_s15 + $0x108] sm:$0xff] }
 0x451   :  { %v6824_v4 = vpop.f32.mrf.mxu2  ;;  %v6826_v27 = vpop.f32.mrf.mxu3 }
 0x452   :  { %v2041_v6 = vadd.f32 %v6824_v4, %v6814_v32  ;;  %v2038_v32 = vadd.f32 %v6818_v57, %v6812_v28 }
 0x454   :  { %v2067_v28 = vadd.f32 %v6826_v27, %v2038_v32  ;;  %v2603_v27 = vld [vmem:[%s8105_s15 + $0x90] sm:$0xff]  ;;  %v2640_v32 = vld [vmem:[%s8105_s15 + $0x1b8] sm:$0xff] }
 0x455   :  { %v6834_v31 = vpop.f32.mrf.mxu0 }
 0x456   :  { %v6828_v12 = vpop.f32.mrf.mxu1 }
 0x459   :  { %v6830_v7 = vpop.f32.mrf.mxu2  ;;  %v6832_v40 = vpop.f32.mrf.mxu3 }
 0x45a   :  { %v2044_v60 = vadd.f32 %v6830_v7, %v6820_v3  ;;  %v2612_v7 = vld [vmem:[%s8105_s15 + $0xd8] sm:$0xff]  ;;  %v2070_v4 = vadd.f32 %v6832_v40, %v2041_v6  ;;  %v2589_v6 = vld [vmem:[%s8105_s15 + $0x20] sm:$0xff] }
 0x45d   :  { %v2323_v8 = vpop.f32.mrf.mxu0 }
 0x45e   :  { %v2236_v30 = vpop.f32.mrf.mxu1 }
 0x461   :  { %v6836_v29 = vpop.f32.mrf.mxu2  ;;  %v6838_v56 = vpop.f32.mrf.mxu3 }
 0x465   :  { %v2326_v15 = vpop.f32.mrf.mxu0 }
 0x466   :  { %v2239_v49 = vpop.f32.mrf.mxu1 }
 0x469   :  { %v6840_v48 = vpop.f32.mrf.mxu3  ;;  %v2265_v39 = vpop.f32.mrf.mxu2 }
 0x46a   :  { %v2266_v37 = vadd.f32 %v2265_v39, %v2236_v30  ;;  %v1980_v30 = vadd.f32 %v6801_v41, %v1951_v2  ;;  %v2613_v2 = vld [vmem:[%s8105_s15 + $0xe0] sm:$0xff] }
 0x46d   :  { %v2329_v0 = vpop.f32.mrf.mxu0 }
 0x46e   :  { %v2242_v52 = vpop.f32.mrf.mxu1 }
 0x471   :  { %v2268_v61 = vpop.f32.mrf.mxu2  ;;  %v2294_v50 = vpop.f32.mrf.mxu3 }
 0x472   :  { %v2269_v24 = vadd.f32 %v2268_v61, %v2239_v49  ;;  %v2295_v21 = vadd.f32 %v2294_v50, %v2266_v37  ;;  %v6875_v61 = vld [vmem:[%s8103_s6 + $0x8] sm:$0x3f] }
 0x473   :  { %v6880_v50 = vld [vmem:[%s8104_s5 + $0x8] sm:$0x3f] }
 0x474   :  { %v2324_v49 = vadd.f32 %v2323_v8, %v2295_v21  ;;  %v2073_v21 = vadd.f32 %v6838_v56, %v2044_v60  ;;  %v2609_v56 = vld [vmem:[%s8105_s15 + $0xc0] sm:$0xff] }
 0x475   :  { %v2332_v47 = vpop.f32.mrf.mxu0  ;;  %v2629_v60 = vld [vmem:[%s8105_s15 + $0x160] sm:$0xff] }
 0x476   :  { %v2245_v16 = vpop.f32.mrf.mxu1  ;;  %v2451_v13 = vmax.f32 %v1980_v30, %v2324_v49  ;;  %v2102_v57 = vadd.f32 %v6822_v23, %v2073_v21  ;;  %v2604_v30 = vld [vmem:[%s8105_s15 + $0x98] sm:$0xff] }
 0x477   :  { %v2668_v21 = vld [vmem:[%s8105_s15 + $0x298] sm:$0xff] }
 0x479   :  { %v2271_v53 = vpop.f32.mrf.mxu2  ;;  %v2297_v11 = vpop.f32.mrf.mxu3 }
 0x47a   :  { %v2272_v62 = vadd.f32 %v2271_v53, %v2242_v52  ;;  %v2298_v63 = vadd.f32 %v2297_v11, %v2269_v24  ;;  %v2627_v53 = vld [vmem:[%s8105_s15 + $0x150] sm:$0xff]  ;;  %v2047_v24 = vadd.f32 %v6836_v29, %v6828_v12  ;;  %v2616_v29 = vld [vmem:[%s8105_s15 + $0xf8] sm:$0xff] }
 0x47b   :  { %v2631_v11 = vld [vmem:[%s8105_s15 + $0x170] sm:$0xff] }
 0x47c   :  { %v2327_v36 = vadd.f32 %v2326_v15, %v2298_v63  ;;  %v2076_v37 = vadd.f32 %v6840_v48, %v2047_v24  ;;  %v2651_v24 = vld [vmem:[%s8105_s15 + $0x210] sm:$0xff] }
 0x47d   :  { %v6846_v26 = vpop.f32.mrf.mxu0 }
 0x47e   :  { %v6842_v33 = vpop.f32.mrf.mxu1  ;;  %v2453_v14 = vmax.f32 %v1983_v22, %v2327_v36  ;;  %v2610_v22 = vld [vmem:[%s8105_s15 + $0xc8] sm:$0xff] }
 0x481   :  { %v2274_v25 = vpop.f32.mrf.mxu2  ;;  %v2300_v44 = vpop.f32.mrf.mxu3 }
 0x482   :  { %v2275_v34 = vadd.f32 %v2274_v25, %v2245_v16  ;;  %v2301_v9 = vadd.f32 %v2300_v44, %v2272_v62  ;;  %v2624_v44 = vld [vmem:[%s8105_s15 + $0x138] sm:$0xff]  ;;  %v2622_v62 = vld [vmem:[%s8105_s15 + $0x128] sm:$0xff] }
 0x484   :  { %v2330_v20 = vadd.f32 %v2329_v0, %v2301_v9  ;;  %v2630_v0 = vld [vmem:[%s8105_s15 + $0x168] sm:$0xff]  ;;  %v2619_v9 = vld [vmem:[%s8105_s15 + $0x110] sm:$0xff] }
 0x485   :  { %v6866_v41 = vpop.f32.mrf.mxu0 }
 0x486   :  { %v2455_v45 = vmax.f32 %v1986_v46, %v2330_v20  ;;  %v2355_v39 = vpop.f32.mrf.mxu1 }
 0x489   :  { %v2303_v58 = vpop.f32.mrf.mxu3  ;;  %v6844_v54 = vpop.f32.mrf.mxu2 }
 0x48a   :  { %v2304_v1 = vadd.f32 %v2303_v58, %v2275_v34  ;;  %v2382_v48 = vadd.f32 %v6844_v54, %v6842_v33  ;;  %v2105_v33 = vadd.f32 %v6834_v31, %v2076_v37  ;;  %v2606_v31 = vld [vmem:[%s8105_s15 + $0xa8] sm:$0xff] }
 0x48b   :  { %v2626_v37 = vld [vmem:[%s8105_s15 + $0x148] sm:$0xff] }
 0x48c   :  { %v2333_v55 = vadd.f32 %v2332_v47, %v2304_v1  ;;  %v2628_v47 = vld [vmem:[%s8105_s15 + $0x158] sm:$0xff] }
 0x48d   :  { %v2445_v16 = vpop.f32.mrf.mxu0 }
 0x48e   :  { %v2457_v35 = vmax.f32 %v1989_v17, %v2333_v55  ;;  %v6864_v17 = vld [vmem:[%s8104_s5] sm:$0xff]  ;;  %v2358_v52 = vpop.f32.mrf.mxu1 }
 0x490   :  { %4317 = vmatpush.msk.msra.mxu1 %vm1156_vm2, %v2457_v35  ;;  %4323 = vmatpush.msk.msrb.mxu3 %vm1156_vm2, %v2457_v35 }
 0x491   :  { %v2384_v42 = vpop.f32.mrf.mxu2  ;;  %v6853_v5 = vpop.f32.mrf.mxu3 }
 0x492   :  { %2487 = vmatpush.msra.mxu1 %v2455_v45  ;;  %2541 = vmatpush.msrb.mxu3 %v2455_v45  ;;  %v2385_v63 = vadd.f32 %v2384_v42, %v2355_v39  ;;  %v2411_v54 = vadd.f32 %v6853_v5, %v2382_v48  ;;  %v2607_v45 = vld [vmem:[%s8105_s15 + $0xb0] sm:$0xff]  ;;  %v2099_v42 = vadd.f32 %v6816_v43, %v2070_v4  ;;  %v2586_v48 = vld [vmem:[%s8105_s15 + $0x8] sm:$0xff]  ;;  %v2617_v4 = vld [vmem:[%s8105_s15 + $0x100] sm:$0xff] }
 0x494   :  { %2488 = vmatpush.msra.mxu1 %v2453_v14  ;;  %2542 = vmatpush.msrb.mxu3 %v2453_v14  ;;  %v2440_v5 = vadd.f32 %v6846_v26, %v2411_v54  ;;  %v8172_v14 = vld [vmem:[#allocation6_spill] sm:$0xff]  ;;  %v2600_v26 = vld [vmem:[%s8105_s15 + $0x78] sm:$0xff] }
 0x495   :  { %v2448_v46 = vpop.f32.mrf.mxu0  ;;  %v2096_v39 = vadd.f32 %v8172_v14, %v2067_v28  ;;  %v2659_v28 = vld [vmem:[%s8105_s15 + $0x250] sm:$0xff]  ;;  %v2650_v14 = vld [vmem:[%s8105_s15 + $0x208] sm:$0xff] }
 0x496   :  { %2489 = vmatpush.msra.mxu1 %v2451_v13  ;;  %2543 = vmatpush.msrb.mxu3 %v2451_v13  ;;  %v2361_v58 = vpop.f32.mrf.mxu1  ;;  %v2601_v13 = vld [vmem:[%s8105_s15 + $0x80] sm:$0xff] }
 0x497   :  { %4324 = vmatmul.msk.f32.vlgmr.msrb.gmra.mxu3 %vm2461_vm0, %v6859_v10  ;;  %4318 = vmatmul.msk.f32.vlgmr.msra.gmra.mxu1 %vm2461_vm0, %v6864_v17 }
 0x498   :  { %2676 = vmatpush.msrb.mxu1 %v2630_v0  ;;  %2722 = vmatpush.msra.mxu3 %v2631_v11  ;;  %v2598_v0 = vld [vmem:[%s8105_s15 + $0x68] sm:$0xff] }
 0x499   :  { %v2413_v8 = vpop.f32.mrf.mxu3  ;;  %v2387_v15 = vpop.f32.mrf.mxu2  ;;  %v2594_v11 = vld [vmem:[%s8105_s15 + $0x48] sm:$0xff] }
 0x49a   :  { %2677 = vmatpush.msrb.mxu1 %v2627_v53  ;;  %2723 = vmatpush.msra.mxu3 %v2628_v47  ;;  %v2388_v34 = vadd.f32 %v2387_v15, %v2358_v52  ;;  %v2414_v20 = vadd.f32 %v2413_v8, %v2385_v63  ;;  %v2666_v8 = vld [vmem:[%s8105_s15 + $0x288] sm:$0xff]  ;;  %v2597_v15 = vld [vmem:[%s8105_s15 + $0x60] sm:$0xff]  ;;  %v2667_v52 = vld [vmem:[%s8105_s15 + $0x290] sm:$0xff] }
 0x49b   :  { %v2663_v53 = vld [vmem:[%s8105_s15 + $0x270] sm:$0xff]  ;;  %v2592_v47 = vld [vmem:[%s8105_s15 + $0x38] sm:$0xff]  ;;  %v2642_v63 = vld [vmem:[%s8105_s15 + $0x1c8] sm:$0xff] }
 0x49c   :  { %2678 = vmatpush.msrb.mxu1 %v2624_v44  ;;  %2724 = vmatpush.msra.mxu3 %v2625_v51  ;;  %v2443_v40 = vadd.f32 %v6866_v41, %v2414_v20  ;;  %v2452_v41 = vmax.f32 %v2096_v39, %v2440_v5  ;;  %v2661_v44 = vld [vmem:[%s8105_s15 + $0x260] sm:$0xff]  ;;  %v2643_v20 = vld [vmem:[%s8105_s15 + $0x1d0] sm:$0xff]  ;;  %v2602_v5 = vld [vmem:[%s8105_s15 + $0x88] sm:$0xff] }
 0x49d   :  { %v2657_v51 = vld [vmem:[%s8105_s15 + $0x240] sm:$0xff]  ;;  %v2647_v39 = vld [vmem:[%s8105_s15 + $0x1f0] sm:$0xff] }
 0x49e   :  { %2679 = vmatpush.msrb.mxu1 %v2621_v59  ;;  %2725 = vmatpush.msra.mxu3 %v2622_v62  ;;  %v2454_v43 = vmax.f32 %v2099_v42, %v2443_v40  ;;  %v2588_v59 = vld [vmem:[%s8105_s15 + $0x18] sm:$0xff]  ;;  %v2654_v62 = vld [vmem:[%s8105_s15 + $0x228] sm:$0xff] }
 0x49f   :  { %4325 = vmatmul.msk.f32.gmra.mxu3 %vm2461_vm0, %v6875_v61  ;;  %4319 = vmatmul.msk.f32.gmra.mxu1 %vm2461_vm0, %v6880_v50  ;;  %v2634_v40 = vld [vmem:[%s8105_s15 + $0x188] sm:$0xff] }
 0x4a0   :  { %2680 = vmatpush.msrb.mxu1 %v2618_v38  ;;  %2726 = vmatpush.msra.mxu3 %v2619_v9  ;;  %v2585_v38 = vld [vmem:[%s8105_s15] sm:$0xff]  ;;  %v2632_v9 = vld [vmem:[%s8105_s15 + $0x178] sm:$0xff] }
 0x4a1   :  { %v2416_v25 = vpop.f32.mrf.mxu3  ;;  %v2390_v18 = vpop.f32.mrf.mxu2 }
 0x4a2   :  { %v2391_v1 = vadd.f32 %v2390_v18, %v2361_v58  ;;  %v2417_v12 = vadd.f32 %v2416_v25, %v2388_v34  ;;  %2681 = vmatpush.msrb.mxu1 %v2615_v19  ;;  %2727 = vmatpush.msra.mxu3 %v2616_v29  ;;  %v2591_v25 = vld [vmem:[%s8105_s15 + $0x30] sm:$0xff]  ;;  %v2658_v18 = vld [vmem:[%s8105_s15 + $0x248] sm:$0xff]  ;;  %v2645_v58 = vld [vmem:[%s8105_s15 + $0x1e0] sm:$0xff] }
 0x4a3   :  { %v2655_v34 = vld [vmem:[%s8105_s15 + $0x230] sm:$0xff]  ;;  %v2649_v19 = vld [vmem:[%s8105_s15 + $0x200] sm:$0xff] }
 0x4a4   :  { %v2446_v36 = vadd.f32 %v2445_v16, %v2417_v12  ;;  %2682 = vmatpush.msrb.mxu1 %v2612_v7  ;;  %2728 = vmatpush.msra.mxu3 %v2613_v2  ;;  %v2664_v16 = vld [vmem:[%s8105_s15 + $0x278] sm:$0xff]  ;;  %v2633_v29 = vld [vmem:[%s8105_s15 + $0x180] sm:$0xff]  ;;  %v2623_v7 = vld [vmem:[%s8105_s15 + $0x130] sm:$0xff] }
 0x4a5   :  { %v2636_v12 = vld [vmem:[%s8105_s15 + $0x198] sm:$0xff]  ;;  %v2665_v2 = vld [vmem:[%s8105_s15 + $0x280] sm:$0xff] }
 0x4a6   :  { %2683 = vmatpush.msrb.mxu1 %v2609_v56  ;;  %2729 = vmatpush.msra.mxu3 %v2610_v22  ;;  %v2456_v23 = vmax.f32 %v2102_v57, %v2446_v36  ;;  %v2614_v56 = vld [vmem:[%s8105_s15 + $0xe8] sm:$0xff]  ;;  %v2637_v22 = vld [vmem:[%s8105_s15 + $0x1a0] sm:$0xff]  ;;  %v2608_v57 = vld [vmem:[%s8105_s15 + $0xb8] sm:$0xff] }
 0x4a8   :  { %2684 = vmatpush.msrb.mxu1 %v2606_v31  ;;  %2730 = vmatpush.msra.mxu3 %v2607_v45  ;;  %v2605_v31 = vld [vmem:[%s8105_s15 + $0xa0] sm:$0xff] }
 0x4a9   :  { %v2419_v3 = vpop.f32.mrf.mxu3  ;;  %v2653_v45 = vld [vmem:[%s8105_s15 + $0x220] sm:$0xff] }
 0x4aa   :  { %v2420_v55 = vadd.f32 %v2419_v3, %v2391_v1  ;;  %2685 = vmatpush.msrb.mxu1 %v2603_v27  ;;  %2731 = vmatpush.msra.mxu3 %v2604_v30  ;;  %v2639_v1 = vld [vmem:[%s8105_s15 + $0x1b0] sm:$0xff]  ;;  %v2646_v3 = vld [vmem:[%s8105_s15 + $0x1e8] sm:$0xff] }
 0x4ab   :  { %v2599_v27 = vld [vmem:[%s8105_s15 + $0x70] sm:$0xff] }
 0x4ac   :  { %v2449_v35 = vadd.f32 %v2448_v46, %v2420_v55  ;;  %2686 = vmatpush.msrb.mxu1 %v2600_v26  ;;  %2732 = vmatpush.msra.mxu3 %v2601_v13  ;;  %v2620_v55 = vld [vmem:[%s8105_s15 + $0x118] sm:$0xff]  ;;  %v2593_v13 = vld [vmem:[%s8105_s15 + $0x40] sm:$0xff] }
 0x4ad   :  { %v2644_v26 = vld [vmem:[%s8105_s15 + $0x1d8] sm:$0xff] }
 0x4ae   :  { %v2458_v49 = vmax.f32 %v2105_v33, %v2449_v35  ;;  %2687 = vmatpush.msrb.mxu1 %v2597_v15  ;;  %2733 = vmatpush.msra.mxu3 %v2598_v0  ;;  %v2611_v33 = vld [vmem:[%s8105_s15 + $0xd0] sm:$0xff]  ;;  %v2662_v35 = vld [vmem:[%s8105_s15 + $0x268] sm:$0xff] }
 0x4af   :  { %v2638_v15 = vld [vmem:[%s8105_s15 + $0x1a8] sm:$0xff]  ;;  %v2635_v0 = vld [vmem:[%s8105_s15 + $0x190] sm:$0xff] }
 0x4b0   :  { %4320 = vmatpush.msk.msra.mxu2 %vm1156_vm2, %v2458_v49  ;;  %4326 = vmatpush.msk.msrb.mxu0 %vm1156_vm2, %v2458_v49  ;;  %v2656_v49 = vld [vmem:[%s8105_s15 + $0x238] sm:$0xff] }
 0x4b1   :  { %2688 = vmatpush.msrb.mxu1 %v2594_v11  ;;  %v2886_v11 = vld [vmem:[%s8106_s2 + $0xf0] sm:$0xff] }
 0x4b2   :  { %2510 = vmatpush.msra.mxu2 %v2456_v23  ;;  %2564 = vmatpush.msrb.mxu0 %v2456_v23 }
 0x4b3   :  { %2689 = vmatpush.msrb.mxu1 %v2591_v25  ;;  %v2885_v25 = vld [vmem:[%s8106_s2 + $0xe8] sm:$0xff] }
 0x4b4   :  { %2511 = vmatpush.msra.mxu2 %v2454_v43  ;;  %2565 = vmatpush.msrb.mxu0 %v2454_v43  ;;  %v2596_v43 = vld [vmem:[%s8105_s15 + $0x58] sm:$0xff] }
 0x4b5   :  { %2690 = vmatpush.msrb.mxu1 %v2588_v59 }
 0x4b6   :  { %2512 = vmatpush.msra.mxu2 %v2452_v41  ;;  %2566 = vmatpush.msrb.mxu0 %v2452_v41  ;;  %v2641_v41 = vld [vmem:[%s8105_s15 + $0x1c0] sm:$0xff] }
 0x4b7   :  { %4321 = vmatmul.msk.f32.vlgmr.msra.gmra.mxu2 %vm2461_vm0, %v6864_v17  ;;  %4327 = vmatmul.msk.f32.vlgmr.msrb.gmra.mxu0 %vm2461_vm0, %v6859_v10  ;;  %v2595_v17 = vld [vmem:[%s8105_s15 + $0x50] sm:$0xff]  ;;  %v2660_v10 = vld [vmem:[%s8105_s15 + $0x258] sm:$0xff] }
 0x4b8   :  { %2703 = vmatpush.msrb.mxu2 %v2666_v8  ;;  %2749 = vmatpush.msra.mxu0 %v2667_v52  ;;  %v2590_v8 = vld [vmem:[%s8105_s15 + $0x28] sm:$0xff]  ;;  %v2587_v52 = vld [vmem:[%s8105_s15 + $0x10] sm:$0xff] }
 0x4b9   :  { %2734 = vmatpush.msra.mxu3 %v2595_v17  ;;  %2691 = vmatpush.msrb.mxu1 %v2585_v38  ;;  %v2871_v17 = vld [vmem:[%s8106_s2 + $0x78] sm:$0xff]  ;;  %v2882_v38 = vld [vmem:[%s8106_s2 + $0xd0] sm:$0xff] }
 0x4ba   :  { %2704 = vmatpush.msrb.mxu2 %v2663_v53  ;;  %2750 = vmatpush.msra.mxu0 %v2664_v16  ;;  %v2887_v53 = vld [vmem:[%s8106_s2 + $0xf8] sm:$0xff] }
 0x4bb   :  { %2735 = vmatpush.msra.mxu3 %v2592_v47  ;;  %2768 = vmatpush.msra.mxu1 %v2632_v9  ;;  %v2884_v47 = vld [vmem:[%s8106_s2 + $0xe0] sm:$0xff]  ;;  %v2866_v9 = vld [vmem:[%s8106_s2 + $0x50] sm:$0xff] }
 0x4bc   :  { %2705 = vmatpush.msrb.mxu2 %v2660_v10  ;;  %2751 = vmatpush.msra.mxu0 %v2661_v44  ;;  %v2870_v10 = vld [vmem:[%s8106_s2 + $0x70] sm:$0xff]  ;;  %v2869_v44 = vld [vmem:[%s8106_s2 + $0x68] sm:$0xff] }
 0x4bd   :  { %2769 = vmatpush.msra.mxu1 %v2629_v60  ;;  %2736 = vmatpush.msra.mxu3 %v2589_v6  ;;  %v2865_v60 = vld [vmem:[%s8106_s2 + $0x48] sm:$0xff] }
 0x4be   :  { %2706 = vmatpush.msrb.mxu2 %v2657_v51  ;;  %2752 = vmatpush.msra.mxu0 %v2658_v18  ;;  %v2868_v18 = vld [vmem:[%s8106_s2 + $0x60] sm:$0xff]  ;;  %v2877_v6 = vld [vmem:[%s8106_s2 + $0xa8] sm:$0xff] }
 0x4bf   :  { %4322 = vmatmul.msk.f32.gmra.mxu2 %vm2461_vm0, %v6880_v50  ;;  %4328 = vmatmul.msk.f32.gmra.mxu0 %vm2461_vm0, %v6875_v61  ;;  %v2648_v50 = vld [vmem:[%s8105_s15 + $0x1f8] sm:$0xff] }
 0x4c0   :  { %2707 = vmatpush.msrb.mxu2 %v2654_v62  ;;  %v2652_v61 = vld [vmem:[%s8105_s15 + $0x218] sm:$0xff]  ;;  %2753 = vmatpush.msra.mxu0 %v2655_v34  ;;  %v2881_v34 = vld [vmem:[%s8106_s2 + $0xc8] sm:$0xff] }
 0x4c1   :  { %2770 = vmatpush.msra.mxu1 %v2626_v37  ;;  %2737 = vmatpush.msra.mxu3 %v2586_v48  ;;  %v2883_v62 = vld [vmem:[%s8106_s2 + $0xd8] sm:$0xff] }
 0x4c2   :  { %2708 = vmatpush.msrb.mxu2 %v2651_v24  ;;  %2754 = vmatpush.msra.mxu0 %v2652_v61  ;;  %v2867_v24 = vld [vmem:[%s8106_s2 + $0x58] sm:$0xff]  ;;  %v2880_v61 = vld [vmem:[%s8106_s2 + $0xc0] sm:$0xff] }
 0x4c3   :  { %2771 = vmatpush.msra.mxu1 %v2623_v7  ;;  %2921 = vmatpush.msrb.mxu3 %v2887_v53  ;;  %v2879_v37 = vld [vmem:[%s8106_s2 + $0xb8] sm:$0xff]  ;;  %v2876_v7 = vld [vmem:[%s8106_s2 + $0xa0] sm:$0xff]  ;;  %v4359_v53 = vld [vmem:[%s8106_s2 + $0x1d0] sm:$0xff] }
 0x4c4   :  { %2709 = vmatpush.msrb.mxu2 %v2648_v50  ;;  %2755 = vmatpush.msra.mxu0 %v2649_v19  ;;  %v2875_v48 = vld [vmem:[%s8106_s2 + $0x98] sm:$0xff] }
 0x4c5   :  { %2772 = vmatpush.msra.mxu1 %v2620_v55  ;;  %2922 = vmatpush.msrb.mxu3 %v2886_v11  ;;  %v2874_v55 = vld [vmem:[%s8106_s2 + $0x90] sm:$0xff]  ;;  %v4378_v11 = vld [vmem:[%s8106_s2 + $0x258] sm:$0xff] }
 0x4c6   :  { %2710 = vmatpush.msrb.mxu2 %v2645_v58  ;;  %2756 = vmatpush.msra.mxu0 %v2646_v3  ;;  %v2862_v3 = vld [vmem:[%s8106_s2 + $0x30] sm:$0xff] }
 0x4c7   :  { %2773 = vmatpush.msra.mxu1 %v2617_v4  ;;  %2923 = vmatpush.msrb.mxu3 %v2885_v25  ;;  %v2858_v4 = vld [vmem:[%s8106_s2 + $0x10] sm:$0xff]  ;;  %v4346_v25 = vld [vmem:[%s8106_s2 + $0x168] sm:$0xff] }
 0x4c8   :  { %2711 = vmatpush.msrb.mxu2 %v2642_v63  ;;  %2757 = vmatpush.msra.mxu0 %v2643_v20  ;;  %v2864_v63 = vld [vmem:[%s8106_s2 + $0x40] sm:$0xff] }
 0x4c9   :  { %2774 = vmatpush.msra.mxu1 %v2614_v56  ;;  %2924 = vmatpush.msrb.mxu3 %v2884_v47  ;;  %v2860_v20 = vld [vmem:[%s8106_s2 + $0x20] sm:$0xff]  ;;  %v2857_v56 = vld [vmem:[%s8106_s2 + $0x8] sm:$0xff] }
 0x4ca   :  { %2712 = vmatpush.msrb.mxu2 %v2639_v1  ;;  %2758 = vmatpush.msra.mxu0 %v2640_v32  ;;  %v4352_v1 = vld [vmem:[%s8106_s2 + $0x198] sm:$0xff]  ;;  %v2873_v32 = vld [vmem:[%s8106_s2 + $0x88] sm:$0xff] }
 0x4cb   :  { %2775 = vmatpush.msra.mxu1 %v2611_v33  ;;  %2925 = vmatpush.msrb.mxu3 %v2883_v62  ;;  %v4390_v33 = vld [vmem:[%s8106_s2 + $0x2b8] sm:$0xff]  ;;  %v4376_v47 = vld [vmem:[%s8106_s2 + $0x248] sm:$0xff]  ;;  %v4375_v62 = vld [vmem:[%s8106_s2 + $0x240] sm:$0xff] }
 0x4cc   :  { %2713 = vmatpush.msrb.mxu2 %v2636_v12  ;;  %2759 = vmatpush.msra.mxu0 %v2637_v22  ;;  %v2878_v12 = vld [vmem:[%s8106_s2 + $0xb0] sm:$0xff]  ;;  %v4388_v22 = vld [vmem:[%s8106_s2 + $0x2a8] sm:$0xff] }
 0x4cd   :  { %2776 = vmatpush.msra.mxu1 %v2608_v57  ;;  %2926 = vmatpush.msrb.mxu3 %v2882_v38  ;;  %v4387_v57 = vld [vmem:[%s8106_s2 + $0x2a0] sm:$0xff]  ;;  %v4355_v38 = vld [vmem:[%s8106_s2 + $0x1b0] sm:$0xff] }
 0x4ce   :  { %2714 = vmatpush.msrb.mxu2 %v2633_v29  ;;  %2760 = vmatpush.msra.mxu0 %v2634_v40  ;;  %v2863_v29 = vld [vmem:[%s8106_s2 + $0x38] sm:$0xff]  ;;  %v4366_v40 = vld [vmem:[%s8106_s2 + $0x208] sm:$0xff] }
 0x4cf   :  { %2777 = vmatpush.msra.mxu1 %v2605_v31  ;;  %2927 = vmatpush.msrb.mxu3 %v2881_v34  ;;  %v4365_v31 = vld [vmem:[%s8106_s2 + $0x200] sm:$0xff]  ;;  %v4354_v34 = vld [vmem:[%s8106_s2 + $0x1a8] sm:$0xff] }
 0x4d0   :  { %2795 = vmatpush.msra.mxu2 %v2668_v21  ;;  %2898 = vmatpush.msrb.mxu0 %v2871_v17  ;;  %v2861_v21 = vld [vmem:[%s8106_s2 + $0x28] sm:$0xff] }
 0x4d1   :  { %2778 = vmatpush.msra.mxu1 %v2602_v5  ;;  %2928 = vmatpush.msrb.mxu3 %v2880_v61  ;;  %v4384_v5 = vld [vmem:[%s8106_s2 + $0x288] sm:$0xff]  ;;  %v2891_v61 = vld [vmem:[%s8106_s2 + $0x118] sm:$0xff] }
 0x4d2   :  { %2796 = vmatpush.msra.mxu2 %v2665_v2  ;;  %2899 = vmatpush.msrb.mxu0 %v2870_v10  ;;  %v2859_v2 = vld [vmem:[%s8106_s2 + $0x18] sm:$0xff]  ;;  %v4358_v17 = vld [vmem:[%s8106_s2 + $0x1c8] sm:$0xff]  ;;  %v4377_v10 = vld [vmem:[%s8106_s2 + $0x250] sm:$0xff] }
 0x4d3   :  { %2779 = vmatpush.msra.mxu1 %v2599_v27  ;;  %2929 = vmatpush.msrb.mxu3 %v2879_v37  ;;  %v4383_v27 = vld [vmem:[%s8106_s2 + $0x280] sm:$0xff]  ;;  %v4340_v37 = vld [vmem:[%s8106_s2 + $0x138] sm:$0xff] }
 0x4d4   :  { %2797 = vmatpush.msra.mxu2 %v2662_v35  ;;  %2900 = vmatpush.msrb.mxu0 %v2869_v44  ;;  %v4368_v35 = vld [vmem:[%s8106_s2 + $0x218] sm:$0xff]  ;;  %v4357_v44 = vld [vmem:[%s8106_s2 + $0x1c0] sm:$0xff] }
 0x4d5   :  { %2780 = vmatpush.msra.mxu1 %v2596_v43  ;;  %2930 = vmatpush.msrb.mxu3 %v2878_v12  ;;  %v4381_v43 = vld [vmem:[%s8106_s2 + $0x270] sm:$0xff]  ;;  %v2888_v12 = vld [vmem:[%s8106_s2 + $0x100] sm:$0xff] }
 0x4d6   :  { %2798 = vmatpush.msra.mxu2 %v2659_v28  ;;  %2901 = vmatpush.msrb.mxu0 %v2868_v18  ;;  %v4367_v28 = vld [vmem:[%s8106_s2 + $0x210] sm:$0xff]  ;;  %v4344_v18 = vld [vmem:[%s8106_s2 + $0x158] sm:$0xff] }
 0x4d7   :  { %2781 = vmatpush.msra.mxu1 %v2593_v13  ;;  %2931 = vmatpush.msrb.mxu3 %v2877_v6  ;;  %v4361_v13 = vld [vmem:[%s8106_s2 + $0x1e0] sm:$0xff] }
 0x4d8   :  { %2799 = vmatpush.msra.mxu2 %v2656_v49  ;;  %2902 = vmatpush.msrb.mxu0 %v2867_v24  ;;  %v4386_v49 = vld [vmem:[%s8106_s2 + $0x298] sm:$0xff]  ;;  %v4343_v24 = vld [vmem:[%s8106_s2 + $0x150] sm:$0xff] }
 0x4d9   :  { %2782 = vmatpush.msra.mxu1 %v2590_v8  ;;  %2932 = vmatpush.msrb.mxu3 %v2876_v7  ;;  %v4349_v8 = vld [vmem:[%s8106_s2 + $0x180] sm:$0xff]  ;;  %v4338_v7 = vld [vmem:[%s8106_s2 + $0x128] sm:$0xff] }
 0x4da   :  { %2800 = vmatpush.msra.mxu2 %v2653_v45  ;;  %2903 = vmatpush.msrb.mxu0 %v2866_v9  ;;  %v4385_v45 = vld [vmem:[%s8106_s2 + $0x290] sm:$0xff]  ;;  %v4342_v9 = vld [vmem:[%s8106_s2 + $0x148] sm:$0xff] }
 0x4db   :  { %2783 = vmatpush.msra.mxu1 %v2587_v52  ;;  %2933 = vmatpush.msrb.mxu3 %v2875_v48  ;;  %v4379_v52 = vld [vmem:[%s8106_s2 + $0x260] sm:$0xff] }
 0x4dc   :  { %2801 = vmatpush.msra.mxu2 %v2650_v14  ;;  %2904 = vmatpush.msrb.mxu0 %v2865_v60  ;;  %v4351_v14 = vld [vmem:[%s8106_s2 + $0x190] sm:$0xff]  ;;  %v4341_v60 = vld [vmem:[%s8106_s2 + $0x140] sm:$0xff] }
 0x4dd   :  { %2934 = vmatpush.msrb.mxu3 %v2874_v55  ;;  %v4337_v55 = vld [vmem:[%s8106_s2 + $0x120] sm:$0xff] }
 0x4de   :  { %2802 = vmatpush.msra.mxu2 %v2647_v39  ;;  %2905 = vmatpush.msrb.mxu0 %v2864_v63  ;;  %v4362_v39 = vld [vmem:[%s8106_s2 + $0x1e8] sm:$0xff] }
 0x4df   :  { %2935 = vmatpush.msrb.mxu3 %v2873_v32  ;;  %v2889_v63 = vld [vmem:[%s8106_s2 + $0x108] sm:$0xff] }
 0x4e0   :  { %2803 = vmatpush.msra.mxu2 %v2644_v26  ;;  %2906 = vmatpush.msrb.mxu0 %v2863_v29  ;;  %v4350_v26 = vld [vmem:[%s8106_s2 + $0x188] sm:$0xff]  ;;  %v4372_v29 = vld [vmem:[%s8106_s2 + $0x238] sm:$0xff] }
 0x4e1   :  { %v4370_v32 = vld [vmem:[%s8106_s2 + $0x228] sm:$0xff] }
 0x4e2   :  { %2804 = vmatpush.msra.mxu2 %v2641_v41  ;;  %2907 = vmatpush.msrb.mxu0 %v2862_v3  ;;  %v4380_v41 = vld [vmem:[%s8106_s2 + $0x268] sm:$0xff] }
 0x4e4   :  { %2805 = vmatpush.msra.mxu2 %v2638_v15  ;;  %2908 = vmatpush.msrb.mxu0 %v2861_v21  ;;  %v4360_v15 = vld [vmem:[%s8106_s2 + $0x1d8] sm:$0xff] }
 0x4e6   :  { %2806 = vmatpush.msra.mxu2 %v2635_v0  ;;  %2909 = vmatpush.msrb.mxu0 %v2860_v20  ;;  %v4348_v0 = vld [vmem:[%s8106_s2 + $0x178] sm:$0xff]  ;;  %v8173_v20 = vmov 0.0  }
 0x4e7   :  { %2581 = vst.msk [vmem:[#allocation3 + $0x10] sm:$0x3] %vm2580_vm10, %v8173_v20 }
 0x4e8   :  { %2910 = vmatpush.msrb.mxu0 %v2859_v2  ;;  %v4371_v2 = vld [vmem:[%s8106_s2 + $0x230] sm:$0xff]  ;;  %2584 = vst.msk [vmem:[#allocation3 + $0x40] sm:$0x3] %vm2580_vm10, %v8173_v20  ;;  %vm3872_vm10 = vcmask 457728  }
 0x4e9   :  { %2845 = vst.msk [vmem:[#allocation4] sm:$0xff] %vm2844_vm3, %v8173_v20 }
 0x4ea   :  { %2911 = vmatpush.msrb.mxu0 %v2858_v4  ;;  %2847 = vst.msk [vmem:[#allocation4 + $0x8] sm:$0x3f] %vm2846_vm4, %v8173_v20 }
 0x4ec   :  { %2912 = vmatpush.msrb.mxu0 %v2857_v56  ;;  %v4369_v56 = vld [vmem:[%s8106_s2 + $0x220] sm:$0xff] }
 0x514   :  { %v2491_v46 = vpop.f32.mrf.mxu1 }
 0x51a   :  { %v2545_v54 = vpop.f32.mrf.mxu3 }
 0x51b   :  { %v2574_v36 = vmax.f32 %v2491_v46, %v2545_v54  ;;  %v2872_v46 = vld [vmem:[%s8106_s2 + $0x80] sm:$0xff] }
 0x51c   :  { %v2494_v42 = vpop.f32.mrf.mxu1  ;;  %v2856_v54 = vld [vmem:[%s8106_s2] sm:$0xff]  ;;  %2936 = vmatpush.msrb.mxu3 %v2872_v46 }
 0x51d   :  { %2738 = vmatmul.f32.vlgmr.msra.gmra.mxu3 %v2574_v36  ;;  %2692 = vmatmul.f32.vlgmr.msrb.gmra.mxu1 %v2574_v36 }
 0x51e   :  { %3040 = vmatpush.msrb.mxu1 %v4352_v1  ;;  %3182 = vmatpush.msra.mxu3 %v4390_v33  ;;  %v4339_v1 = vld [vmem:[%s8106_s2 + $0x130] sm:$0xff]  ;;  %v4410_v33 = vld [vmem:[%s8106_s2 + $0x358] sm:$0xff] }
 0x51f   :  { %2913 = vmatpush.msrb.mxu0 %v2856_v54 }
 0x520   :  { %3041 = vmatpush.msrb.mxu1 %v4351_v14  ;;  %v4442_v14 = vld [vmem:[%s8106_s2 + $0x448] sm:$0xff] }
 0x522   :  { %v2548_v23 = vpop.f32.mrf.mxu3  ;;  %3042 = vmatpush.msrb.mxu1 %v4350_v26  ;;  %v4441_v26 = vld [vmem:[%s8106_s2 + $0x440] sm:$0xff] }
 0x523   :  { %v2576_v30 = vmax.f32 %v2494_v42, %v2548_v23  ;;  %v4364_v42 = vld [vmem:[%s8106_s2 + $0x1f8] sm:$0xff]  ;;  %v4363_v23 = vld [vmem:[%s8106_s2 + $0x1f0] sm:$0xff] }
 0x524   :  { %3043 = vmatpush.msrb.mxu1 %v4349_v8  ;;  %v4427_v8 = vld [vmem:[%s8106_s2 + $0x3d0] sm:$0xff] }
 0x525   :  { %2741 = vmatmul.f32.gmra.mxu3 %v2576_v30  ;;  %2695 = vmatmul.f32.gmra.mxu1 %v2576_v30 }
 0x526   :  { %3044 = vmatpush.msrb.mxu1 %v4348_v0 }
 0x52d   :  { %2784 = vmatmul.f32.vlgmr.msra.gmra.mxu1 %v2574_v36  ;;  %v4389_v36 = vld [vmem:[%s8106_s2 + $0x2b0] sm:$0xff] }
 0x52e   :  { %3183 = vmatpush.msra.mxu3 %v4389_v36 }
 0x530   :  { %3184 = vmatpush.msra.mxu3 %v4388_v22 }
 0x532   :  { %3185 = vmatpush.msra.mxu3 %v4387_v57  ;;  %v4408_v57 = vld [vmem:[%s8106_s2 + $0x348] sm:$0xff] }
 0x534   :  { %v2568_v16 = vpop.f32.mrf.mxu0  ;;  %3186 = vmatpush.msra.mxu3 %v4386_v49  ;;  %v4407_v49 = vld [vmem:[%s8106_s2 + $0x340] sm:$0xff] }
 0x535   :  { %2787 = vmatmul.f32.gmra.mxu1 %v2576_v30  ;;  %v4382_v30 = vld [vmem:[%s8106_s2 + $0x278] sm:$0xff] }
 0x536   :  { %3187 = vmatpush.msra.mxu3 %v4385_v45  ;;  %v4444_v45 = vld [vmem:[%s8106_s2 + $0x458] sm:$0xff] }
 0x538   :  { %3188 = vmatpush.msra.mxu3 %v4384_v5 }
 0x53a   :  { %v2514_v51 = vpop.f32.mrf.mxu2  ;;  %3189 = vmatpush.msra.mxu3 %v4383_v27 }
 0x53b   :  { %v2575_v59 = vmax.f32 %v2514_v51, %v2568_v16  ;;  %v4347_v16 = vld [vmem:[%s8106_s2 + $0x170] sm:$0xff]  ;;  %v4345_v51 = vld [vmem:[%s8106_s2 + $0x160] sm:$0xff] }
 0x53c   :  { %v2571_v50 = vpop.f32.mrf.mxu0  ;;  %3190 = vmatpush.msra.mxu3 %v4382_v30  ;;  %3045 = vmatpush.msrb.mxu1 %v4347_v16  ;;  %v4439_v16 = vld [vmem:[%s8106_s2 + $0x430] sm:$0xff] }
 0x53d   :  { %4329 = vmatmul.msk.f32.vlgmr.msrb.gmra.mxu2 %vm2669_vm9, %v2575_v59  ;;  %4331 = vmatmul.msk.f32.vlgmr.msra.gmra.mxu0 %vm2669_vm9, %v2575_v59 }
 0x53e   :  { %3063 = vmatpush.msra.mxu0 %v4368_v35  ;;  %3191 = vmatpush.msra.mxu3 %v4381_v43  ;;  %v4409_v35 = vld [vmem:[%s8106_s2 + $0x350] sm:$0xff]  ;;  %v4428_v43 = vld [vmem:[%s8106_s2 + $0x3d8] sm:$0xff] }
 0x53f   :  { %3046 = vmatpush.msrb.mxu1 %v4346_v25  ;;  %2956 = vmatpush.msrb.mxu2 %v2891_v61  ;;  %v4425_v25 = vld [vmem:[%s8106_s2 + $0x3c0] sm:$0xff]  ;;  %v4423_v61 = vld [vmem:[%s8106_s2 + $0x3b0] sm:$0xff] }
 0x540   :  { %3064 = vmatpush.msra.mxu0 %v4367_v28  ;;  %3192 = vmatpush.msra.mxu3 %v4380_v41 }
 0x541   :  { %3047 = vmatpush.msrb.mxu1 %v4345_v51 }
 0x542   :  { %v2517_v58 = vpop.f32.mrf.mxu2  ;;  %3065 = vmatpush.msra.mxu0 %v4366_v40  ;;  %3193 = vmatpush.msra.mxu3 %v4379_v52  ;;  %v4440_v52 = vld [vmem:[%s8106_s2 + $0x438] sm:$0xff] }
 0x543   :  { %v2577_v19 = vmax.f32 %v2517_v58, %v2571_v50  ;;  %3048 = vmatpush.msrb.mxu1 %v4344_v18  ;;  %v4353_v50 = vld [vmem:[%s8106_s2 + $0x1a0] sm:$0xff]  ;;  %v2890_v58 = vld [vmem:[%s8106_s2 + $0x110] sm:$0xff]  ;;  %v4424_v18 = vld [vmem:[%s8106_s2 + $0x3b8] sm:$0xff] }
 0x544   :  { %3066 = vmatpush.msra.mxu0 %v4365_v31  ;;  %3194 = vmatpush.msra.mxu3 %v4378_v11 }
 0x545   :  { %4330 = vmatmul.msk.f32.gmra.mxu2 %vm2669_vm9, %v2577_v19  ;;  %4332 = vmatmul.msk.f32.gmra.mxu0 %vm2669_vm9, %v2577_v19 }
 0x546   :  { %3067 = vmatpush.msra.mxu0 %v4364_v42  ;;  %3195 = vmatpush.msra.mxu3 %v4377_v10 }
 0x547   :  { %3049 = vmatpush.msrb.mxu1 %v4343_v24  ;;  %2957 = vmatpush.msrb.mxu2 %v2890_v58 }
 0x548   :  { %3068 = vmatpush.msra.mxu0 %v4363_v23  ;;  %3196 = vmatpush.msra.mxu3 %v4376_v47  ;;  %v4443_v23 = vld [vmem:[%s8106_s2 + $0x450] sm:$0xff] }
 0x549   :  { %3050 = vmatpush.msrb.mxu1 %v4342_v9  ;;  %2958 = vmatpush.msrb.mxu2 %v2889_v63 }
 0x54a   :  { %3069 = vmatpush.msra.mxu0 %v4362_v39  ;;  %3197 = vmatpush.msra.mxu3 %v4375_v62 }
 0x54b   :  { %3051 = vmatpush.msrb.mxu1 %v4341_v60  ;;  %2959 = vmatpush.msrb.mxu2 %v2888_v12 }
 0x54c   :  { %3070 = vmatpush.msra.mxu0 %v4361_v13 }
 0x54d   :  { %4333 = vmatmul.msk.f32.vlgmr.msra.gmra.mxu2 %vm2669_vm9, %v2575_v59  ;;  %v4356_v59 = vld [vmem:[%s8106_s2 + $0x1b8] sm:$0xff]  ;;  %3052 = vmatpush.msrb.mxu1 %v4340_v37 }
 0x54e   :  { %3071 = vmatpush.msra.mxu0 %v4360_v15  ;;  %3098 = vmatpush.msra.mxu2 %v4372_v29  ;;  %v4448_v37 = vld [vmem:[%s8106_s2 + $0x478] sm:$0xff]  ;;  %v4422_v29 = vld [vmem:[%s8106_s2 + $0x3a8] sm:$0xff] }
 0x54f   :  { %3053 = vmatpush.msrb.mxu1 %v4339_v1 }
 0x550   :  { %3072 = vmatpush.msra.mxu0 %v4359_v53  ;;  %3099 = vmatpush.msra.mxu2 %v4371_v2  ;;  %v4426_v53 = vld [vmem:[%s8106_s2 + $0x3c8] sm:$0xff] }
 0x551   :  { %3054 = vmatpush.msrb.mxu1 %v4338_v7  ;;  %v4435_v7 = vld [vmem:[%s8106_s2 + $0x410] sm:$0xff] }
 0x552   :  { %3073 = vmatpush.msra.mxu0 %v4358_v17  ;;  %3100 = vmatpush.msra.mxu2 %v4370_v32  ;;  %v4406_v32 = vld [vmem:[%s8106_s2 + $0x338] sm:$0xff] }
 0x553   :  { %3055 = vmatpush.msrb.mxu1 %v4337_v55  ;;  %v4421_v55 = vld [vmem:[%s8106_s2 + $0x3a0] sm:$0xff] }
 0x554   :  { %3074 = vmatpush.msra.mxu0 %v4357_v44  ;;  %3101 = vmatpush.msra.mxu2 %v4369_v56  ;;  %v4438_v44 = vld [vmem:[%s8106_s2 + $0x428] sm:$0xff] }
 0x555   :  { %4334 = vmatmul.msk.f32.gmra.mxu2 %vm2669_vm9, %v2577_v19  ;;  %3240 = vmatpush.msra.mxu1 %v4410_v33  ;;  %v4434_v56 = vld [vmem:[%s8106_s2 + $0x408] sm:$0xff]  ;;  %v4420_v33 = vld [vmem:[%s8106_s2 + $0x398] sm:$0xff]  ;;  %vm3803_vm9 = vcmask 113664  }
 0x556   :  { %3075 = vmatpush.msra.mxu0 %v4356_v59 }
 0x557   :  { %3241 = vmatpush.msra.mxu1 %v4409_v35  ;;  %v4405_v35 = vld [vmem:[%s8106_s2 + $0x330] sm:$0xff] }
 0x558   :  { %3076 = vmatpush.msra.mxu0 %v4355_v38  ;;  %v4437_v38 = vld [vmem:[%s8106_s2 + $0x420] sm:$0xff] }
 0x559   :  { %3242 = vmatpush.msra.mxu1 %v4408_v57  ;;  %v4419_v57 = vld [vmem:[%s8106_s2 + $0x390] sm:$0xff] }
 0x55a   :  { %3077 = vmatpush.msra.mxu0 %v4354_v34 }
 0x55b   :  { %3243 = vmatpush.msra.mxu1 %v4407_v49  ;;  %v4446_v49 = vld [vmem:[%s8106_s2 + $0x468] sm:$0xff] }
 0x55c   :  { %3078 = vmatpush.msra.mxu0 %v4353_v50 }
 0x59a   :  { %v2693_v6 = vpop.f32.mrf.mxu1 }
 0x5a0   :  { %v2739_v19 = vpop.f32.mrf.mxu3 }
 0x5a2   :  { %v2696_v40 = vpop.f32.mrf.mxu1 }
 0x5a8   :  { %v2742_v46 = vpop.f32.mrf.mxu3 }
 0x5aa   :  { %v2785_v15 = vpop.f32.mrf.mxu1 }
 0x5b2   :  { %v2788_v63 = vpop.f32.mrf.mxu1 }
 0x5ba   :  { %v2762_v3 = vpop.f32.mrf.mxu0 }
 0x5bb   :  { %v2763_v21 = vadd.f32 %v2762_v3, %v2739_v19  ;;  %v4436_v19 = vld [vmem:[%s8106_s2 + $0x418] sm:$0xff] }
 0x5bd   :  { %v2822_v48 = vrot.slane %v2763_v21, 6 }
 0x5bf   :  { %2837 = vst [vmem:[#allocation3 + $0x8] sm:$0xfc] %v2822_v48 }
 0x5c0   :  { %v2716_v4 = vpop.f32.mrf.mxu2 }
 0x5c1   :  { %v2717_v54 = vadd.f32 %v2716_v4, %v2693_v6 }
 0x5c2   :  { %v2765_v36 = vpop.f32.mrf.mxu0 }
 0x5c3   :  { %v2821_v22 = vrot.slane %v2717_v54, 6  ;;  %v2766_v28 = vadd.f32 %v2765_v36, %v2742_v46 }
 0x5c5   :  { %2836 = vst [vmem:[#allocation3] sm:$0xfc] %v2821_v22  ;;  %v2826_v31 = vrot.slane %v2766_v28, 6  ;;  %v4404_v28 = vld [vmem:[%s8106_s2 + $0x328] sm:$0xff] }
 0x5c6   :  { %v2851_v42 = vld [vmem:[#allocation3 + $0x8] sm:$0xff] }
 0x5c7   :  { %v7457_v5 = vsel %vm2820_vm11, %v2822_v48, %v2826_v31  ;;  %2937 = vmatmul.f32.vlgmr.msrb.gmra.mxu3 %v2851_v42  ;;  %v2974_v6 = vld [vmem:[#allocation3 + $0x8] sm:$0xfe]  ;;  %v4447_v48 = vld [vmem:[%s8106_s2 + $0x470] sm:$0xff]  ;;  %v4403_v31 = vld [vmem:[%s8106_s2 + $0x320] sm:$0xff] }
 0x5c8   :  { %2841 = vst [vmem:[#allocation3 + $0x20] sm:$0xff] %v7457_v5  ;;  %v2719_v27 = vpop.f32.mrf.mxu2  ;;  %3359 = vmatpush.msrb.mxu3 %v4444_v45  ;;  %v3026_v4 = vrot.slane %v2974_v6, 1  ;;  %v4418_v45 = vld [vmem:[%s8106_s2 + $0x388] sm:$0xff]  ;;  %v4431_v42 = vld [vmem:[%s8106_s2 + $0x3f0] sm:$0xff]  ;;  %v4479_v6 = vld [vmem:[%s8106_s2 + $0x560] sm:$0xff] }
 0x5c9   :  { %v2720_v30 = vadd.f32 %v2719_v27, %v2696_v40  ;;  %v4432_v40 = vld [vmem:[%s8106_s2 + $0x3f8] sm:$0xff]  ;;  %v4445_v27 = vld [vmem:[%s8106_s2 + $0x460] sm:$0xff] }
 0x5ca   :  { %3360 = vmatpush.msrb.mxu3 %v4443_v23  ;;  %v4402_v23 = vld [vmem:[%s8106_s2 + $0x318] sm:$0xff] }
 0x5cb   :  { %v2824_v39 = vrot.slane %v2720_v30, 6  ;;  %v4417_v30 = vld [vmem:[%s8106_s2 + $0x380] sm:$0xff] }
 0x5cc   :  { %v2850_v13 = vld [vmem:[#allocation3] sm:$0xff]  ;;  %3361 = vmatpush.msrb.mxu3 %v4442_v14 }
 0x5cd   :  { %v7473_v41 = vsel %vm2820_vm11, %v2821_v22, %v2824_v39  ;;  %2914 = vmatmul.f32.vlgmr.msrb.gmra.mxu0 %v2850_v13  ;;  %v3115_v17 = vld [vmem:[#allocation3] sm:$0xfc]  ;;  %v3258_v39 = vld [vmem:[#allocation3 + $0x8] sm:$0xf8]  ;;  %v4401_v13 = vld [vmem:[%s8106_s2 + $0x310] sm:$0xff] }
 0x5ce   :  { %2840 = vst [vmem:[#allocation3 + $0x18] sm:$0xff] %v7473_v41  ;;  %3336 = vmatpush.msrb.mxu0 %v4428_v43  ;;  %3362 = vmatpush.msrb.mxu3 %v4441_v26  ;;  %v2973_v51 = vld [vmem:[#allocation3] sm:$0xfe]  ;;  %v3165_v59 = vrot.slane %v3115_v17, 2  ;;  %v3166_v62 = vrot.slane %v7473_v41, 2  ;;  %v4430_v43 = vld [vmem:[%s8106_s2 + $0x3e8] sm:$0xff] }
 0x5cf   :  { %v2854_v0 = vld [vmem:[#allocation3 + $0x20] sm:$0x3f]  ;;  %v3023_v9 = vrot.slane %v2973_v51, 1  ;;  %v4400_v17 = vld [vmem:[%s8106_s2 + $0x308] sm:$0xff]  ;;  %v4482_v51 = vld [vmem:[%s8106_s2 + $0x578] sm:$0xff] }
 0x5d0   :  { %v2808_v11 = vpop.f32.mrf.mxu2  ;;  %2940 = vmatmul.f32.gmra.mxu3 %v2854_v0  ;;  %3337 = vmatpush.msrb.mxu0 %v4427_v8  ;;  %v7504_v60 = vld [vmem:[#allocation3 + $0x20] sm:$0x7f]  ;;  %v3167_v58 = vsel %vm3164_vm13, %v3165_v59, %v3166_v62 }
 0x5d1   :  { %v2809_v10 = vadd.f32 %v2808_v11, %v2785_v15  ;;  %3363 = vmatpush.msrb.mxu3 %v4440_v52  ;;  %v3027_v21 = vrot.slane %v7504_v60, 1  ;;  %v4433_v22 = vld [vmem:[%s8106_s2 + $0x400] sm:$0xff]  ;;  %v4416_v15 = vld [vmem:[%s8106_s2 + $0x378] sm:$0xff]  ;;  %v3317_v11 = vrot.slane %v7457_v5, 3 }
 0x5d2   :  { %3338 = vmatpush.msrb.mxu0 %v4426_v53  ;;  %v3316_v53 = vrot.slane %v3258_v39, 3  ;;  %v4399_v59 = vld [vmem:[%s8106_s2 + $0x300] sm:$0xff]  ;;  %v3264_v60 = vld [vmem:[#allocation3 + $0x38] sm:$0x1] }
 0x5d3   :  { %v2823_v47 = vrot.slane %v2809_v10, 6  ;;  %3364 = vmatpush.msrb.mxu3 %v4439_v16  ;;  %v3028_v36 = vsel %vm3022_vm14, %v3026_v4, %v3027_v21  ;;  %v4429_v16 = vld [vmem:[%s8106_s2 + $0x3e0] sm:$0xff]  ;;  %v4477_v4 = vld [vmem:[%s8106_s2 + $0x550] sm:$0xff]  ;;  %v4466_v39 = vld [vmem:[%s8106_s2 + $0x4f8] sm:$0xff] }
 0x5d4   :  { %3339 = vmatpush.msrb.mxu0 %v4425_v25 }
 0x5d5   :  { %2839 = vst.msk [vmem:[#allocation3 + $0x10] sm:$0xfc] %vm2838_vm12, %v2823_v47  ;;  %v2853_v24 = vld [vmem:[#allocation3 + $0x18] sm:$0x3f]  ;;  %3365 = vmatpush.msrb.mxu3 %v4438_v44  ;;  %v4415_v44 = vld [vmem:[%s8106_s2 + $0x370] sm:$0xff] }
 0x5d6   :  { %v2976_v34 = vld [vmem:[#allocation3 + $0x18] sm:$0x7f]  ;;  %2917 = vmatmul.f32.gmra.mxu0 %v2853_v24 }
 0x5d7   :  { %v3024_v50 = vrot.slane %v2976_v34, 1  ;;  %3340 = vmatpush.msrb.mxu0 %v4424_v18  ;;  %3366 = vmatpush.msrb.mxu3 %v4437_v38  ;;  %v3318_v18 = vsel %vm3312_vm1, %v3316_v53, %v3317_v11  ;;  %v4414_v38 = vld [vmem:[%s8106_s2 + $0x368] sm:$0xff]  ;;  %v4481_v34 = vld [vmem:[%s8106_s2 + $0x570] sm:$0xff] }
 0x5d8   :  { %v2811_v1 = vpop.f32.mrf.mxu2  ;;  %3198 = vmatmul.f32.vlgmr.msra.gmra.mxu3 %v3167_v58  ;;  %v4413_v58 = vld [vmem:[%s8106_s2 + $0x360] sm:$0xff]  ;;  %v4465_v53 = vld [vmem:[%s8106_s2 + $0x4f0] sm:$0xff] }
 0x5d9   :  { %v3025_v12 = vsel %vm3022_vm14, %v3023_v9, %v3024_v50  ;;  %v2812_v3 = vadd.f32 %v2811_v1, %v2788_v63  ;;  %3341 = vmatpush.msrb.mxu0 %v4423_v61  ;;  %3367 = vmatpush.msrb.mxu3 %v4436_v19  ;;  %v4398_v9 = vld [vmem:[%s8106_s2 + $0x2f8] sm:$0xff]  ;;  %v3314_v61 = vrot.slane %v7473_v41, 3  ;;  %v4397_v1 = vld [vmem:[%s8106_s2 + $0x2f0] sm:$0xff] }
 0x5da   :  { %3056 = vmatmul.f32.vlgmr.msrb.gmra.mxu1 %v3025_v12  ;;  %v3324_v12 = vrot.slane %v3264_v60, 3  ;;  %v4460_v60 = vld [vmem:[%s8106_s2 + $0x4c8] sm:$0xff] }
 0x5db   :  { %3394 = vmatpush.msrb.mxu1 %v4448_v37  ;;  %v2828_v2 = vrot.slane %v2812_v3, 6  ;;  %3342 = vmatpush.msrb.mxu0 %v4422_v29  ;;  %v4480_v37 = vld [vmem:[%s8106_s2 + $0x568] sm:$0xff]  ;;  %v4486_v3 = vld [vmem:[%s8106_s2 + $0x598] sm:$0xff] }
 0x5dc   :  { %3368 = vmatpush.msrb.mxu3 %v4435_v7  ;;  %v2852_v46 = vld [vmem:[#allocation3 + $0x10] sm:$0xff]  ;;  %v4396_v7 = vld [vmem:[%s8106_s2 + $0x2e8] sm:$0xff] }
 0x5dd   :  { %3395 = vmatpush.msrb.mxu1 %v4447_v48  ;;  %v2829_v54 = vsel %vm2820_vm11, %v2823_v47, %v2828_v2  ;;  %4335 = vmatmul.msk.f32.vlgmr.msrb.gmra.mxu2 %vm2842_vm15, %v2852_v46  ;;  %v3117_v14 = vld [vmem:[#allocation3 + $0x10] sm:$0xfc]  ;;  %v3257_v47 = vld [vmem:[#allocation3] sm:$0xf8]  ;;  %v4478_v48 = vld [vmem:[%s8106_s2 + $0x558] sm:$0xff]  ;;  %v3325_v2 = vsel %vm3312_vm1, %v3317_v11, %v3324_v12  ;;  %vm4077_vm11 = vcmask 516096  }
 0x5de   :  { %3343 = vmatpush.msrb.mxu0 %v4421_v55  ;;  %2843 = vst.msk [vmem:[#allocation3 + $0x28] sm:$0xff] %vm2842_vm15, %v2829_v54  ;;  %3205 = vmatpush.msrb.mxu2 %v4406_v32  ;;  %v3171_v52 = vrot.slane %v3117_v14, 2  ;;  %v4485_v55 = vld [vmem:[%s8106_s2 + $0x590] sm:$0xff]  ;;  %v4395_v32 = vld [vmem:[%s8106_s2 + $0x2e0] sm:$0xff]  ;;  %v4472_v11 = vld [vmem:[%s8106_s2 + $0x528] sm:$0xff] }
 0x5df   :  { %3079 = vmatmul.f32.vlgmr.msra.gmra.mxu0 %v3028_v36  ;;  %3369 = vmatpush.msrb.mxu3 %v4434_v56  ;;  %v4484_v56 = vld [vmem:[%s8106_s2 + $0x588] sm:$0xff]  ;;  %v3259_v54 = vld [vmem:[#allocation3 + $0x10] sm:$0xf8] }
 0x5e0   :  { %3344 = vmatpush.msrb.mxu0 %v4420_v33  ;;  %3206 = vmatpush.msrb.mxu2 %v4405_v35  ;;  %v4394_v33 = vld [vmem:[%s8106_s2 + $0x2d8] sm:$0xff]  ;;  %v4476_v35 = vld [vmem:[%s8106_s2 + $0x548] sm:$0xff]  ;;  %v3413_v14 = vld [vmem:[#allocation3 + $0x10] sm:$0xf0] }
 0x5e1   :  { %3201 = vmatmul.f32.gmra.mxu3 %v3166_v62  ;;  %3396 = vmatpush.msrb.mxu1 %v4446_v49  ;;  %v2975_v62 = vld [vmem:[#allocation3 + $0x10] sm:$0xfe]  ;;  %v4475_v49 = vld [vmem:[%s8106_s2 + $0x540] sm:$0xff] }
 0x5e2   :  { %3370 = vmatpush.msrb.mxu3 %v4433_v22  ;;  %3059 = vmatmul.f32.gmra.mxu1 %v3024_v50  ;;  %v3313_v50 = vrot.slane %v3257_v47, 3  ;;  %v3029_v19 = vrot.slane %v2975_v62, 1  ;;  %v4393_v22 = vld [vmem:[%s8106_s2 + $0x2d0] sm:$0xff]  ;;  %v4463_v47 = vld [vmem:[%s8106_s2 + $0x4e0] sm:$0xff]  ;;  %v4462_v62 = vld [vmem:[%s8106_s2 + $0x4d8] sm:$0xff] }
 0x5e3   :  { %3207 = vmatpush.msrb.mxu2 %v4404_v28  ;;  %3345 = vmatpush.msrb.mxu0 %v4419_v57  ;;  %v3319_v57 = vrot.slane %v3259_v54, 3 }
 0x5e4   :  { %3371 = vmatpush.msrb.mxu3 %v4432_v40  ;;  %3397 = vmatpush.msrb.mxu1 %v4445_v27  ;;  %v3315_v29 = vsel %vm3312_vm1, %v3313_v50, %v3314_v61  ;;  %v4483_v40 = vld [vmem:[%s8106_s2 + $0x580] sm:$0xff]  ;;  %v4474_v27 = vld [vmem:[%s8106_s2 + $0x538] sm:$0xff] }
 0x5e5   :  { %3208 = vmatpush.msrb.mxu2 %v4403_v31  ;;  %3346 = vmatpush.msrb.mxu0 %v4418_v45  ;;  %v2855_v26 = vld [vmem:[#allocation3 + $0x28] sm:$0x3f] }
 0x5e6   :  { %3372 = vmatpush.msrb.mxu3 %v4431_v42  ;;  %v7582_v8 = vld [vmem:[#allocation3 + $0x28] sm:$0xff]  ;;  %4336 = vmatmul.msk.f32.gmra.mxu2 %vm2842_vm15, %v2855_v26  ;;  %v3169_v26 = vrot.slane %v7457_v5, 2 }
 0x5e7   :  { %3209 = vmatpush.msrb.mxu2 %v4402_v23  ;;  %3347 = vmatpush.msrb.mxu0 %v4417_v30  ;;  %v3172_v0 = vrot.slane %v7582_v8, 2  ;;  %v7596_v10 = vld [vmem:[#allocation3 + $0x28] sm:$0x7f]  ;;  %v3320_v36 = vrot.slane %v7582_v8, 3  ;;  %v3265_v23 = vld [vmem:[#allocation3 + $0x40] sm:$0x1] }
 0x5e8   :  { %3082 = vmatmul.f32.gmra.mxu0 %v3027_v21  ;;  %3373 = vmatpush.msrb.mxu3 %v4430_v43  ;;  %v3030_v24 = vrot.slane %v7596_v10, 1  ;;  %v3263_v21 = vld [vmem:[#allocation3 + $0x30] sm:$0x1]  ;;  %v4392_v31 = vld [vmem:[%s8106_s2 + $0x2c8] sm:$0xff]  ;;  %v4391_v30 = vld [vmem:[%s8106_s2 + $0x2c0] sm:$0xff] }
 0x5e9   :  { %3210 = vmatpush.msrb.mxu2 %v4401_v13  ;;  %v3173_v25 = vsel %vm3164_vm13, %v3171_v52, %v3172_v0  ;;  %3348 = vmatpush.msrb.mxu0 %v4416_v15  ;;  %v3322_v46 = vrot.slane %v3263_v21, 3  ;;  %v3116_v45 = vld [vmem:[#allocation3 + $0x8] sm:$0xfc]  ;;  %v3321_v42 = vsel %vm3312_vm1, %v3319_v57, %v3320_v36  ;;  %v3473_v13 = vrot.slane %v7582_v8, 4  ;;  %v4473_v15 = vld [vmem:[%s8106_s2 + $0x530] sm:$0xff]  ;;  %v4471_v10 = vld [vmem:[%s8106_s2 + $0x520] sm:$0xff] }
 0x5ea   :  { %4411 = vmatmul.msk.f32.vlgmr.msra.gmra.mxu1 %vm2842_vm15, %v3173_v25  ;;  %3374 = vmatpush.msrb.mxu3 %v4429_v16  ;;  %v3031_v63 = vsel %vm3022_vm14, %v3029_v19, %v3030_v24  ;;  %v3168_v43 = vrot.slane %v3116_v45, 2  ;;  %v3472_v52 = vrot.slane %v3413_v14, 4  ;;  %v3419_v25 = vld [vmem:[#allocation3 + $0x40] sm:$0x3]  ;;  %v4453_v21 = vld [vmem:[%s8106_s2 + $0x490] sm:$0xff] }
 0x5eb   :  { %3211 = vmatpush.msrb.mxu2 %v4400_v17  ;;  %3349 = vmatpush.msrb.mxu0 %v4415_v44  ;;  %v3323_v28 = vsel %vm3312_vm1, %v3314_v61, %v3322_v46  ;;  %v4464_v17 = vld [vmem:[%s8106_s2 + $0x4e8] sm:$0xff]  ;;  %v3470_v61 = vrot.slane %v7457_v5, 4  ;;  %v4459_v19 = vld [vmem:[%s8106_s2 + $0x4c0] sm:$0xff] }
 0x5ec   :  { %3375 = vmatmul.f32.vlgmr.msrb.gmra.mxu3 %v3318_v18  ;;  %3512 = vmatpush.msra.mxu1 %v4482_v51  ;;  %v3170_v8 = vsel %vm3164_vm13, %v3168_v43, %v3169_v26  ;;  %v3474_v16 = vsel %vm1156_vm2, %v3472_v52, %v3473_v13  ;;  %v4470_v51 = vld [vmem:[%s8106_s2 + $0x518] sm:$0xff]  ;;  %v4469_v18 = vld [vmem:[%s8106_s2 + $0x510] sm:$0xff] }
 0x5ed   :  { %3212 = vmatpush.msrb.mxu2 %v4399_v59  ;;  %3350 = vmatpush.msrb.mxu0 %v4414_v38  ;;  %v3479_v59 = vrot.slane %v3419_v25, 4  ;;  %v3412_v38 = vld [vmem:[#allocation3 + $0x8] sm:$0xf0] }
 0x5ee   :  { %3513 = vmatpush.msra.mxu1 %v4481_v34  ;;  %4373 = vmatmul.msk.f32.vlgmr.msra.gmra.mxu2 %vm2842_vm15, %v3031_v63  ;;  %v4468_v34 = vld [vmem:[%s8106_s2 + $0x508] sm:$0xff]  ;;  %v3469_v50 = vrot.slane %v3412_v38, 4  ;;  %v3418_v63 = vld [vmem:[#allocation3 + $0x38] sm:$0x3] }
 0x5ef   :  { %3213 = vmatpush.msrb.mxu2 %v4398_v9  ;;  %3351 = vmatpush.msrb.mxu0 %v4413_v58  ;;  %v3480_v9 = vsel %vm1156_vm2, %v3473_v13, %v3479_v59  ;;  %v4467_v58 = vld [vmem:[%s8106_s2 + $0x500] sm:$0xff]  ;;  %v3477_v12 = vrot.slane %v3418_v63, 4  ;;  %v3586_v63 = vld [vmem:[%s8107_s13 + $0x68] sm:$0xff] }
 0x5f0   :  { %3352 = vmatmul.f32.vlgmr.msrb.gmra.mxu0 %v3315_v29  ;;  %3514 = vmatpush.msra.mxu1 %v4480_v37  ;;  %v3471_v5 = vsel %vm1156_vm2, %v3469_v50, %v3470_v61  ;;  %v4458_v37 = vld [vmem:[%s8106_s2 + $0x4b8] sm:$0xff]  ;;  %v4456_v29 = vld [vmem:[%s8106_s2 + $0x4a8] sm:$0xff] }
 0x5f1   :  { %3214 = vmatpush.msrb.mxu2 %v4397_v1  ;;  %3547 = vmatpush.msra.mxu0 %v4486_v3  ;;  %v4457_v1 = vld [vmem:[%s8106_s2 + $0x4b0] sm:$0xff]  ;;  %v3478_v3 = vsel %vm1156_vm2, %v3470_v61, %v3477_v12 }
 0x5f2   :  { %4412 = vmatmul.msk.f32.gmra.mxu1 %vm2842_vm15, %v3172_v0  ;;  %v3326_v0 = vrot.slane %v3265_v23, 3  ;;  %v2849_v23 = vld [vmem:[#allocation4 + $0x8] sm:$0x3f]  ;;  %3592 = vmatpush.msra.mxu3 %v3586_v63 }
 0x5f3   :  { %3515 = vmatpush.msra.mxu1 %v4479_v6  ;;  %3215 = vmatpush.msrb.mxu2 %v4396_v7  ;;  %v4455_v6 = vld [vmem:[%s8106_s2 + $0x4a0] sm:$0xff]  ;;  %v4454_v7 = vld [vmem:[%s8106_s2 + $0x498] sm:$0xff] }
 0x5f4   :  { %3378 = vmatmul.f32.gmra.mxu3 %v3325_v2  ;;  %3548 = vmatpush.msra.mxu0 %v4485_v55  ;;  %v3327_v44 = vsel %vm3312_vm1, %v3320_v36, %v3326_v0  ;;  %v4452_v55 = vld [vmem:[%s8106_s2 + $0x488] sm:$0xff] }
 0x5f5   :  { %3516 = vmatpush.msra.mxu1 %v4478_v48  ;;  %3216 = vmatpush.msrb.mxu2 %v4395_v32  ;;  %v3411_v48 = vld [vmem:[#allocation3] sm:$0xf0]  ;;  %v3467_v32 = vrot.slane %v7473_v41, 4 }
 0x5f6   :  { %3549 = vmatpush.msra.mxu0 %v4484_v56  ;;  %4374 = vmatmul.msk.f32.gmra.mxu2 %vm2842_vm15, %v3030_v24  ;;  %v4461_v24 = vld [vmem:[%s8106_s2 + $0x4d0] sm:$0xff]  ;;  %v3466_v2 = vrot.slane %v3411_v48, 4 }
 0x5f7   :  { %3517 = vmatpush.msra.mxu1 %v4477_v4  ;;  %3217 = vmatpush.msrb.mxu2 %v4394_v33  ;;  %v4451_v4 = vld [vmem:[%s8106_s2 + $0x480] sm:$0xff]  ;;  %v3417_v56 = vld [vmem:[#allocation3 + $0x30] sm:$0x3] }
 0x5f8   :  { %3355 = vmatmul.f32.gmra.mxu0 %v3323_v28  ;;  %v3468_v46 = vsel %vm1156_vm2, %v3466_v2, %v3467_v32  ;;  %v3475_v33 = vrot.slane %v3417_v56, 4  ;;  %v3582_v2 = vld [vmem:[%s8107_s13 + $0x48] sm:$0xff] }
 0x5f9   :  { %3518 = vmatpush.msra.mxu1 %v4476_v35  ;;  %3218 = vmatpush.msrb.mxu2 %v4393_v22  ;;  %v2848_v22 = vld [vmem:[#allocation4] sm:$0xff] }
 0x5fa   :  { %4449 = vmatmul.msk.f32.vlgmr.msrb.gmra.mxu1 %vm2842_vm15, %v3321_v42  ;;  %3550 = vmatpush.msra.mxu0 %v4483_v40  ;;  %v3476_v54 = vsel %vm1156_vm2, %v3467_v32, %v3475_v33  ;;  %v3580_v33 = vld [vmem:[%s8107_s13 + $0x38] sm:$0xff] }
 0x5fb   :  { %3519 = vmatpush.msra.mxu1 %v4475_v49  ;;  %3219 = vmatpush.msrb.mxu2 %v4392_v31 }
 0x5fd   :  { %3520 = vmatpush.msra.mxu1 %v4474_v27  ;;  %3220 = vmatpush.msrb.mxu2 %v4391_v30 }
 0x5fe   :  { %3221 = vmatmul.f32.vlgmr.msrb.gmra.mxu2 %v3170_v8 }
 0x5ff   :  { %3489 = vmatpush.msra.mxu2 %v4466_v39  ;;  %3521 = vmatpush.msra.mxu1 %v4473_v15 }
 0x600   :  { %4487 = vmatmul.msk.f32.vlgmr.msra.gmra.mxu0 %vm2842_vm15, %v3474_v16 }
 0x601   :  { %3490 = vmatpush.msra.mxu2 %v4465_v53  ;;  %3522 = vmatpush.msra.mxu1 %v4472_v11 }
 0x602   :  { %4450 = vmatmul.msk.f32.gmra.mxu1 %vm2842_vm15, %v3327_v44 }
 0x603   :  { %3491 = vmatpush.msra.mxu2 %v4464_v17  ;;  %3523 = vmatpush.msra.mxu1 %v4471_v10 }
 0x605   :  { %3492 = vmatpush.msra.mxu2 %v4463_v47  ;;  %3524 = vmatpush.msra.mxu1 %v4470_v51 }
 0x606   :  { %3224 = vmatmul.f32.gmra.mxu2 %v3169_v26 }
 0x607   :  { %3493 = vmatpush.msra.mxu2 %v4462_v62  ;;  %3525 = vmatpush.msra.mxu1 %v4469_v18 }
 0x608   :  { %4488 = vmatmul.msk.f32.gmra.mxu0 %vm2842_vm15, %v3480_v9 }
 0x609   :  { %3494 = vmatpush.msra.mxu2 %v4461_v24  ;;  %3526 = vmatpush.msra.mxu1 %v4468_v34 }
 0x60b   :  { %3495 = vmatpush.msra.mxu2 %v4460_v60  ;;  %3527 = vmatpush.msra.mxu1 %v4467_v58 }
 0x60c   :  { %3528 = vmatmul.f32.vlgmr.msra.gmra.mxu1 %v3471_v5 }
 0x60d   :  { %3496 = vmatpush.msra.mxu2 %v4459_v19 }
 0x60f   :  { %3497 = vmatpush.msra.mxu2 %v4458_v37 }
 0x611   :  { %3498 = vmatpush.msra.mxu2 %v4457_v1  ;;  %v3585_v1 = vld [vmem:[%s8107_s13 + $0x60] sm:$0xff] }
 0x612   :  { %3593 = vmatpush.msra.mxu3 %v3585_v1 }
 0x613   :  { %3499 = vmatpush.msra.mxu2 %v4456_v29 }
 0x614   :  { %3531 = vmatmul.f32.gmra.mxu1 %v3478_v3 }
 0x615   :  { %3500 = vmatpush.msra.mxu2 %v4455_v6  ;;  %v3584_v6 = vld [vmem:[%s8107_s13 + $0x58] sm:$0xff] }
 0x616   :  { %3594 = vmatpush.msra.mxu3 %v3584_v6 }
 0x617   :  { %3501 = vmatpush.msra.mxu2 %v4454_v7 }
 0x619   :  { %3502 = vmatpush.msra.mxu2 %v4453_v21  ;;  %v3583_v21 = vld [vmem:[%s8107_s13 + $0x50] sm:$0xff] }
 0x61a   :  { %3595 = vmatpush.msra.mxu3 %v3583_v21 }
 0x61b   :  { %3503 = vmatpush.msra.mxu2 %v4452_v55 }
 0x61c   :  { %3596 = vmatpush.msra.mxu3 %v3582_v2 }
 0x61d   :  { %3504 = vmatpush.msra.mxu2 %v4451_v4  ;;  %v3581_v4 = vld [vmem:[%s8107_s13 + $0x40] sm:$0xff] }
 0x61e   :  { %3505 = vmatmul.f32.vlgmr.msra.gmra.mxu2 %v3468_v46  ;;  %3597 = vmatpush.msra.mxu3 %v3581_v4 }
 0x61f   :  { %3658 = vmatpush.msrb.mxu2 %v3586_v63 }
 0x620   :  { %3598 = vmatpush.msra.mxu3 %v3580_v33 }
 0x621   :  { %3659 = vmatpush.msrb.mxu2 %v3585_v1 }
 0x623   :  { %3660 = vmatpush.msrb.mxu2 %v3584_v6  ;;  %v3732_v6 = vld [vmem:[%s8109_s7 + $0x60] sm:$0xff] }
 0x625   :  { %3661 = vmatpush.msrb.mxu2 %v3583_v21  ;;  %v3774_v21 = vld [vmem:[%s8110_s8 + $0x58] sm:$0xff] }
 0x626   :  { %3508 = vmatmul.f32.gmra.mxu2 %v3476_v54  ;;  %v3579_v54 = vld [vmem:[%s8107_s13 + $0x30] sm:$0xff] }
 0x627   :  { %3662 = vmatpush.msrb.mxu2 %v3582_v2  ;;  %3599 = vmatpush.msra.mxu3 %v3579_v54  ;;  %v3729_v2 = vld [vmem:[%s8109_s7 + $0x48] sm:$0xff] }
 0x629   :  { %3663 = vmatpush.msrb.mxu2 %v3581_v4  ;;  %v3728_v4 = vld [vmem:[%s8109_s7 + $0x40] sm:$0xff] }
 0x62b   :  { %3664 = vmatpush.msrb.mxu2 %v3580_v33 }
 0x62d   :  { %3665 = vmatpush.msrb.mxu2 %v3579_v54  ;;  %v3727_v54 = vld [vmem:[%s8109_s7 + $0x38] sm:$0xff] }
 0x64a   :  { %v2915_v41 = vpop.f32.mrf.mxu0  ;;  %v2938_v36 = vpop.f32.mrf.mxu3 }
 0x64b   :  { %v2939_v35 = vadd.f32 %v2938_v36, %v2915_v41  ;;  %v3578_v41 = vld [vmem:[%s8107_s13 + $0x28] sm:$0xff] }
 0x64c   :  { %3600 = vmatpush.msra.mxu3 %v3578_v41  ;;  %3666 = vmatpush.msrb.mxu2 %v3578_v41  ;;  %v3770_v41 = vld [vmem:[%s8110_s8 + $0x38] sm:$0xff] }
 0x653   :  { %v2918_v40 = vpop.f32.mrf.mxu0  ;;  %v2941_v45 = vpop.f32.mrf.mxu3 }
 0x654   :  { %v2942_v42 = vadd.f32 %v2941_v45, %v2918_v40  ;;  %v3576_v40 = vld [vmem:[%s8107_s13 + $0x18] sm:$0xff] }
 0x657   :  { %v3057_v49 = vpop.f32.mrf.mxu1 }
 0x65b   :  { %v3199_v52 = vpop.f32.mrf.mxu3 }
 0x65c   :  { %v3080_v14 = vpop.f32.mrf.mxu0 }
 0x65d   :  { %v3081_v20 = vadd.f32 %v3080_v14, %v3057_v49 }
 0x65f   :  { %v3060_v39 = vpop.f32.mrf.mxu1 }
 0x660   :  { %v2961_v28 = vpop.f32.mrf.mxu2 }
 0x661   :  { %v2962_v57 = vadd.f32 %v2961_v28, %v2939_v35  ;;  %v3577_v35 = vld [vmem:[%s8107_s13 + $0x20] sm:$0xff] }
 0x662   :  { %3601 = vmatpush.msra.mxu3 %v3577_v35  ;;  %3667 = vmatpush.msrb.mxu2 %v3577_v35  ;;  %v3726_v35 = vld [vmem:[%s8109_s7 + $0x30] sm:$0xff] }
 0x663   :  { %v2967_v31 = vadd.f32 %v2962_v57, %v2848_v22 }
 0x664   :  { %v3202_v44 = vpop.f32.mrf.mxu3  ;;  %3602 = vmatpush.msra.mxu3 %v3576_v40  ;;  %3668 = vmatpush.msrb.mxu2 %v3576_v40  ;;  %v3724_v40 = vld [vmem:[%s8109_s7 + $0x20] sm:$0xff] }
 0x665   :  { %2969 = vst.msk [vmem:[#allocation4] sm:$0xff] %vm2844_vm3, %v2967_v31  ;;  %v3083_v53 = vpop.f32.mrf.mxu0  ;;  %v3575_v31 = vld [vmem:[%s8107_s13 + $0x10] sm:$0xff] }
 0x666   :  { %v3084_v8 = vadd.f32 %v3083_v53, %v3060_v39  ;;  %3603 = vmatpush.msra.mxu3 %v3575_v31  ;;  %3669 = vmatpush.msrb.mxu2 %v3575_v31 }
 0x667   :  { %v3245_v11 = vpop.f32.mrf.mxu1 }
 0x669   :  { %v2964_v27 = vpop.f32.mrf.mxu2 }
 0x66a   :  { %v2965_v30 = vadd.f32 %v2964_v27, %v2942_v42  ;;  %v3573_v27 = vld [vmem:[%s8107_s13] sm:$0xff] }
 0x66c   :  { %v2968_v43 = vadd.f32 %v2965_v30, %v2849_v23  ;;  %v2971_v15 = vld [vmem:[#allocation4] sm:$0xff] }
 0x66d   :  { %v3353_v24 = vpop.f32.mrf.mxu0  ;;  %v3574_v23 = vld [vmem:[%s8107_s13 + $0x8] sm:$0xff] }
 0x66e   :  { %2970 = vst.msk [vmem:[#allocation4 + $0x8] sm:$0x3f] %vm2846_vm4, %v2968_v43  ;;  %3604 = vmatpush.msra.mxu3 %v3574_v23  ;;  %3670 = vmatpush.msrb.mxu2 %v3574_v23 }
 0x66f   :  { %v3248_v47 = vpop.f32.mrf.mxu1  ;;  %v3376_v34 = vpop.f32.mrf.mxu3 }
 0x670   :  { %v3377_v60 = vadd.f32 %v3376_v34, %v3353_v24  ;;  %3605 = vmatpush.msra.mxu3 %v3573_v27  ;;  %3671 = vmatpush.msrb.mxu2 %v3573_v27 }
 0x671   :  { %v3103_v26 = vpop.f32.mrf.mxu2 }
 0x672   :  { %v3104_v13 = vadd.f32 %v3103_v26, %v3081_v20 }
 0x674   :  { %v3109_v0 = vadd.f32 %v3104_v13, %v2971_v15 }
 0x675   :  { %v2972_v10 = vld [vmem:[#allocation4 + $0x8] sm:$0x3f]  ;;  %v3356_v3 = vpop.f32.mrf.mxu0 }
 0x676   :  { %3111 = vst.msk [vmem:[#allocation4] sm:$0xff] %vm2844_vm3, %v3109_v0 }
 0x677   :  { %v3399_v9 = vpop.f32.mrf.mxu1  ;;  %v3379_v7 = vpop.f32.mrf.mxu3 }
 0x678   :  { %v3400_v5 = vadd.f32 %v3399_v9, %v3377_v60  ;;  %v3380_v55 = vadd.f32 %v3379_v7, %v3356_v3  ;;  %v3775_v3 = vld [vmem:[%s8110_s8 + $0x60] sm:$0xff]  ;;  %v3731_v7 = vld [vmem:[%s8109_s7 + $0x58] sm:$0xff] }
 0x679   :  { %v3106_v16 = vpop.f32.mrf.mxu2 }
 0x67a   :  { %v3107_v17 = vadd.f32 %v3106_v16, %v3084_v8 }
 0x67c   :  { %v3110_v25 = vadd.f32 %v3107_v17, %v2972_v10 }
 0x67d   :  { %v3113_v18 = vld [vmem:[#allocation4] sm:$0xff]  ;;  %v3552_v22 = vpop.f32.mrf.mxu0 }
 0x67e   :  { %3112 = vst.msk [vmem:[#allocation4 + $0x8] sm:$0x3f] %vm2846_vm4, %v3110_v25 }
 0x67f   :  { %v3402_v48 = vpop.f32.mrf.mxu1 }
 0x680   :  { %v3403_v32 = vadd.f32 %v3402_v48, %v3380_v55  ;;  %v3730_v48 = vld [vmem:[%s8109_s7 + $0x50] sm:$0xff] }
 0x681   :  { %v3222_v51 = vpop.f32.mrf.mxu2  ;;  %v3773_v55 = vld [vmem:[%s8110_s8 + $0x50] sm:$0xff] }
 0x682   :  { %v3223_v59 = vadd.f32 %v3222_v51, %v3199_v52 }
 0x684   :  { %v3246_v62 = vadd.f32 %v3245_v11, %v3223_v59 }
 0x685   :  { %v3114_v19 = vld [vmem:[#allocation4 + $0x8] sm:$0x3f]  ;;  %v3555_v43 = vpop.f32.mrf.mxu0 }
 0x686   :  { %v3251_v38 = vadd.f32 %v3246_v62, %v3113_v18 }
 0x688   :  { %3253 = vst.msk [vmem:[#allocation4] sm:$0xff] %vm2844_vm3, %v3251_v38 }
 0x689   :  { %v3225_v50 = vpop.f32.mrf.mxu2  ;;  %v3529_v36 = vpop.f32.mrf.mxu1 }
 0x68a   :  { %v3226_v61 = vadd.f32 %v3225_v50, %v3202_v44 }
 0x68c   :  { %v3249_v58 = vadd.f32 %v3248_v47, %v3226_v61  ;;  %v3611_v47 = vld [vmem:[%s8108_s14] sm:$0xf] }
 0x68d   :  { %4490 = vmatpush.msk.msrb.mxu0 %vm1156_vm2, %v3611_v47  ;;  %4493 = vmatpush.msk.msrb.mxu3 %vm1156_vm2, %v3611_v47  ;;  %v4518_v47 = vld [vmem:[%s8111_s16 + $0xa0] sm:$0xff] }
 0x68e   :  { %v3252_v37 = vadd.f32 %v3249_v58, %v3114_v19 }
 0x68f   :  { %v3255_v12 = vld [vmem:[#allocation4] sm:$0xff] }
 0x690   :  { %3254 = vst.msk [vmem:[#allocation4 + $0x8] sm:$0x3f] %vm2846_vm4, %v3252_v37  ;;  %v3405_v29 = vadd.f32 %v3400_v5, %v3255_v12  ;;  %v3733_v12 = vld [vmem:[%s8109_s7 + $0x68] sm:$0xff] }
 0x691   :  { %v3532_v30 = vpop.f32.mrf.mxu1  ;;  %3742 = vmatpush.msrb.mxu1 %v3733_v12  ;;  %v3858_v12 = vld [vmem:[%s8111_s16 + $0x18] sm:$0xff] }
 0x692   :  { %3407 = vst.msk [vmem:[#allocation4] sm:$0xff] %vm2844_vm3, %v3405_v29  ;;  %v3776_v29 = vld [vmem:[%s8110_s8 + $0x68] sm:$0xff] }
 0x693   :  { %3779 = vmatpush.msra.mxu0 %v3776_v29  ;;  %3743 = vmatpush.msrb.mxu1 %v3732_v6  ;;  %v4505_v29 = vld [vmem:[%s8111_s16 + $0x48] sm:$0xff]  ;;  %v3857_v6 = vld [vmem:[%s8111_s16 + $0x10] sm:$0xff] }
 0x695   :  { %3780 = vmatpush.msra.mxu0 %v3775_v3  ;;  %3744 = vmatpush.msrb.mxu1 %v3731_v7  ;;  %v4504_v3 = vld [vmem:[%s8111_s16 + $0x40] sm:$0xff]  ;;  %v4503_v7 = vld [vmem:[%s8111_s16 + $0x38] sm:$0xff] }
 0x697   :  { %v3256_v46 = vld [vmem:[#allocation4 + $0x8] sm:$0x3f]  ;;  %3781 = vmatpush.msra.mxu0 %v3774_v21  ;;  %3745 = vmatpush.msrb.mxu1 %v3730_v48  ;;  %v4515_v48 = vld [vmem:[%s8111_s16 + $0x88] sm:$0xff] }
 0x698   :  { %v3406_v56 = vadd.f32 %v3403_v32, %v3256_v46  ;;  %v3772_v32 = vld [vmem:[%s8110_s8 + $0x48] sm:$0xff]  ;;  %v3771_v46 = vld [vmem:[%s8110_s8 + $0x40] sm:$0xff]  ;;  %v4534_v21 = vld [vmem:[%s8111_s16 + $0x110] sm:$0xff] }
 0x699   :  { %v3409_v45 = vld [vmem:[#allocation4] sm:$0xff]  ;;  %3782 = vmatpush.msra.mxu0 %v3773_v55  ;;  %3746 = vmatpush.msrb.mxu1 %v3729_v2  ;;  %v4526_v55 = vld [vmem:[%s8111_s16 + $0xd8] sm:$0xff] }
 0x69a   :  { %3408 = vst.msk [vmem:[#allocation4 + $0x8] sm:$0x3f] %vm2846_vm4, %v3406_v56  ;;  %v3856_v2 = vld [vmem:[%s8111_s16 + $0x8] sm:$0xff] }
 0x69b   :  { %3783 = vmatpush.msra.mxu0 %v3772_v32  ;;  %3747 = vmatpush.msrb.mxu1 %v3728_v4  ;;  %v4525_v32 = vld [vmem:[%s8111_s16 + $0xd0] sm:$0xff]  ;;  %v3855_v4 = vld [vmem:[%s8111_s16] sm:$0xff] }
 0x69d   :  { %3784 = vmatpush.msra.mxu0 %v3771_v46  ;;  %3748 = vmatpush.msrb.mxu1 %v3727_v54  ;;  %v4514_v46 = vld [vmem:[%s8111_s16 + $0x80] sm:$0xff]  ;;  %v4533_v54 = vld [vmem:[%s8111_s16 + $0x108] sm:$0xff] }
 0x69f   :  { %3785 = vmatpush.msra.mxu0 %v3770_v41  ;;  %3749 = vmatpush.msrb.mxu1 %v3726_v35  ;;  %v4513_v41 = vld [vmem:[%s8111_s16 + $0x78] sm:$0xff]  ;;  %v4541_v35 = vld [vmem:[%s8111_s16 + $0x140] sm:$0xff] }
 0x6a1   :  { %v3506_v28 = vpop.f32.mrf.mxu2  ;;  %v3410_v26 = vld [vmem:[#allocation4 + $0x8] sm:$0x3f] }
 0x6a2   :  { %v3530_v57 = vadd.f32 %v3529_v36, %v3506_v28  ;;  %v3725_v28 = vld [vmem:[%s8109_s7 + $0x28] sm:$0xff] }
 0x6a3   :  { %3750 = vmatpush.msrb.mxu1 %v3725_v28  ;;  %v4540_v28 = vld [vmem:[%s8111_s16 + $0x138] sm:$0xff] }
 0x6a4   :  { %v3553_v49 = vadd.f32 %v3552_v22, %v3530_v57  ;;  %v3769_v22 = vld [vmem:[%s8110_s8 + $0x30] sm:$0xff]  ;;  %v3768_v57 = vld [vmem:[%s8110_s8 + $0x28] sm:$0xff] }
 0x6a5   :  { %3786 = vmatpush.msra.mxu0 %v3769_v22  ;;  %3751 = vmatpush.msrb.mxu1 %v3724_v40  ;;  %v4512_v22 = vld [vmem:[%s8111_s16 + $0x70] sm:$0xff]  ;;  %v4532_v40 = vld [vmem:[%s8111_s16 + $0x100] sm:$0xff] }
 0x6a6   :  { %v3558_v42 = vadd.f32 %v3553_v49, %v3409_v45  ;;  %v3767_v49 = vld [vmem:[%s8110_s8 + $0x20] sm:$0xff] }
 0x6a7   :  { %3787 = vmatpush.msra.mxu0 %v3768_v57  ;;  %v4550_v57 = vld [vmem:[%s8111_s16 + $0x180] sm:$0xff] }
 0x6a8   :  { %3560 = vst.msk [vmem:[#allocation4] sm:$0xff] %vm2844_vm3, %v3558_v42 }
 0x6a9   :  { %v3509_v14 = vpop.f32.mrf.mxu2  ;;  %3788 = vmatpush.msra.mxu0 %v3767_v49  ;;  %v4522_v49 = vld [vmem:[%s8111_s16 + $0xb8] sm:$0xff] }
 0x6aa   :  { %v3533_v39 = vadd.f32 %v3532_v30, %v3509_v14 }
 0x6ac   :  { %v3556_v20 = vadd.f32 %v3555_v43, %v3533_v39  ;;  %v3723_v39 = vld [vmem:[%s8109_s7 + $0x18] sm:$0xff] }
 0x6ad   :  { %v3766_v43 = vld [vmem:[%s8110_s8 + $0x18] sm:$0xff]  ;;  %3752 = vmatpush.msrb.mxu1 %v3723_v39  ;;  %v4520_v39 = vld [vmem:[%s8111_s16 + $0xa8] sm:$0xff] }
 0x6ae   :  { %v3559_v13 = vadd.f32 %v3556_v20, %v3410_v26  ;;  %v3722_v20 = vld [vmem:[%s8109_s7 + $0x10] sm:$0xff]  ;;  %3789 = vmatpush.msra.mxu0 %v3766_v43  ;;  %v4529_v43 = vld [vmem:[%s8111_s16 + $0xe8] sm:$0xff] }
 0x6af   :  { %v3562_v15 = vld [vmem:[#allocation4] sm:$0xff]  ;;  %v3765_v26 = vld [vmem:[%s8110_s8 + $0x10] sm:$0xff]  ;;  %3753 = vmatpush.msrb.mxu1 %v3722_v20  ;;  %v4537_v20 = vld [vmem:[%s8111_s16 + $0x120] sm:$0xff] }
 0x6b0   :  { %3561 = vst.msk [vmem:[#allocation4 + $0x8] sm:$0x3f] %vm2846_vm4, %v3559_v13  ;;  %v3564_v0 = vsel %vm2844_vm3, %v3562_v15, 0.0  ;;  %v3721_v13 = vld [vmem:[%s8109_s7 + $0x8] sm:$0xff]  ;;  %3790 = vmatpush.msra.mxu0 %v3765_v26 }
 0x6b1   :  { %3754 = vmatpush.msrb.mxu1 %v3721_v13  ;;  %v4547_v26 = vld [vmem:[%s8111_s16 + $0x168] sm:$0xff]  ;;  %v4536_v13 = vld [vmem:[%s8111_s16 + $0x118] sm:$0xff] }
 0x6b7   :  { %v3563_v52 = vld [vmem:[#allocation4 + $0x8] sm:$0x3f] }
 0x6b8   :  { %v3565_v53 = vsel %vm2846_vm4, %v3563_v52, 0.0 }
 0x6b9   :  { %v3566_v11 = vadd.f32 %v3565_v53, %v3564_v0  ;;  %v3763_v0 = vld [vmem:[%s8110_s8] sm:$0xff] }
 0x6bb   :  { %v3567_v8 = vrot.slane %v3566_v11, 4 }
 0x6bd   :  { %v3568_v16 = vadd.f32 %v3567_v8, %v3566_v11 }
 0x6bf   :  { %v3569_v17 = vrot.slane %v3568_v16, 2 }
 0x6c1   :  { %v3570_v10 = vadd.f32 %v3569_v17, %v3568_v16 }
 0x6c3   :  { %v3571_v25 = vrot.slane %v3570_v10, 1 }
 0x6c5   :  { %v3572_v44 = vadd.f32 %v3571_v25, %v3570_v10 }
 0x6c7   :  { %4489 = vmatmul.msk.f32.vlgmr.msra.gmra.mxu3 %vm2844_vm3, %v3572_v44 }
 0x74a   :  { %v3607_v51 = vpop.f32.mrf.mxu3 }
 0x74b   :  { %v3610_v59 = vmul.f32 0.0025510204, %v3607_v51  ;;  %v4517_v51 = vld [vmem:[%s8111_s16 + $0x98] sm:$0xff] }
 0x74d   :  { %4491 = vmatmul.msk.f32.vlgmr.msrb.gmra.mxu0 %vm3612_vm5, %v3610_v59  ;;  %v4516_v59 = vld [vmem:[%s8111_s16 + $0x90] sm:$0xff] }
 0x7ca   :  { %v3636_v62 = vpop.f32.mrf.mxu0 }
 0x7cb   :  { %v3639_v18 = vperm.slane %v3636_v62, 0 }
 0x7cd   :  { %v7837_v38 = vsub.f32 %v3562_v15, %v3639_v18  ;;  %v7839_v24 = vsub.f32 %v3563_v52, %v3639_v18  ;;  %v3764_v15 = vld [vmem:[%s8110_s8 + $0x8] sm:$0xff]  ;;  %v3720_v52 = vld [vmem:[%s8109_s7] sm:$0xff] }
 0x7ce   :  { %3791 = vmatpush.msra.mxu0 %v3764_v15  ;;  %3755 = vmatpush.msrb.mxu1 %v3720_v52  ;;  %v4546_v15 = vld [vmem:[%s8111_s16 + $0x160] sm:$0xff] }
 0x7cf   :  { %v3642_v34 = vmul.f32 %v7837_v38, %v7837_v38  ;;  %v3643_v9 = vmul.f32 %v7839_v24, %v7839_v24  ;;  %v4528_v52 = vld [vmem:[%s8111_s16 + $0xe0] sm:$0xff] }
 0x7d0   :  { %3792 = vmatpush.msra.mxu0 %v3763_v0  ;;  %3937 = vmatpush.msra.mxu1 %v4518_v47  ;;  %v4545_v0 = vld [vmem:[%s8111_s16 + $0x158] sm:$0xff] }
 0x7d1   :  { %v3644_v50 = vsel %vm2844_vm3, %v3642_v34, 0.0  ;;  %v3645_v61 = vsel %vm2846_vm4, %v3643_v9, 0.0 }
 0x7d2   :  { %v3646_v60 = vadd.f32 %v3645_v61, %v3644_v50  ;;  %3938 = vmatpush.msra.mxu1 %v4517_v51  ;;  %v3802_v50 = vld [vmem:[%s8112_s9] sm:$0x7f]  ;;  %4001 = vmatpush.msrb.mxu0 %v4534_v21 }
 0x7d3   :  { %v3830_v61 = vld [vmem:[%s8113_s10] sm:$0x7f] }
 0x7d4   :  { %v3647_v58 = vrot.slane %v3646_v60, 4  ;;  %3939 = vmatpush.msra.mxu1 %v4516_v59  ;;  %4002 = vmatpush.msrb.mxu0 %v4533_v54 }
 0x7d6   :  { %v3648_v19 = vadd.f32 %v3647_v58, %v3646_v60  ;;  %v4509_v60 = vld [vmem:[%s8111_s16 + $0x68] sm:$0xff]  ;;  %v3861_v58 = vld [vmem:[%s8111_s16 + $0x30] sm:$0xff]  ;;  %3940 = vmatpush.msra.mxu1 %v4515_v48  ;;  %4003 = vmatpush.msrb.mxu0 %v4532_v40 }
 0x7d8   :  { %v3649_v5 = vrot.slane %v3648_v19, 2  ;;  %3941 = vmatpush.msra.mxu1 %v4514_v46 }
 0x7da   :  { %v3650_v37 = vadd.f32 %v3649_v5, %v3648_v19  ;;  %v4508_v19 = vld [vmem:[%s8111_s16 + $0x60] sm:$0xff]  ;;  %v3860_v5 = vld [vmem:[%s8111_s16 + $0x28] sm:$0xff]  ;;  %3942 = vmatpush.msra.mxu1 %v4513_v41 }
 0x7dc   :  { %v3651_v63 = vrot.slane %v3650_v37, 1  ;;  %3943 = vmatpush.msra.mxu1 %v4512_v22 }
 0x7de   :  { %v3652_v1 = vadd.f32 %v3651_v63, %v3650_v37  ;;  %v4507_v37 = vld [vmem:[%s8111_s16 + $0x58] sm:$0xff]  ;;  %v3859_v63 = vld [vmem:[%s8111_s16 + $0x20] sm:$0xff] }
 0x7e0   :  { %4492 = vmatmul.msk.f32.vlgmr.msrb.gmra.mxu2 %vm2844_vm3, %v3652_v1  ;;  %v4506_v1 = vld [vmem:[%s8111_s16 + $0x50] sm:$0xff] }
 0x863   :  { %v3673_v56 = vpop.f32.mrf.mxu2 }
 0x864   :  { %v3676_v33 = vmul.f32 0.0025510204, %v3673_v56  ;;  %v4524_v56 = vld [vmem:[%s8111_s16 + $0xc8] sm:$0xff] }
 0x866   :  { %v3677_v36 = vadd.f32 0.0001, %v3676_v33  ;;  %v4542_v33 = vld [vmem:[%s8111_s16 + $0x148] sm:$0xff] }
 0x868   :  { %4555 = vrsqrt.f32 %v3677_v36  ;;  %vm3684_vm6 = vweird.f32 %v3677_v36 }
 0x86e   :  { %v4556_v31 = vpop.eup %4555 }
 0x86f   :  { %v3679_v45 = vmul.f32 %v4556_v31, %v3677_v36  ;;  %vm3685_vm2 = vweird.f32 %v4556_v31  ;;  %v4523_v36 = vld [vmem:[%s8111_s16 + $0xc0] sm:$0xff] }
 0x870   :  { %vm3686_vm7 = vmor %vm3684_vm6, %vm3685_vm2 }
 0x871   :  { %v3680_v42 = vmul.f32 %v4556_v31, %v3679_v45  ;;  %v4539_v45 = vld [vmem:[%s8111_s16 + $0x130] sm:$0xff] }
 0x873   :  { %v3681_v23 = vmul.f32 0.5, %v3680_v42  ;;  %v4521_v42 = vld [vmem:[%s8111_s16 + $0xb0] sm:$0xff] }
 0x875   :  { %v3682_v27 = vsub.f32 1.5, %v3681_v23  ;;  %v4548_v23 = vld [vmem:[%s8111_s16 + $0x170] sm:$0xff] }
 0x877   :  { %v3683_v30 = vmul.f32 %v4556_v31, %v3682_v27  ;;  %v4531_v27 = vld [vmem:[%s8111_s16 + $0xf8] sm:$0xff] }
 0x878   :  { %4004 = vmatpush.msrb.mxu0 %v4531_v27 }
 0x879   :  { %v3687_v14 = vsel %vm3686_vm7, %v4556_v31, %v3683_v30  ;;  %v4549_v31 = vld [vmem:[%s8111_s16 + $0x178] sm:$0xff]  ;;  %v4538_v30 = vld [vmem:[%s8111_s16 + $0x128] sm:$0xff] }
 0x87a   :  { %4494 = vmatmul.msk.f32.vlgmr.msrb.gmra.mxu3 %vm3612_vm5, %v3687_v14  ;;  %v4530_v14 = vld [vmem:[%s8111_s16 + $0xf0] sm:$0xff] }
 0x87b   :  { %4005 = vmatpush.msrb.mxu0 %v4530_v14 }
 0x87d   :  { %4006 = vmatpush.msrb.mxu0 %v4529_v43 }
 0x87f   :  { %4007 = vmatpush.msrb.mxu0 %v4528_v52 }
 0x8fd   :  { %v3708_v53 = vpop.f32.mrf.mxu3 }
 0x8fe   :  { %v3711_v11 = vperm.slane %v3708_v53, 0  ;;  %v4544_v53 = vld [vmem:[%s8111_s16 + $0x150] sm:$0xff] }
 0x900   :  { %v3712_v8 = vmul.f32 %v3711_v11, %v7837_v38  ;;  %v3713_v17 = vmul.f32 %v3711_v11, %v7839_v24 }
 0x902   :  { %vm3714_vm8 = vcmp.ge.f32.partialorder %v3712_v8, 0.0  ;;  %v3716_v16 = vmul.f32 0.01, %v3712_v8  ;;  %v3717_v25 = vmul.f32 0.01, %v3713_v17  ;;  %vm3715_vm0 = vcmp.ge.f32.partialorder %v3713_v17, 0.0 }
 0x904   :  { %v3718_v10 = vsel %vm3714_vm8, %v3712_v8, %v3716_v16  ;;  %v3719_v44 = vsel %vm3715_vm0, %v3713_v17, %v3717_v25 }
 0x905   :  { %4495 = vmatmul.msk.f32.vlgmr.msrb.gmra.mxu1 %vm2844_vm3, %v3718_v10  ;;  %4497 = vmatmul.msk.f32.vlgmr.msra.gmra.mxu0 %vm2844_vm3, %v3718_v10 }
 0x906   :  { %4065 = vmatpush.msrb.mxu1 %v4550_v57 }
 0x908   :  { %4066 = vmatpush.msrb.mxu1 %v4549_v31 }
 0x90a   :  { %4067 = vmatpush.msrb.mxu1 %v4548_v23 }
 0x90c   :  { %4068 = vmatpush.msrb.mxu1 %v4547_v26 }
 0x90d   :  { %4496 = vmatmul.msk.f32.gmra.mxu1 %vm2844_vm3, %v3719_v44  ;;  %4498 = vmatmul.msk.f32.gmra.mxu0 %vm2844_vm3, %v3719_v44 }
 0x90e   :  { %4069 = vmatpush.msrb.mxu1 %v4546_v15 }
 0x910   :  { %4070 = vmatpush.msrb.mxu1 %v4545_v0 }
 0x912   :  { %4071 = vmatpush.msrb.mxu1 %v4544_v53 }
 0x982   :  { %v3757_v62 = vpop.f32.mrf.mxu1  ;;  %v3794_v18 = vpop.f32.mrf.mxu0 }
 0x983   :  { %v3800_v9 = vmax.f32 %v3757_v62, %v3794_v18 }
 0x98a   :  { %v3760_v38 = vpop.f32.mrf.mxu1  ;;  %v3797_v24 = vpop.f32.mrf.mxu0 }
 0x98b   :  { %v3801_v34 = vmax.f32 %v3760_v38, %v3797_v24 }
 0x98d   :  { %4499 = vmatpush.msk.msra.mxu3 %vm3164_vm13, %v3801_v34  ;;  %4501 = vmatpush.msk.msra.mxu2 %vm3164_vm13, %v3801_v34 }
 0x98f   :  { %3825 = vmatpush.msra.mxu3 %v3800_v9  ;;  %3849 = vmatpush.msra.mxu2 %v3800_v9 }
 0x990   :  { %4500 = vmatmul.msk.f32.vlgmr.msra.gmra.mxu3 %vm3803_vm9, %v3802_v50  ;;  %4502 = vmatmul.msk.f32.vlgmr.msra.gmra.mxu2 %vm3803_vm9, %v3830_v61 }
 0x991   :  { %3884 = vmatpush.msrb.mxu3 %v4509_v60  ;;  %3906 = vmatpush.msrb.mxu2 %v3861_v58 }
 0x993   :  { %3885 = vmatpush.msrb.mxu3 %v4508_v19  ;;  %3907 = vmatpush.msrb.mxu2 %v3860_v5 }
 0x995   :  { %3886 = vmatpush.msrb.mxu3 %v4507_v37  ;;  %3908 = vmatpush.msrb.mxu2 %v3859_v63 }
 0x997   :  { %3887 = vmatpush.msrb.mxu3 %v4506_v1  ;;  %3909 = vmatpush.msrb.mxu2 %v3858_v12 }
 0x999   :  { %3888 = vmatpush.msrb.mxu3 %v4505_v29  ;;  %3910 = vmatpush.msrb.mxu2 %v3857_v6 }
 0x99b   :  { %3889 = vmatpush.msrb.mxu3 %v4504_v3  ;;  %3911 = vmatpush.msrb.mxu2 %v3856_v2 }
 0x99d   :  { %3890 = vmatpush.msrb.mxu3 %v4503_v7  ;;  %3912 = vmatpush.msrb.mxu2 %v3855_v4 }
 0x99f   :  { %3969 = vmatpush.msra.mxu3 %v4526_v55  ;;  %4033 = vmatpush.msra.mxu2 %v4542_v33 }
 0x9a1   :  { %3970 = vmatpush.msra.mxu3 %v4525_v32  ;;  %4034 = vmatpush.msra.mxu2 %v4541_v35 }
 0x9a3   :  { %3971 = vmatpush.msra.mxu3 %v4524_v56  ;;  %4035 = vmatpush.msra.mxu2 %v4540_v28 }
 0x9a5   :  { %3972 = vmatpush.msra.mxu3 %v4523_v36  ;;  %4036 = vmatpush.msra.mxu2 %v4539_v45 }
 0x9a7   :  { %3973 = vmatpush.msra.mxu3 %v4522_v49  ;;  %4037 = vmatpush.msra.mxu2 %v4538_v30 }
 0x9a9   :  { %3974 = vmatpush.msra.mxu3 %v4521_v42  ;;  %4038 = vmatpush.msra.mxu2 %v4537_v20 }
 0x9ab   :  { %3975 = vmatpush.msra.mxu3 %v4520_v39  ;;  %4039 = vmatpush.msra.mxu2 %v4536_v13 }
 0xa13   :  { %v3827_v11 = vpop.f32.mrf.mxu3  ;;  %v3851_v8 = vpop.f32.mrf.mxu2 }
 0xa14   :  { %v3854_v16 = vmax.f32 %v3827_v11, %v3851_v8 }
 0xa16   :  { %v3871_v17 = vrot.slane %v3854_v16, 1  ;;  %4511 = vmatmul.msk.f32.vlgmr.msrb.gmra.mxu2 %vm3872_vm10, %v3854_v16  ;;  %v3925_v10 = vrot.slane %v3854_v16, 2  ;;  %v3989_v25 = vrot.slane %v3854_v16, 4  ;;  %v4021_v44 = vrot.slane %v3854_v16, 5 }
 0xa17   :  { %v3957_v47 = vrot.slane %v3854_v16, 3  ;;  %v4053_v51 = vrot.slane %v3854_v16, 6 }
 0xa18   :  { %4510 = vmatmul.msk.f32.vlgmr.msrb.gmra.mxu3 %vm3872_vm10, %v3871_v17  ;;  %4519 = vmatmul.msk.f32.vlgmr.msra.gmra.mxu1 %vm3872_vm10, %v3925_v10 }
 0xa19   :  { %4535 = vmatmul.msk.f32.vlgmr.msrb.gmra.mxu0 %vm3872_vm10, %v3989_v25 }
 0xa1e   :  { %4543 = vmatmul.msk.f32.vlgmr.msra.gmra.mxu2 %vm3872_vm10, %v4021_v44 }
 0xa20   :  { %4527 = vmatmul.msk.f32.vlgmr.msra.gmra.mxu3 %vm3872_vm10, %v3957_v47  ;;  %4551 = vmatmul.msk.f32.vlgmr.msrb.gmra.mxu1 %vm3872_vm10, %v4053_v51 }
 0xa95   :  { %v3945_v38 = vpop.f32.mrf.mxu1 }
 0xa96   :  { %v4009_v50 = vpop.f32.mrf.mxu0 }
 0xa99   :  { %v3914_v62 = vpop.f32.mrf.mxu2 }
 0xa9b   :  { %v3892_v59 = vpop.f32.mrf.mxu3 }
 0xa9c   :  { %v3915_v18 = vadd.f32 %v3914_v62, %v3892_v59 }
 0xa9d   :  { %v4073_v19 = vpop.f32.mrf.mxu1 }
 0xa9e   :  { %v3948_v24 = vadd.f32 %v3945_v38, %v3915_v18 }
 0xaa1   :  { %v4041_v60 = vpop.f32.mrf.mxu2 }
 0xaa3   :  { %v3977_v34 = vpop.f32.mrf.mxu3 }
 0xaa4   :  { %v3980_v9 = vadd.f32 %v3977_v34, %v3948_v24 }
 0xaa6   :  { %v4012_v61 = vadd.f32 %v4009_v50, %v3980_v9 }
 0xaa8   :  { %v4044_v58 = vadd.f32 %v4041_v60, %v4012_v61 }
 0xaaa   :  { %v4076_v5 = vadd.f32 %v4073_v19, %v4044_v58 }
 0xaac   :  { %4078 = vst.msk [vmem:[%s8114_s17] sm:$0x1] %vm4077_vm11, %v4076_v5 }

</bundles_post_ra>
